<compile_context>
chip_gen: v7x
topology: tpu7x:2x2x1
jax: 0.10.0
libtpu: 0.0.40
codegen_flags: <defaults>
</compile_context>

<pallas_src>
import functools

import jax
import jax.numpy as jnp
from jax.experimental import pallas as pl
from jax.experimental.pallas import tpu as pltpu

NEG_SLOPE = 0.2      # GATConv default negative_slope
MASK_VAL = -1e30     # additive mask value for non-edges


def _round_up(x, m):
    return ((x + m - 1) // m) * m


def _pick_tile(n_pad, cap):
    """Largest multiple of 128 that divides n_pad and is <= cap (n_pad % 128 == 0)."""
    t = min(cap, n_pad)
    while n_pad % t:
        t -= 128
    return t


# ---------------------------------------------------------------------------
# Kernel 1: layer-1 projection
#   H = X @ W (bf16 x bf16 -> f32 MXU), scores = H @ [a_dst a_src]
# ---------------------------------------------------------------------------
def _proj_kernel(x_ref, w_ref, a_ref, h_ref, s_ref):
    h = jnp.dot(x_ref[...], w_ref[...], preferred_element_type=jnp.float32)
    s_ref[...] = jnp.dot(h, a_ref[...], preferred_element_type=jnp.float32)
    h_ref[...] = h.astype(h_ref.dtype)     # bf16 for the aggregation matmul


def gat_project(x_pad, w_pad, a_cat, *, tile_m):
    n_pad, fin_pad = x_pad.shape
    fp = w_pad.shape[1]
    return pl.pallas_call(
        _proj_kernel,
        out_shape=(jax.ShapeDtypeStruct((n_pad, fp), jnp.bfloat16),
                   jax.ShapeDtypeStruct((n_pad, 2), jnp.float32)),
        grid=(n_pad // tile_m,),
        in_specs=[
            pl.BlockSpec((tile_m, fin_pad), lambda i: (i, 0)),
            pl.BlockSpec((fin_pad, fp), lambda i: (0, 0)),
            pl.BlockSpec((fp, 2), lambda i: (0, 0)),
        ],
        out_specs=(
            pl.BlockSpec((tile_m, fp), lambda i: (i, 0)),
            pl.BlockSpec((tile_m, 2), lambda i: (i, 0)),
        ),
        compiler_params=pltpu.CompilerParams(dimension_semantics=("parallel",)),
        cost_estimate=pl.CostEstimate(
            flops=2 * n_pad * fin_pad * fp + 4 * n_pad * fp,
            transcendentals=0,
            bytes_accessed=(n_pad * fin_pad * 2 + fin_pad * fp * 2
                            + n_pad * fp * 2 + n_pad * 8)),
    )(x_pad, w_pad, a_cat)


# ---------------------------------------------------------------------------
# Kernel 2: flash-style masked softmax + aggregation over source-column tiles,
# with the NEXT layer's projection fused into the finalization epilogue.
#   e_ij = LeakyReLU(a_dst.H_i + a_src.H_j), masked by int8 adjacency
#   alpha = row-softmax(e);  out_i = sum_j alpha_ij H_j + bias  (normalized post-matmul)
# ---------------------------------------------------------------------------
def _flash_agg_kernel(*refs, apply_relu, fuse_next):
    if fuse_next:
        (dst_ref, srct_ref, adj_ref, h_ref, b_ref, wn_ref, an_ref,
         hn_ref, sn_ref, stats_ref, m_sc, d_sc, acc_sc) = refs
    else:
        (dst_ref, srct_ref, adj_ref, h_ref, b_ref,
         out_ref, stats_ref, m_sc, d_sc, acc_sc) = refs

    k = pl.program_id(1)

    @pl.when(k == 0)
    def _():
        m_sc[...] = jnp.full_like(m_sc, MASK_VAL)
        d_sc[...] = jnp.zeros_like(d_sc)
        acc_sc[...] = jnp.zeros_like(acc_sc)

    # Edge logits for this (dst-row tile, src-col tile) block.
    e = dst_ref[...] + srct_ref[...]                 # (TM,1)+(1,TN) -> (TM,TN)
    e = jnp.maximum(e, NEG_SLOPE * e)                # LeakyReLU(0.2), max-form
    e = jnp.where(adj_ref[...] != 0, e, MASK_VAL)    # int8 0/1 mask

    # Online softmax update; normalization deferred to the epilogue.
    m_prev = m_sc[...]
    m_new = jnp.maximum(m_prev, jnp.max(e, axis=-1, keepdims=True))
    scale = jnp.exp(m_prev - m_new)                  # 0 while no edge seen yet
    p = jnp.exp(e - m_new)                           # masked entries underflow to 0
    d_sc[...] = scale * d_sc[...] + jnp.sum(p, axis=-1, keepdims=True)
    acc_sc[...] = scale * acc_sc[...] + jnp.dot(
        p.astype(jnp.bfloat16), h_ref[...], preferred_element_type=jnp.float32)
    m_sc[...] = m_new

    @pl.when(k == pl.num_programs(1) - 1)
    def _():
        inv_d = pl.reciprocal(d_sc[...], approx=True)     # EUP slot, ~free
        out = acc_sc[...] * inv_d + b_ref[...]
        if apply_relu:
            out = jnp.maximum(out, 0.0)
        stats_ref[:, 0:1] = m_sc[...]                     # row max
        stats_ref[:, 1:2] = d_sc[...]                     # row denom
        if fuse_next:
            hn = jnp.dot(out.astype(jnp.bfloat16), wn_ref[...],
                         preferred_element_type=jnp.float32)
            sn_ref[...] = jnp.dot(hn, an_ref[...], preferred_element_type=jnp.float32)
            hn_ref[...] = hn.astype(hn_ref.dtype)
        else:
            out_ref[...] = out.astype(out_ref.dtype)


def gat_aggregate(scores, adj, h, b_pad, w_next=None, a_next=None, *,
                  tile_m, tile_n, apply_relu):
    n_pad = adj.shape[0]
    fp = h.shape[1]
    fuse_next = w_next is not None

    dst_score = scores[:, 0:1]                       # (N_pad, 1)  a_dst . H_i
    src_score_t = scores[:, 1].reshape(1, n_pad)     # (1, N_pad)  a_src . H_j

    kernel = functools.partial(_flash_agg_kernel, apply_relu=apply_relu,
                               fuse_next=fuse_next)

    in_specs = [
        pl.BlockSpec((tile_m, 1), lambda i, k: (i, 0)),        # dst scores (row tile)
        pl.BlockSpec((1, tile_n), lambda i, k: (0, k)),        # src scores (col tile)
        pl.BlockSpec((tile_m, tile_n), lambda i, k: (i, k)),   # int8 adjacency tile
        pl.BlockSpec((tile_n, fp), lambda i, k: (k, 0)),       # H column tile (bf16)
        pl.BlockSpec((1, fp), lambda i, k: (0, 0)),            # bias
    ]
    operands = [dst_score, src_score_t, adj, h, b_pad]

    if fuse_next:
        in_specs += [pl.BlockSpec((fp, fp), lambda i, k: (0, 0)),
                     pl.BlockSpec((fp, 2), lambda i, k: (0, 0))]
        operands += [w_next, a_next]
        out_shape = (jax.ShapeDtypeStruct((n_pad, fp), jnp.bfloat16),  # H of next layer
                     jax.ShapeDtypeStruct((n_pad, 2), jnp.float32),    # next-layer scores
                     jax.ShapeDtypeStruct((n_pad, 2), jnp.float32))    # softmax stats
    else:
        out_shape = (jax.ShapeDtypeStruct((n_pad, fp), jnp.float32),   # final features
                     jax.ShapeDtypeStruct((n_pad, 2), jnp.float32))    # softmax stats

    main_spec = pl.BlockSpec((tile_m, fp), lambda i, k: (i, 0))
    small_spec = pl.BlockSpec((tile_m, 2), lambda i, k: (i, 0))
    out_specs = (main_spec, small_spec, small_spec) if fuse_next \
        else (main_spec, small_spec)

    flops = 2 * n_pad * n_pad * fp + 10 * n_pad * n_pad
    if fuse_next:
        flops += 2 * n_pad * fp * fp + 4 * n_pad * fp

    return pl.pallas_call(
        kernel,
        out_shape=out_shape,
        grid=(n_pad // tile_m, n_pad // tile_n),
        in_specs=in_specs,
        out_specs=out_specs,
        scratch_shapes=[pltpu.VMEM((tile_m, 1), jnp.float32),   # running max
                        pltpu.VMEM((tile_m, 1), jnp.float32),   # running denom
                        pltpu.VMEM((tile_m, fp), jnp.float32)], # output accumulator
        compiler_params=pltpu.CompilerParams(
            dimension_semantics=("parallel", "arbitrary")),
        cost_estimate=pl.CostEstimate(
            flops=flops,
            transcendentals=2 * n_pad * n_pad,
            bytes_accessed=(n_pad * n_pad                         # int8 adjacency
                            + (n_pad // tile_m) * n_pad * fp * 2  # H re-read per row tile
                            + n_pad * fp * 4 + n_pad * 32)),
    )(*operands)


# ---------------------------------------------------------------------------
# Parameter init (matches PyG GATConv heads=1) + padding helpers
# ---------------------------------------------------------------------------
def _glorot(key, shape):
    fan_in, fan_out = shape[-2], shape[-1]
    limit = (6.0 / (fan_in + fan_out)) ** 0.5
    return jax.random.uniform(key, shape, jnp.float32, -limit, limit)


def init_gatconv_params(key, in_dim, out_dim):
    k1, k2, k3 = jax.random.split(key, 3)
    W = _glorot(k1, (in_dim, out_dim))
    a_src = _glorot(k2, (1, out_dim))
    a_dst = _glorot(k3, (1, out_dim))
    bias = jnp.zeros((1, out_dim), jnp.float32)
    return (W, a_src, a_dst, bias)


def init_gat_model_params(key, input_dim, hidden_channels, heads=1):
    k1, k2, k3 = jax.random.split(key, 3)
    h = hidden_channels * heads
    return {
        "gat1": init_gatconv_params(k1, input_dim, hidden_channels),
        "gat2": init_gatconv_params(k2, h, h),
        "gat3": init_gatconv_params(k3, h, h),
    }


def _pad_gatconv_params(p, fin_pad, fout_pad):
    W, a_src, a_dst, bias = p
    fin, fout = W.shape
    W_pad = jnp.zeros((fin_pad, fout_pad), jnp.bfloat16)
    W_pad = W_pad.at[:fin, :fout].set(W.astype(jnp.bfloat16))
    a_cat = jnp.zeros((fout_pad, 2), jnp.float32)
    a_cat = a_cat.at[:fout, 0].set(a_dst[0])      # col 0: destination-side vector
    a_cat = a_cat.at[:fout, 1].set(a_src[0])      # col 1: source-side vector
    b_pad = jnp.zeros((1, fout_pad), jnp.float32).at[0, :fout].set(bias[0])
    return W_pad, a_cat, b_pad


# ---------------------------------------------------------------------------
# Full model forward — mirrors GATModel.forward
# ---------------------------------------------------------------------------
def gat_model_forward(params, x, edge_index):
    """Returns (x, att_weight1, att_weight2, att_weight3) like the PyTorch module."""
    n, fin = x.shape
    fout = params["gat3"][0].shape[1]

    fp = _round_up(fout, 128)
    fin_pad = _round_up(fin, 128)
    n_pad = _round_up(n, 128)
    # Prefer tile_m=128 unless the row grid would still have >=2 steps at 256 (v7x 2-TC).
    tile_m = _pick_tile(n_pad, 256 if n_pad >= 512 else 128)
    tile_n = _pick_tile(n_pad, 512)

    src, dst = edge_index[0], edge_index[1]

    # add_self_loops=True (PyG default): append (i, i) for every real node.
    loop = jnp.arange(n, dtype=edge_index.dtype)
    src_sl = jnp.concatenate([src, loop])
    dst_sl = jnp.concatenate([dst, loop])
    edge_index_sl = jnp.stack([src_sl, dst_sl])

    # int8 0/1 adjacency (1 byte/edge-slot).  Full diagonal keeps padded (dummy) rows'
    # softmax finite; real nodes already have their self loops, semantics unchanged.
    # NOTE: duplicate edges / pre-existing self loops collapse (multigraphs differ vs PyG).
    adj = jnp.zeros((n_pad, n_pad), jnp.int8)
    adj = adj.at[dst_sl, src_sl].set(1)
    diag = jnp.arange(n_pad)
    adj = adj.at[diag, diag].set(1)

    x_pad = jnp.zeros((n_pad, fin_pad), jnp.bfloat16)
    x_pad = x_pad.at[:n, :fin].set(x.astype(jnp.bfloat16))

    w1, a1, b1 = _pad_gatconv_params(params["gat1"], fin_pad, fp)
    w2, a2, b2 = _pad_gatconv_params(params["gat2"], fp, fp)
    w3, a3, b3 = _pad_gatconv_params(params["gat3"], fp, fp)

    # 4 pallas_calls total (was 6): layer-(L+1) projection fused into layer-L aggregation.
    h1, s1 = gat_project(x_pad, w1, a1, tile_m=tile_m)
    h2, s2, st1 = gat_aggregate(s1, adj, h1, b1, w2, a2,
                                tile_m=tile_m, tile_n=tile_n, apply_relu=True)
    h3, s3, st2 = gat_aggregate(s2, adj, h2, b2, w3, a3,
                                tile_m=tile_m, tile_n=tile_n, apply_relu=True)
    out3, st3 = gat_aggregate(s3, adj, h3, b3,
                              tile_m=tile_m, tile_n=tile_n, apply_relu=False)

    out = out3[:n, :fout]

    # return_attention_weights=True: per-edge alpha reconstructed from O(N) stats
    # (same formula the kernel used); no dense (N,N) attention ever hits HBM.
    def edge_alpha(scores, stats):
        e = scores[dst_sl, 0] + scores[src_sl, 1]
        e = jnp.maximum(e, NEG_SLOPE * e)
        a = jnp.exp(e - stats[dst_sl, 0]) / stats[dst_sl, 1]
        return a[:, None]

    return (out,
            (edge_index_sl, edge_alpha(s1, st1)),
            (edge_index_sl, edge_alpha(s2, st2)),
            (edge_index_sl, edge_alpha(s3, st3)))


if __name__ == "__main__":
    key = jax.random.PRNGKey(0)
    k_param, k_x = jax.random.split(key)

    # Small synthetic graph: N nodes, bidirectional ring
    N = 16
    input_dim = 8
    hidden_channels = 16
    heads = 1

    nodes = jnp.arange(N, dtype=jnp.int32)
    src = jnp.concatenate([nodes, (nodes + 1) % N])
    dst = jnp.concatenate([(nodes + 1) % N, nodes])
    edge_index = jnp.stack([src, dst])            # (2, E) — row0 = source, row1 = target

    x = jax.random.normal(k_x, (N, input_dim), jnp.float32)
    params = init_gat_model_params(k_param, input_dim, hidden_channels, heads)

    fwd = jax.jit(gat_model_forward)
    out, aw1, aw2, aw3 = fwd(params, x, edge_index)
    jax.block_until_ready((out, aw1, aw2, aw3))

    assert out.shape == (N, hidden_channels * heads)
    assert aw1[1].shape == (edge_index.shape[1] + N, heads)
    assert aw2[1].shape == (edge_index.shape[1] + N, heads)
    assert aw3[1].shape == (edge_index.shape[1] + N, heads)
    assert bool(jnp.all(jnp.isfinite(out)))
    assert bool(jnp.all(jnp.isfinite(aw1[1]))) and bool(jnp.all(jnp.isfinite(aw3[1])))
    print("KERNEL_OK")
</pallas_src>

<mosaic_0001>
module attributes {stable_mosaic.version = 11 : i64} {
  func.func @_proj_kernel(%arg0: i32, %arg1: memref<128x128xbf16, #tpu.memory_space<vmem>>, %arg2: memref<128x128xbf16, #tpu.memory_space<vmem>>, %arg3: memref<128x2xf32, #tpu.memory_space<vmem>>, %arg4: memref<128x128xbf16, #tpu.memory_space<vmem>>, %arg5: memref<128x2xf32, #tpu.memory_space<vmem>>) attributes {dimension_semantics = [#tpu.dimension_semantics<parallel>], iteration_bounds = array<i64: 1>, scalar_prefetch = 0 : i64, scratch_operands = 0 : i64, tpu.core_type = #tpu.core_type<tc>, window_params = [{transform_indices = @transform_0, window_bounds = array<i64: 128, 128>}, {pipeline_mode = #tpu.pipeline_mode<synchronous>, transform_indices = @transform_1, window_bounds = array<i64: 128, 128>}, {pipeline_mode = #tpu.pipeline_mode<synchronous>, transform_indices = @transform_2, window_bounds = array<i64: 128, 2>}, {transform_indices = @transform_3, window_bounds = array<i64: 128, 128>}, {transform_indices = @transform_4, window_bounds = array<i64: 128, 2>}]} {
    %c0 = arith.constant 0 : index
    %c0_0 = arith.constant 0 : index
    %0 = vector.load %arg1[%c0, %c0_0] : memref<128x128xbf16, #tpu.memory_space<vmem>>, vector<128x128xbf16>
    %c0_1 = arith.constant 0 : index
    %c0_2 = arith.constant 0 : index
    %1 = vector.load %arg2[%c0_1, %c0_2] : memref<128x128xbf16, #tpu.memory_space<vmem>>, vector<128x128xbf16>
    %cst = arith.constant dense<0.000000e+00> : vector<128x128xf32>
    %2 = tpu.matmul %0, %1, %cst {dimension_numbers = #tpu.dot_dimension_numbers<[1], [0], [0], [1], [0, 0, 1, 1], [], []>} : vector<128x128xbf16>, vector<128x128xbf16>, vector<128x128xf32> -> vector<128x128xf32>
    %c0_3 = arith.constant 0 : index
    %c0_4 = arith.constant 0 : index
    %3 = vector.load %arg3[%c0_3, %c0_4] : memref<128x2xf32, #tpu.memory_space<vmem>>, vector<128x2xf32>
    %cst_5 = arith.constant dense<0.000000e+00> : vector<128x2xf32>
    %4 = tpu.matmul %2, %3, %cst_5 {dimension_numbers = #tpu.dot_dimension_numbers<[1], [0], [0], [1], [0, 0, 1, 1], [], []>} : vector<128x128xf32>, vector<128x2xf32>, vector<128x2xf32> -> vector<128x2xf32>
    %c0_6 = arith.constant 0 : index
    %c0_7 = arith.constant 0 : index
    %5 = vector.load %arg5[%c0_6, %c0_7] : memref<128x2xf32, #tpu.memory_space<vmem>>, vector<128x2xf32>
    tpu.vector_store %arg5[%c0_6, %c0_7], %4 {strides = array<i32>} : memref<128x2xf32, #tpu.memory_space<vmem>>, vector<128x2xf32>,
    %6 = arith.truncf %2 : vector<128x128xf32> to vector<128x128xbf16>
    %c0_8 = arith.constant 0 : index
    %c0_9 = arith.constant 0 : index
    %7 = vector.load %arg4[%c0_8, %c0_9] : memref<128x128xbf16, #tpu.memory_space<vmem>>, vector<128x128xbf16>
    tpu.vector_store %arg4[%c0_8, %c0_9], %6 {strides = array<i32>} : memref<128x128xbf16, #tpu.memory_space<vmem>>, vector<128x128xbf16>,
    return
  }
  func.func @transform_0(%arg0: i32) -> (i32, i32) {
    %c0_i32 = arith.constant 0 : i32
    %c0_i32_0 = arith.constant 0 : i32
    return %arg0, %c0_i32 : i32, i32
  }
  func.func @transform_1(%arg0: i32) -> (i32, i32) {
    %c0_i32 = arith.constant 0 : i32
    %c0_i32_0 = arith.constant 0 : i32
    %c0_i32_1 = arith.constant 0 : i32
    return %c0_i32, %c0_i32_0 : i32, i32
  }
  func.func @transform_2(%arg0: i32) -> (i32, i32) {
    %c0_i32 = arith.constant 0 : i32
    %c0_i32_0 = arith.constant 0 : i32
    %c0_i32_1 = arith.constant 0 : i32
    return %c0_i32, %c0_i32_0 : i32, i32
  }
  func.func @transform_3(%arg0: i32) -> (i32, i32) {
    %c0_i32 = arith.constant 0 : i32
    %c0_i32_0 = arith.constant 0 : i32
    return %arg0, %c0_i32 : i32, i32
  }
  func.func @transform_4(%arg0: i32) -> (i32, i32) {
    %c0_i32 = arith.constant 0 : i32
    %c0_i32_0 = arith.constant 0 : i32
    return %arg0, %c0_i32 : i32, i32
  }
}

module attributes {stable_mosaic.version = 11 : i64} {
  func.func @_flash_agg_kernel(%arg0: i32, %arg1: i32, %arg2: memref<128x1xf32, #tpu.memory_space<vmem>>, %arg3: memref<1x128xf32, #tpu.memory_space<vmem>>, %arg4: memref<128x128xi8, #tpu.memory_space<vmem>>, %arg5: memref<128x128xbf16, #tpu.memory_space<vmem>>, %arg6: memref<1x128xf32, #tpu.memory_space<vmem>>, %arg7: memref<128x128xbf16, #tpu.memory_space<vmem>>, %arg8: memref<128x2xf32, #tpu.memory_space<vmem>>, %arg9: memref<128x128xbf16, #tpu.memory_space<vmem>>, %arg10: memref<128x2xf32, #tpu.memory_space<vmem>>, %arg11: memref<128x2xf32, #tpu.memory_space<vmem>>, %arg12: memref<128x1xf32, #tpu.memory_space<vmem>>, %arg13: memref<128x1xf32, #tpu.memory_space<vmem>>, %arg14: memref<128x128xf32, #tpu.memory_space<vmem>>) attributes {dimension_semantics = [#tpu.dimension_semantics<parallel>, #tpu.dimension_semantics<arbitrary>], iteration_bounds = array<i64: 1, 1>, scalar_prefetch = 0 : i64, scratch_operands = 3 : i64, tpu.core_type = #tpu.core_type<tc>, window_params = [{transform_indices = @transform_0, window_bounds = array<i64: 128, 1>}, {transform_indices = @transform_1, window_bounds = array<i64: 1, 128>}, {transform_indices = @transform_2, window_bounds = array<i64: 128, 128>}, {transform_indices = @transform_3, window_bounds = array<i64: 128, 128>}, {pipeline_mode = #tpu.pipeline_mode<synchronous>, transform_indices = @transform_4, window_bounds = array<i64: 1, 128>}, {pipeline_mode = #tpu.pipeline_mode<synchronous>, transform_indices = @transform_5, window_bounds = array<i64: 128, 128>}, {pipeline_mode = #tpu.pipeline_mode<synchronous>, transform_indices = @transform_6, window_bounds = array<i64: 128, 2>}, {transform_indices = @transform_7, window_bounds = array<i64: 128, 128>}, {transform_indices = @transform_8, window_bounds = array<i64: 128, 2>}, {transform_indices = @transform_9, window_bounds = array<i64: 128, 2>}]} {
    %c0_i32 = arith.constant 0 : i32
    %0 = arith.cmpi eq, %arg1, %c0_i32 : i32
    %1 = arith.extui %0 : i1 to i32
    %c0_i32_0 = arith.constant 0 : i32
    %2 = arith.cmpi ne, %1, %c0_i32_0 : i32
    scf.if %2 {
      %cst_26 = arith.constant -1.000000e+30 : f32
      %43 = vector.broadcast %cst_26 : f32 to vector<128x1xf32>
      %c0_27 = arith.constant 0 : index
      %c0_28 = arith.constant 0 : index
      %44 = vector.load %arg12[%c0_27, %c0_28] : memref<128x1xf32, #tpu.memory_space<vmem>>, vector<128x1xf32>
      tpu.vector_store %arg12[%c0_27, %c0_28], %43 {strides = array<i32>} : memref<128x1xf32, #tpu.memory_space<vmem>>, vector<128x1xf32>,
      %cst_29 = arith.constant 0.000000e+00 : f32
      %45 = vector.broadcast %cst_29 : f32 to vector<128x1xf32>
      %c0_30 = arith.constant 0 : index
      %c0_31 = arith.constant 0 : index
      %46 = vector.load %arg13[%c0_30, %c0_31] : memref<128x1xf32, #tpu.memory_space<vmem>>, vector<128x1xf32>
      tpu.vector_store %arg13[%c0_30, %c0_31], %45 {strides = array<i32>} : memref<128x1xf32, #tpu.memory_space<vmem>>, vector<128x1xf32>,
      %cst_32 = arith.constant 0.000000e+00 : f32
      %47 = vector.broadcast %cst_32 : f32 to vector<128x128xf32>
      %c0_33 = arith.constant 0 : index
      %c0_34 = arith.constant 0 : index
      %48 = vector.load %arg14[%c0_33, %c0_34] : memref<128x128xf32, #tpu.memory_space<vmem>>, vector<128x128xf32>
      tpu.vector_store %arg14[%c0_33, %c0_34], %47 {strides = array<i32>} : memref<128x128xf32, #tpu.memory_space<vmem>>, vector<128x128xf32>,
    } else {
    }
    %c0 = arith.constant 0 : index
    %c0_1 = arith.constant 0 : index
    %3 = vector.load %arg2[%c0, %c0_1] : memref<128x1xf32, #tpu.memory_space<vmem>>, vector<128x1xf32>
    %c0_2 = arith.constant 0 : index
    %c0_3 = arith.constant 0 : index
    %4 = vector.load %arg3[%c0_2, %c0_3] : memref<1x128xf32, #tpu.memory_space<vmem>>, vector<1x128xf32>
    %5 = vector.broadcast %3 : vector<128x1xf32> to vector<128x128xf32>
    %6 = vector.broadcast %4 : vector<1x128xf32> to vector<128x128xf32>
    %7 = arith.addf %5, %6 : vector<128x128xf32>
    %cst = arith.constant 2.000000e-01 : f32
    %8 = vector.broadcast %cst : f32 to vector<128x128xf32>
    %9 = arith.mulf %8, %7 : vector<128x128xf32>
    %10 = arith.maximumf %7, %9 : vector<128x128xf32>
    %c0_4 = arith.constant 0 : index
    %c0_5 = arith.constant 0 : index
    %11 = vector.load %arg4[%c0_4, %c0_5] : memref<128x128xi8, #tpu.memory_space<vmem>>, vector<128x128xi8>
    %c0_i8 = arith.constant 0 : i8
    %12 = vector.broadcast %c0_i8 : i8 to vector<128x128xi8>
    %13 = arith.cmpi ne, %11, %12 : vector<128x128xi8>
    %cst_6 = arith.constant -1.000000e+30 : f32
    %14 = vector.broadcast %cst_6 : f32 to vector<128x128xf32>
    %15 = arith.select %13, %10, %14 : vector<128x128xi1>, vector<128x128xf32>
    %c0_7 = arith.constant 0 : index
    %c0_8 = arith.constant 0 : index
    %16 = vector.load %arg12[%c0_7, %c0_8] : memref<128x1xf32, #tpu.memory_space<vmem>>, vector<128x1xf32>
    %cst_9 = arith.constant dense<0xFF800000> : vector<128xf32>
    %17 = vector.multi_reduction <maximumf>, %15, %cst_9 [1] : vector<128x128xf32> to vector<128xf32>
    %18 = vector.shape_cast %17 : vector<128xf32> to vector<128x1xf32>
    %19 = arith.maximumf %16, %18 : vector<128x1xf32>
    %20 = arith.subf %16, %19 : vector<128x1xf32>
    %21 = math.exp %20 : vector<128x1xf32>
    %22 = vector.broadcast %19 : vector<128x1xf32> to vector<128x128xf32>
    %23 = arith.subf %15, %22 : vector<128x128xf32>
    %24 = math.exp %23 : vector<128x128xf32>
    %c0_10 = arith.constant 0 : index
    %c0_11 = arith.constant 0 : index
    %25 = vector.load %arg13[%c0_10, %c0_11] : memref<128x1xf32, #tpu.memory_space<vmem>>, vector<128x1xf32>
    %26 = arith.mulf %21, %25 : vector<128x1xf32>
    %cst_12 = arith.constant dense<0.000000e+00> : vector<128xf32>
    %27 = vector.multi_reduction <add>, %24, %cst_12 [1] : vector<128x128xf32> to vector<128xf32>
    %28 = vector.shape_cast %27 : vector<128xf32> to vector<128x1xf32>
    %29 = arith.addf %26, %28 : vector<128x1xf32>
    %c0_13 = arith.constant 0 : index
    %c0_14 = arith.constant 0 : index
    %30 = vector.load %arg13[%c0_13, %c0_14] : memref<128x1xf32, #tpu.memory_space<vmem>>, vector<128x1xf32>
    tpu.vector_store %arg13[%c0_13, %c0_14], %29 {strides = array<i32>} : memref<128x1xf32, #tpu.memory_space<vmem>>, vector<128x1xf32>,
    %c0_15 = arith.constant 0 : index
    %c0_16 = arith.constant 0 : index
    %31 = vector.load %arg14[%c0_15, %c0_16] : memref<128x128xf32, #tpu.memory_space<vmem>>, vector<128x128xf32>
    %32 = vector.broadcast %21 : vector<128x1xf32> to vector<128x128xf32>
    %33 = arith.mulf %32, %31 : vector<128x128xf32>
    %34 = arith.truncf %24 : vector<128x128xf32> to vector<128x128xbf16>
    %c0_17 = arith.constant 0 : index
    %c0_18 = arith.constant 0 : index
    %35 = vector.load %arg5[%c0_17, %c0_18] : memref<128x128xbf16, #tpu.memory_space<vmem>>, vector<128x128xbf16>
    %cst_19 = arith.constant dense<0.000000e+00> : vector<128x128xf32>
    %36 = tpu.matmul %34, %35, %cst_19 {dimension_numbers = #tpu.dot_dimension_numbers<[1], [0], [0], [1], [0, 0, 1, 1], [], []>} : vector<128x128xbf16>, vector<128x128xbf16>, vector<128x128xf32> -> vector<128x128xf32>
    %37 = arith.addf %33, %36 : vector<128x128xf32>
    %c0_20 = arith.constant 0 : index
    %c0_21 = arith.constant 0 : index
    %38 = vector.load %arg14[%c0_20, %c0_21] : memref<128x128xf32, #tpu.memory_space<vmem>>, vector<128x128xf32>
    tpu.vector_store %arg14[%c0_20, %c0_21], %37 {strides = array<i32>} : memref<128x128xf32, #tpu.memory_space<vmem>>, vector<128x128xf32>,
    %c0_22 = arith.constant 0 : index
    %c0_23 = arith.constant 0 : index
    %39 = vector.load %arg12[%c0_22, %c0_23] : memref<128x1xf32, #tpu.memory_space<vmem>>, vector<128x1xf32>
    tpu.vector_store %arg12[%c0_22, %c0_23], %19 {strides = array<i32>} : memref<128x1xf32, #tpu.memory_space<vmem>>, vector<128x1xf32>,
    %c0_i32_24 = arith.constant 0 : i32
    %40 = arith.cmpi eq, %arg1, %c0_i32_24 : i32
    %41 = arith.extui %40 : i1 to i32
    %c0_i32_25 = arith.constant 0 : i32
    %42 = arith.cmpi ne, %41, %c0_i32_25 : i32
    scf.if %42 {
      %c0_26 = arith.constant 0 : index
      %c0_27 = arith.constant 0 : index
      %43 = vector.load %arg13[%c0_26, %c0_27] : memref<128x1xf32, #tpu.memory_space<vmem>>, vector<128x1xf32>
      %44 = tpu.reciprocal %43 {approx = true} : vector<128x1xf32> -> vector<128x1xf32>
      %c0_28 = arith.constant 0 : index
      %c0_29 = arith.constant 0 : index
      %45 = vector.load %arg14[%c0_28, %c0_29] : memref<128x128xf32, #tpu.memory_space<vmem>>, vector<128x128xf32>
      %46 = vector.broadcast %44 : vector<128x1xf32> to vector<128x128xf32>
      %47 = arith.mulf %45, %46 : vector<128x128xf32>
      %c0_30 = arith.constant 0 : index
      %c0_31 = arith.constant 0 : index
      %48 = vector.load %arg6[%c0_30, %c0_31] : memref<1x128xf32, #tpu.memory_space<vmem>>, vector<1x128xf32>
      %49 = vector.broadcast %48 : vector<1x128xf32> to vector<128x128xf32>
      %50 = arith.addf %47, %49 : vector<128x128xf32>
      %cst_32 = arith.constant 0.000000e+00 : f32
      %51 = vector.broadcast %cst_32 : f32 to vector<128x128xf32>
      %52 = arith.maximumf %50, %51 : vector<128x128xf32>
      %c0_33 = arith.constant 0 : index
      %c0_34 = arith.constant 0 : index
      %53 = vector.load %arg12[%c0_33, %c0_34] : memref<128x1xf32, #tpu.memory_space<vmem>>, vector<128x1xf32>
      %c0_35 = arith.constant 0 : index
      %c0_36 = arith.constant 0 : index
      %54 = vector.load %arg11[%c0_35, %c0_36] : memref<128x2xf32, #tpu.memory_space<vmem>>, vector<128x1xf32>
      tpu.vector_store %arg11[%c0_35, %c0_36], %53 {strides = array<i32>} : memref<128x2xf32, #tpu.memory_space<vmem>>, vector<128x1xf32>,
      %c0_37 = arith.constant 0 : index
      %c0_38 = arith.constant 0 : index
      %55 = vector.load %arg13[%c0_37, %c0_38] : memref<128x1xf32, #tpu.memory_space<vmem>>, vector<128x1xf32>
      %c0_39 = arith.constant 0 : index
      %c1 = arith.constant 1 : index
      %56 = vector.load %arg11[%c0_39, %c1] : memref<128x2xf32, #tpu.memory_space<vmem>>, vector<128x1xf32>
      tpu.vector_store %arg11[%c0_39, %c1], %55 {strides = array<i32>} : memref<128x2xf32, #tpu.memory_space<vmem>>, vector<128x1xf32>,
      %57 = arith.truncf %52 : vector<128x128xf32> to vector<128x128xbf16>
      %c0_40 = arith.constant 0 : index
      %c0_41 = arith.constant 0 : index
      %58 = vector.load %arg7[%c0_40, %c0_41] : memref<128x128xbf16, #tpu.memory_space<vmem>>, vector<128x128xbf16>
      %cst_42 = arith.constant dense<0.000000e+00> : vector<128x128xf32>
      %59 = tpu.matmul %57, %58, %cst_42 {dimension_numbers = #tpu.dot_dimension_numbers<[1], [0], [0], [1], [0, 0, 1, 1], [], []>} : vector<128x128xbf16>, vector<128x128xbf16>, vector<128x128xf32> -> vector<128x128xf32>
      %c0_43 = arith.constant 0 : index
      %c0_44 = arith.constant 0 : index
      %60 = vector.load %arg8[%c0_43, %c0_44] : memref<128x2xf32, #tpu.memory_space<vmem>>, vector<128x2xf32>
      %cst_45 = arith.constant dense<0.000000e+00> : vector<128x2xf32>
      %61 = tpu.matmul %59, %60, %cst_45 {dimension_numbers = #tpu.dot_dimension_numbers<[1], [0], [0], [1], [0, 0, 1, 1], [], []>} : vector<128x128xf32>, vector<128x2xf32>, vector<128x2xf32> -> vector<128x2xf32>
      %c0_46 = arith.constant 0 : index
      %c0_47 = arith.constant 0 : index
      %62 = vector.load %arg10[%c0_46, %c0_47] : memref<128x2xf32, #tpu.memory_space<vmem>>, vector<128x2xf32>
      tpu.vector_store %arg10[%c0_46, %c0_47], %61 {strides = array<i32>} : memref<128x2xf32, #tpu.memory_space<vmem>>, vector<128x2xf32>,
      %63 = arith.truncf %59 : vector<128x128xf32> to vector<128x128xbf16>
      %c0_48 = arith.constant 0 : index
      %c0_49 = arith.constant 0 : index
      %64 = vector.load %arg9[%c0_48, %c0_49] : memref<128x128xbf16, #tpu.memory_space<vmem>>, vector<128x128xbf16>
      tpu.vector_store %arg9[%c0_48, %c0_49], %63 {strides = array<i32>} : memref<128x128xbf16, #tpu.memory_space<vmem>>, vector<128x128xbf16>,
    } else {
    }
    return
  }
  func.func @transform_0(%arg0: i32, %arg1: i32) -> (i32, i32) {
    %c0_i32 = arith.constant 0 : i32
    %c0_i32_0 = arith.constant 0 : i32
    return %arg0, %c0_i32 : i32, i32
  }
  func.func @transform_1(%arg0: i32, %arg1: i32) -> (i32, i32) {
    %c0_i32 = arith.constant 0 : i32
    %c0_i32_0 = arith.constant 0 : i32
    return %c0_i32, %arg1 : i32, i32
  }
  func.func @transform_2(%arg0: i32, %arg1: i32) -> (i32, i32) {
    %c0_i32 = arith.constant 0 : i32
    return %arg0, %arg1 : i32, i32
  }
  func.func @transform_3(%arg0: i32, %arg1: i32) -> (i32, i32) {
    %c0_i32 = arith.constant 0 : i32
    %c0_i32_0 = arith.constant 0 : i32
    return %arg1, %c0_i32 : i32, i32
  }
  func.func @transform_4(%arg0: i32, %arg1: i32) -> (i32, i32) {
    %c0_i32 = arith.constant 0 : i32
    %c0_i32_0 = arith.constant 0 : i32
    %c0_i32_1 = arith.constant 0 : i32
    return %c0_i32, %c0_i32_0 : i32, i32
  }
  func.func @transform_5(%arg0: i32, %arg1: i32) -> (i32, i32) {
    %c0_i32 = arith.constant 0 : i32
    %c0_i32_0 = arith.constant 0 : i32
    %c0_i32_1 = arith.constant 0 : i32
    return %c0_i32, %c0_i32_0 : i32, i32
  }
  func.func @transform_6(%arg0: i32, %arg1: i32) -> (i32, i32) {
    %c0_i32 = arith.constant 0 : i32
    %c0_i32_0 = arith.constant 0 : i32
    %c0_i32_1 = arith.constant 0 : i32
    return %c0_i32, %c0_i32_0 : i32, i32
  }
  func.func @transform_7(%arg0: i32, %arg1: i32) -> (i32, i32) {
    %c0_i32 = arith.constant 0 : i32
    %c0_i32_0 = arith.constant 0 : i32
    return %arg0, %c0_i32 : i32, i32
  }
  func.func @transform_8(%arg0: i32, %arg1: i32) -> (i32, i32) {
    %c0_i32 = arith.constant 0 : i32
    %c0_i32_0 = arith.constant 0 : i32
    return %arg0, %c0_i32 : i32, i32
  }
  func.func @transform_9(%arg0: i32, %arg1: i32) -> (i32, i32) {
    %c0_i32 = arith.constant 0 : i32
    %c0_i32_0 = arith.constant 0 : i32
    return %arg0, %c0_i32 : i32, i32
  }
}

module attributes {stable_mosaic.version = 11 : i64} {
  func.func @_flash_agg_kernel(%arg0: i32, %arg1: i32, %arg2: memref<128x1xf32, #tpu.memory_space<vmem>>, %arg3: memref<1x128xf32, #tpu.memory_space<vmem>>, %arg4: memref<128x128xi8, #tpu.memory_space<vmem>>, %arg5: memref<128x128xbf16, #tpu.memory_space<vmem>>, %arg6: memref<1x128xf32, #tpu.memory_space<vmem>>, %arg7: memref<128x128xf32, #tpu.memory_space<vmem>>, %arg8: memref<128x2xf32, #tpu.memory_space<vmem>>, %arg9: memref<128x1xf32, #tpu.memory_space<vmem>>, %arg10: memref<128x1xf32, #tpu.memory_space<vmem>>, %arg11: memref<128x128xf32, #tpu.memory_space<vmem>>) attributes {dimension_semantics = [#tpu.dimension_semantics<parallel>, #tpu.dimension_semantics<arbitrary>], iteration_bounds = array<i64: 1, 1>, scalar_prefetch = 0 : i64, scratch_operands = 3 : i64, tpu.core_type = #tpu.core_type<tc>, window_params = [{transform_indices = @transform_0, window_bounds = array<i64: 128, 1>}, {transform_indices = @transform_1, window_bounds = array<i64: 1, 128>}, {transform_indices = @transform_2, window_bounds = array<i64: 128, 128>}, {transform_indices = @transform_3, window_bounds = array<i64: 128, 128>}, {pipeline_mode = #tpu.pipeline_mode<synchronous>, transform_indices = @transform_4, window_bounds = array<i64: 1, 128>}, {transform_indices = @transform_5, window_bounds = array<i64: 128, 128>}, {transform_indices = @transform_6, window_bounds = array<i64: 128, 2>}]} {
    %c0_i32 = arith.constant 0 : i32
    %0 = arith.cmpi eq, %arg1, %c0_i32 : i32
    %1 = arith.extui %0 : i1 to i32
    %c0_i32_0 = arith.constant 0 : i32
    %2 = arith.cmpi ne, %1, %c0_i32_0 : i32
    scf.if %2 {
      %cst_26 = arith.constant -1.000000e+30 : f32
      %43 = vector.broadcast %cst_26 : f32 to vector<128x1xf32>
      %c0_27 = arith.constant 0 : index
      %c0_28 = arith.constant 0 : index
      %44 = vector.load %arg9[%c0_27, %c0_28] : memref<128x1xf32, #tpu.memory_space<vmem>>, vector<128x1xf32>
      tpu.vector_store %arg9[%c0_27, %c0_28], %43 {strides = array<i32>} : memref<128x1xf32, #tpu.memory_space<vmem>>, vector<128x1xf32>,
      %cst_29 = arith.constant 0.000000e+00 : f32
      %45 = vector.broadcast %cst_29 : f32 to vector<128x1xf32>
      %c0_30 = arith.constant 0 : index
      %c0_31 = arith.constant 0 : index
      %46 = vector.load %arg10[%c0_30, %c0_31] : memref<128x1xf32, #tpu.memory_space<vmem>>, vector<128x1xf32>
      tpu.vector_store %arg10[%c0_30, %c0_31], %45 {strides = array<i32>} : memref<128x1xf32, #tpu.memory_space<vmem>>, vector<128x1xf32>,
      %cst_32 = arith.constant 0.000000e+00 : f32
      %47 = vector.broadcast %cst_32 : f32 to vector<128x128xf32>
      %c0_33 = arith.constant 0 : index
      %c0_34 = arith.constant 0 : index
      %48 = vector.load %arg11[%c0_33, %c0_34] : memref<128x128xf32, #tpu.memory_space<vmem>>, vector<128x128xf32>
      tpu.vector_store %arg11[%c0_33, %c0_34], %47 {strides = array<i32>} : memref<128x128xf32, #tpu.memory_space<vmem>>, vector<128x128xf32>,
    } else {
    }
    %c0 = arith.constant 0 : index
    %c0_1 = arith.constant 0 : index
    %3 = vector.load %arg2[%c0, %c0_1] : memref<128x1xf32, #tpu.memory_space<vmem>>, vector<128x1xf32>
    %c0_2 = arith.constant 0 : index
    %c0_3 = arith.constant 0 : index
    %4 = vector.load %arg3[%c0_2, %c0_3] : memref<1x128xf32, #tpu.memory_space<vmem>>, vector<1x128xf32>
    %5 = vector.broadcast %3 : vector<128x1xf32> to vector<128x128xf32>
    %6 = vector.broadcast %4 : vector<1x128xf32> to vector<128x128xf32>
    %7 = arith.addf %5, %6 : vector<128x128xf32>
    %cst = arith.constant 2.000000e-01 : f32
    %8 = vector.broadcast %cst : f32 to vector<128x128xf32>
    %9 = arith.mulf %8, %7 : vector<128x128xf32>
    %10 = arith.maximumf %7, %9 : vector<128x128xf32>
    %c0_4 = arith.constant 0 : index
    %c0_5 = arith.constant 0 : index
    %11 = vector.load %arg4[%c0_4, %c0_5] : memref<128x128xi8, #tpu.memory_space<vmem>>, vector<128x128xi8>
    %c0_i8 = arith.constant 0 : i8
    %12 = vector.broadcast %c0_i8 : i8 to vector<128x128xi8>
    %13 = arith.cmpi ne, %11, %12 : vector<128x128xi8>
    %cst_6 = arith.constant -1.000000e+30 : f32
    %14 = vector.broadcast %cst_6 : f32 to vector<128x128xf32>
    %15 = arith.select %13, %10, %14 : vector<128x128xi1>, vector<128x128xf32>
    %c0_7 = arith.constant 0 : index
    %c0_8 = arith.constant 0 : index
    %16 = vector.load %arg9[%c0_7, %c0_8] : memref<128x1xf32, #tpu.memory_space<vmem>>, vector<128x1xf32>
    %cst_9 = arith.constant dense<0xFF800000> : vector<128xf32>
    %17 = vector.multi_reduction <maximumf>, %15, %cst_9 [1] : vector<128x128xf32> to vector<128xf32>
    %18 = vector.shape_cast %17 : vector<128xf32> to vector<128x1xf32>
    %19 = arith.maximumf %16, %18 : vector<128x1xf32>
    %20 = arith.subf %16, %19 : vector<128x1xf32>
    %21 = math.exp %20 : vector<128x1xf32>
    %22 = vector.broadcast %19 : vector<128x1xf32> to vector<128x128xf32>
    %23 = arith.subf %15, %22 : vector<128x128xf32>
    %24 = math.exp %23 : vector<128x128xf32>
    %c0_10 = arith.constant 0 : index
    %c0_11 = arith.constant 0 : index
    %25 = vector.load %arg10[%c0_10, %c0_11] : memref<128x1xf32, #tpu.memory_space<vmem>>, vector<128x1xf32>
    %26 = arith.mulf %21, %25 : vector<128x1xf32>
    %cst_12 = arith.constant dense<0.000000e+00> : vector<128xf32>
    %27 = vector.multi_reduction <add>, %24, %cst_12 [1] : vector<128x128xf32> to vector<128xf32>
    %28 = vector.shape_cast %27 : vector<128xf32> to vector<128x1xf32>
    %29 = arith.addf %26, %28 : vector<128x1xf32>
    %c0_13 = arith.constant 0 : index
    %c0_14 = arith.constant 0 : index
    %30 = vector.load %arg10[%c0_13, %c0_14] : memref<128x1xf32, #tpu.memory_space<vmem>>, vector<128x1xf32>
    tpu.vector_store %arg10[%c0_13, %c0_14], %29 {strides = array<i32>} : memref<128x1xf32, #tpu.memory_space<vmem>>, vector<128x1xf32>,
    %c0_15 = arith.constant 0 : index
    %c0_16 = arith.constant 0 : index
    %31 = vector.load %arg11[%c0_15, %c0_16] : memref<128x128xf32, #tpu.memory_space<vmem>>, vector<128x128xf32>
    %32 = vector.broadcast %21 : vector<128x1xf32> to vector<128x128xf32>
    %33 = arith.mulf %32, %31 : vector<128x128xf32>
    %34 = arith.truncf %24 : vector<128x128xf32> to vector<128x128xbf16>
    %c0_17 = arith.constant 0 : index
    %c0_18 = arith.constant 0 : index
    %35 = vector.load %arg5[%c0_17, %c0_18] : memref<128x128xbf16, #tpu.memory_space<vmem>>, vector<128x128xbf16>
    %cst_19 = arith.constant dense<0.000000e+00> : vector<128x128xf32>
    %36 = tpu.matmul %34, %35, %cst_19 {dimension_numbers = #tpu.dot_dimension_numbers<[1], [0], [0], [1], [0, 0, 1, 1], [], []>} : vector<128x128xbf16>, vector<128x128xbf16>, vector<128x128xf32> -> vector<128x128xf32>
    %37 = arith.addf %33, %36 : vector<128x128xf32>
    %c0_20 = arith.constant 0 : index
    %c0_21 = arith.constant 0 : index
    %38 = vector.load %arg11[%c0_20, %c0_21] : memref<128x128xf32, #tpu.memory_space<vmem>>, vector<128x128xf32>
    tpu.vector_store %arg11[%c0_20, %c0_21], %37 {strides = array<i32>} : memref<128x128xf32, #tpu.memory_space<vmem>>, vector<128x128xf32>,
    %c0_22 = arith.constant 0 : index
    %c0_23 = arith.constant 0 : index
    %39 = vector.load %arg9[%c0_22, %c0_23] : memref<128x1xf32, #tpu.memory_space<vmem>>, vector<128x1xf32>
    tpu.vector_store %arg9[%c0_22, %c0_23], %19 {strides = array<i32>} : memref<128x1xf32, #tpu.memory_space<vmem>>, vector<128x1xf32>,
    %c0_i32_24 = arith.constant 0 : i32
    %40 = arith.cmpi eq, %arg1, %c0_i32_24 : i32
    %41 = arith.extui %40 : i1 to i32
    %c0_i32_25 = arith.constant 0 : i32
    %42 = arith.cmpi ne, %41, %c0_i32_25 : i32
    scf.if %42 {
      %c0_26 = arith.constant 0 : index
      %c0_27 = arith.constant 0 : index
      %43 = vector.load %arg10[%c0_26, %c0_27] : memref<128x1xf32, #tpu.memory_space<vmem>>, vector<128x1xf32>
      %44 = tpu.reciprocal %43 {approx = true} : vector<128x1xf32> -> vector<128x1xf32>
      %c0_28 = arith.constant 0 : index
      %c0_29 = arith.constant 0 : index
      %45 = vector.load %arg11[%c0_28, %c0_29] : memref<128x128xf32, #tpu.memory_space<vmem>>, vector<128x128xf32>
      %46 = vector.broadcast %44 : vector<128x1xf32> to vector<128x128xf32>
      %47 = arith.mulf %45, %46 : vector<128x128xf32>
      %c0_30 = arith.constant 0 : index
      %c0_31 = arith.constant 0 : index
      %48 = vector.load %arg6[%c0_30, %c0_31] : memref<1x128xf32, #tpu.memory_space<vmem>>, vector<1x128xf32>
      %49 = vector.broadcast %48 : vector<1x128xf32> to vector<128x128xf32>
      %50 = arith.addf %47, %49 : vector<128x128xf32>
      %c0_32 = arith.constant 0 : index
      %c0_33 = arith.constant 0 : index
      %51 = vector.load %arg9[%c0_32, %c0_33] : memref<128x1xf32, #tpu.memory_space<vmem>>, vector<128x1xf32>
      %c0_34 = arith.constant 0 : index
      %c0_35 = arith.constant 0 : index
      %52 = vector.load %arg8[%c0_34, %c0_35] : memref<128x2xf32, #tpu.memory_space<vmem>>, vector<128x1xf32>
      tpu.vector_store %arg8[%c0_34, %c0_35], %51 {strides = array<i32>} : memref<128x2xf32, #tpu.memory_space<vmem>>, vector<128x1xf32>,
      %c0_36 = arith.constant 0 : index
      %c0_37 = arith.constant 0 : index
      %53 = vector.load %arg10[%c0_36, %c0_37] : memref<128x1xf32, #tpu.memory_space<vmem>>, vector<128x1xf32>
      %c0_38 = arith.constant 0 : index
      %c1 = arith.constant 1 : index
      %54 = vector.load %arg8[%c0_38, %c1] : memref<128x2xf32, #tpu.memory_space<vmem>>, vector<128x1xf32>
      tpu.vector_store %arg8[%c0_38, %c1], %53 {strides = array<i32>} : memref<128x2xf32, #tpu.memory_space<vmem>>, vector<128x1xf32>,
      %c0_39 = arith.constant 0 : index
      %c0_40 = arith.constant 0 : index
      %55 = vector.load %arg7[%c0_39, %c0_40] : memref<128x128xf32, #tpu.memory_space<vmem>>, vector<128x128xf32>
      tpu.vector_store %arg7[%c0_39, %c0_40], %50 {strides = array<i32>} : memref<128x128xf32, #tpu.memory_space<vmem>>, vector<128x128xf32>,
    } else {
    }
    return
  }
  func.func @transform_0(%arg0: i32, %arg1: i32) -> (i32, i32) {
    %c0_i32 = arith.constant 0 : i32
    %c0_i32_0 = arith.constant 0 : i32
    return %arg0, %c0_i32 : i32, i32
  }
  func.func @transform_1(%arg0: i32, %arg1: i32) -> (i32, i32) {
    %c0_i32 = arith.constant 0 : i32
    %c0_i32_0 = arith.constant 0 : i32
    return %c0_i32, %arg1 : i32, i32
  }
  func.func @transform_2(%arg0: i32, %arg1: i32) -> (i32, i32) {
    %c0_i32 = arith.constant 0 : i32
    return %arg0, %arg1 : i32, i32
  }
  func.func @transform_3(%arg0: i32, %arg1: i32) -> (i32, i32) {
    %c0_i32 = arith.constant 0 : i32
    %c0_i32_0 = arith.constant 0 : i32
    return %arg1, %c0_i32 : i32, i32
  }
  func.func @transform_4(%arg0: i32, %arg1: i32) -> (i32, i32) {
    %c0_i32 = arith.constant 0 : i32
    %c0_i32_0 = arith.constant 0 : i32
    %c0_i32_1 = arith.constant 0 : i32
    return %c0_i32, %c0_i32_0 : i32, i32
  }
  func.func @transform_5(%arg0: i32, %arg1: i32) -> (i32, i32) {
    %c0_i32 = arith.constant 0 : i32
    %c0_i32_0 = arith.constant 0 : i32
    return %arg0, %c0_i32 : i32, i32
  }
  func.func @transform_6(%arg0: i32, %arg1: i32) -> (i32, i32) {
    %c0_i32 = arith.constant 0 : i32
    %c0_i32_0 = arith.constant 0 : i32
    return %arg0, %c0_i32 : i32, i32
  }
}

</mosaic_0001>

<bundles_post_ra>
// kernel: gat_model_forward.4
= control target key start
LH: loop header
LB: loop body
LE: loop exit
PB: predicated region body
PF: predicated region fallthrough
CT: control target
= control target key end

     0   :  { %vm403_vm0 = vcmask 15360   ;;  %s996_s1 = inlined_call_operand.vmem [shape: bf16[128,128], index: 1, kind: input, shape index: {}]   ;;  %s997_s0 = inlined_call_operand.vmem [shape: bf16[128,128], index: 0, kind: input, shape index: {}]   ;;  %s998_s2 = inlined_call_operand.vmem [shape: f32[128,2], index: 2, kind: input, shape index: {}]   ;;  %s999_s3 = inlined_call_operand.vmem [shape: bf16[128,128], index: 3, kind: output, shape index: {0}]   ;;  %s1000_s4 = inlined_call_operand.vmem [shape: f32[128,2], index: 4, kind: output, shape index: {1}]  }
   0x1   :  { %v771_v0 = vld [vmem:[%s996_s1] sm:$0xff]   ;;  %v772_v1 = vld [vmem:[%s996_s1 + $0x8] sm:$0xff]   ;;  %v773_v2 = vld [vmem:[%s996_s1 + $0x10] sm:$0xff]  }
   0x2   :  { %651 = vmatprep.subr.bf16.mxu0 %v771_v0  ;;  %v774_v3 = vld [vmem:[%s996_s1 + $0x18] sm:$0xff]   ;;  %v779_v4 = vld [vmem:[%s997_s0] sm:$0xff]   ;;  %v776_v6 = vld [vmem:[%s996_s1 + $0x28] sm:$0xff]  }
   0x3   :  { %652 = vmatpush3.bf16.msra.mxu0 %v771_v0  ;;  %667 = vmatprep.mubr.bf16.mxu0 %v779_v4  ;;  %v775_v5 = vld [vmem:[%s996_s1 + $0x20] sm:$0xff]   ;;  %v243_v8 = vld [vmem:[%s998_s2 + $0x8] sm:$0xff]  ;;  %v244_v9 = vld [vmem:[%s998_s2 + $0x10] sm:$0xff] }
   0x4   :  { %653 = vmatprep.subr.bf16.mxu0 %v772_v1  ;;  %v242_v7 = vld [vmem:[%s998_s2] sm:$0xff]  ;;  %v245_v11 = vld [vmem:[%s998_s2 + $0x18] sm:$0xff]  ;;  %v247_v14 = vld [vmem:[%s998_s2 + $0x28] sm:$0xff] }
   0x5   :  { %v739_v10 = vpack.c.bf16 %v243_v8, %v242_v7  ;;  %v743_v12 = vpack.c.bf16 %v245_v11, %v244_v9  ;;  %v246_v13 = vld [vmem:[%s998_s2 + $0x20] sm:$0xff]  ;;  %v777_v15 = vld [vmem:[%s996_s1 + $0x30] sm:$0xff]   ;;  %v249_v18 = vld [vmem:[%s998_s2 + $0x38] sm:$0xff] }
   0x6   :  { %v747_v16 = vpack.c.bf16 %v247_v14, %v246_v13  ;;  %v248_v17 = vld [vmem:[%s998_s2 + $0x30] sm:$0xff]  ;;  %v778_v19 = vld [vmem:[%s996_s1 + $0x38] sm:$0xff]   ;;  %v250_v21 = vld [vmem:[%s998_s2 + $0x40] sm:$0xff] }
   0x7   :  { %654 = vmatpush3.bf16.msra.mxu0 %v772_v1  ;;  %740 = vmatprep.subr.bf16.mxu1 %v739_v10  ;;  %v751_v20 = vpack.c.bf16 %v249_v18, %v248_v17  ;;  %v251_v22 = vld [vmem:[%s998_s2 + $0x48] sm:$0xff]  ;;  %v252_v25 = vld [vmem:[%s998_s2 + $0x50] sm:$0xff]  ;;  %v253_v26 = vld [vmem:[%s998_s2 + $0x58] sm:$0xff] }
   0x8   :  { %655 = vmatprep.subr.bf16.mxu0 %v773_v2  ;;  %742 = vmatpush3.bf16.msra.mxu1 %v739_v10  ;;  %v755_v23 = vpack.c.bf16 %v251_v22, %v250_v21  ;;  %v780_v24 = vld [vmem:[%s997_s0 + $0x8] sm:$0xff]   ;;  %v781_v27 = vld [vmem:[%s997_s0 + $0x10] sm:$0xff]   ;;  %v759_v28 = vpack.c.bf16 %v253_v26, %v252_v25  ;;  %v254_v29 = vld [vmem:[%s998_s2 + $0x60] sm:$0xff] }
   0x9   :  { %744 = vmatprep.subr.bf16.mxu1 %v743_v12  ;;  %v255_v30 = vld [vmem:[%s998_s2 + $0x68] sm:$0xff]  ;;  %v782_v32 = vld [vmem:[%s997_s0 + $0x18] sm:$0xff]   ;;  %v783_v33 = vld [vmem:[%s997_s0 + $0x20] sm:$0xff]  }
   0xa   :  { %v763_v31 = vpack.c.bf16 %v255_v30, %v254_v29  ;;  %v784_v34 = vld [vmem:[%s997_s0 + $0x28] sm:$0xff]   ;;  %v785_v35 = vld [vmem:[%s997_s0 + $0x30] sm:$0xff]   ;;  %v786_v36 = vld [vmem:[%s997_s0 + $0x38] sm:$0xff]  }
   0xb   :  { %656 = vmatpush3.bf16.msra.mxu0 %v773_v2  ;;  %v256_v37 = vld [vmem:[%s998_s2 + $0x70] sm:$0xff]  ;;  %v257_v38 = vld [vmem:[%s998_s2 + $0x78] sm:$0xff] }
   0xc   :  { %657 = vmatprep.subr.bf16.mxu0 %v774_v3  ;;  %746 = vmatpush3.bf16.msra.mxu1 %v743_v12  ;;  %v767_v39 = vpack.c.bf16 %v257_v38, %v256_v37 }
   0xd   :  { %748 = vmatprep.subr.bf16.mxu1 %v747_v16 }
   0xf   :  { %658 = vmatpush3.bf16.msra.mxu0 %v774_v3 }
  0x10   :  { %659 = vmatprep.subr.bf16.mxu0 %v775_v5  ;;  %750 = vmatpush3.bf16.msra.mxu1 %v747_v16 }
  0x11   :  { %752 = vmatprep.subr.bf16.mxu1 %v751_v20 }
  0x13   :  { %660 = vmatpush3.bf16.msra.mxu0 %v775_v5 }
  0x14   :  { %661 = vmatprep.subr.bf16.mxu0 %v776_v6  ;;  %754 = vmatpush3.bf16.msra.mxu1 %v751_v20 }
  0x15   :  { %756 = vmatprep.subr.bf16.mxu1 %v755_v23 }
  0x17   :  { %662 = vmatpush3.bf16.msra.mxu0 %v776_v6 }
  0x18   :  { %663 = vmatprep.subr.bf16.mxu0 %v777_v15  ;;  %758 = vmatpush3.bf16.msra.mxu1 %v755_v23 }
  0x19   :  { %760 = vmatprep.subr.bf16.mxu1 %v759_v28 }
  0x1b   :  { %664 = vmatpush3.bf16.msra.mxu0 %v777_v15 }
  0x1c   :  { %665 = vmatprep.subr.bf16.mxu0 %v778_v19  ;;  %762 = vmatpush3.bf16.msra.mxu1 %v759_v28 }
  0x1d   :  { %764 = vmatprep.subr.bf16.mxu1 %v763_v31 }
  0x1f   :  { %666 = vmatpush3.bf16.msra.mxu0 %v778_v19 }
  0x20   :  { %766 = vmatpush3.bf16.msra.mxu1 %v763_v31 }
  0x21   :  { %768 = vmatprep.subr.bf16.mxu1 %v767_v39 }
  0x22   :  { %668 = vmatmul.mubr.bf16.vlgmr.msra.gmra.mrb[0].mxu0 %v780_v24 }
  0x23   :  { %671 = vmatprep.mubr.bf16.mxu0 %v781_v27 }
  0x24   :  { %770 = vmatpush3.bf16.msra.mxu1 %v767_v39 }
  0x2a   :  { %672 = vmatmul.mubr.bf16.gmra.mrb[4].mxu0 %v782_v32 }
  0x2b   :  { %675 = vmatprep.mubr.bf16.mxu0 %v783_v33 }
  0x32   :  { %676 = vmatmul.mubr.bf16.gmra.mrb[8].mxu0 %v784_v34 }
  0x33   :  { %679 = vmatprep.mubr.bf16.mxu0 %v785_v35 }
  0x3a   :  { %680 = vmatmul.mubr.bf16.gmra.mrb[12].mxu0 %v786_v36 }
  0xf5   :  { %v669_v40 = vpop.f32.mrb[0].mxu0 }
  0xf6   :  { %v179_v41 = vpop.f32.mrb[1].mxu0 }
  0xf7   :  { %v670_v42 = vpop.f32.mrb[2].mxu0  ;;  %715 = vmatprep.mubr.f32.mxu1 %v179_v41 }
  0xf8   :  { %v564_v43 = vpack.c.bf16 %v670_v42, %v669_v40  ;;  %v182_v44 = vpop.f32.mrb[3].mxu0 }
  0xf9   :  { %v559_v45 = vpack.c.bf16 %v182_v44, %v179_v41  ;;  %716 = vmatmul.mubr.f32.vlgmr.msra.gmra.mrb[0].mxu1 %v182_v44 }
  0xfa   :  { %596 = vst [vmem:[%s999_s3 + $0x8] sm:$0xff] %v564_v43   ;;  %718 = vmatprep.mubr.f32.mxu1 %v669_v40 }
  0xfb   :  { %560 = vst [vmem:[%s999_s3] sm:$0xff] %v559_v45  }
  0xfd   :  { %v673_v46 = vpop.f32.mrb[4].mxu0  ;;  %719 = vmatmul.mubr.f32.gmra.mrb[2].mxu1 %v670_v42 }
  0xfe   :  { %v195_v47 = vpop.f32.mrb[5].mxu0 }
  0xff   :  { %v674_v48 = vpop.f32.mrb[6].mxu0  ;;  %721 = vmatprep.mubr.f32.mxu1 %v195_v47 }
 0x100   :  { %v574_v49 = vpack.c.bf16 %v674_v48, %v673_v46  ;;  %v198_v50 = vpop.f32.mrb[7].mxu0 }
 0x101   :  { %v569_v51 = vpack.c.bf16 %v198_v50, %v195_v47  ;;  %722 = vmatmul.mubr.f32.gmra.mrb[4].mxu1 %v198_v50 }
 0x102   :  { %598 = vst [vmem:[%s999_s3 + $0x18] sm:$0xff] %v574_v49   ;;  %724 = vmatprep.mubr.f32.mxu1 %v673_v46 }
 0x103   :  { %597 = vst [vmem:[%s999_s3 + $0x10] sm:$0xff] %v569_v51  }
 0x105   :  { %v677_v52 = vpop.f32.mrb[8].mxu0  ;;  %725 = vmatmul.mubr.f32.gmra.mrb[6].mxu1 %v674_v48 }
 0x106   :  { %v211_v53 = vpop.f32.mrb[9].mxu0 }
 0x107   :  { %v678_v54 = vpop.f32.mrb[10].mxu0  ;;  %727 = vmatprep.mubr.f32.mxu1 %v211_v53 }
 0x108   :  { %v584_v55 = vpack.c.bf16 %v678_v54, %v677_v52  ;;  %v214_v56 = vpop.f32.mrb[11].mxu0 }
 0x109   :  { %v579_v57 = vpack.c.bf16 %v214_v56, %v211_v53  ;;  %728 = vmatmul.mubr.f32.gmra.mrb[8].mxu1 %v214_v56 }
 0x10a   :  { %600 = vst [vmem:[%s999_s3 + $0x28] sm:$0xff] %v584_v55   ;;  %730 = vmatprep.mubr.f32.mxu1 %v677_v52 }
 0x10b   :  { %599 = vst [vmem:[%s999_s3 + $0x20] sm:$0xff] %v579_v57  }
 0x10d   :  { %v681_v58 = vpop.f32.mrb[12].mxu0  ;;  %731 = vmatmul.mubr.f32.gmra.mrb[10].mxu1 %v678_v54 }
 0x10e   :  { %v227_v59 = vpop.f32.mrb[13].mxu0 }
 0x10f   :  { %v682_v60 = vpop.f32.mrb[14].mxu0  ;;  %733 = vmatprep.mubr.f32.mxu1 %v227_v59 }
 0x110   :  { %v594_v61 = vpack.c.bf16 %v682_v60, %v681_v58  ;;  %v230_v62 = vpop.f32.mrb[15].mxu0 }
 0x111   :  { %v589_v63 = vpack.c.bf16 %v230_v62, %v227_v59  ;;  %734 = vmatmul.mubr.f32.gmra.mrb[12].mxu1 %v230_v62 }
 0x112   :  { %602 = vst [vmem:[%s999_s3 + $0x38] sm:$0xff] %v594_v61   ;;  %736 = vmatprep.mubr.f32.mxu1 %v681_v58 }
 0x113   :  { %601 = vst [vmem:[%s999_s3 + $0x30] sm:$0xff] %v589_v63  }
 0x115   :  { %737 = vmatmul.mubr.f32.gmra.mrb[14].mxu1 %v682_v60 }
 0x1cc   :  { %v717_v0 = vpop.f32.mrb[0].mxu1 }
 0x1cd   :  { %405 = vst.msk [vmem:[%s1000_s4 + $0x8] sm:$0xff] %vm403_vm0, %v717_v0  ;;  %v324_v1 = vpop.f32.mrb[1].mxu1 }
 0x1ce   :  { %404 = vst.msk [vmem:[%s1000_s4] sm:$0xff] %vm403_vm0, %v324_v1 }
 0x1d0   :  { %v720_v2 = vpop.f32.mrb[2].mxu1 }
 0x1d1   :  { %407 = vst.msk [vmem:[%s1000_s4 + $0x18] sm:$0xff] %vm403_vm0, %v720_v2  ;;  %v334_v3 = vpop.f32.mrb[3].mxu1 }
 0x1d2   :  { %406 = vst.msk [vmem:[%s1000_s4 + $0x10] sm:$0xff] %vm403_vm0, %v334_v3 }
 0x1d4   :  { %v723_v4 = vpop.f32.mrb[4].mxu1 }
 0x1d5   :  { %409 = vst.msk [vmem:[%s1000_s4 + $0x28] sm:$0xff] %vm403_vm0, %v723_v4  ;;  %v344_v5 = vpop.f32.mrb[5].mxu1 }
 0x1d6   :  { %408 = vst.msk [vmem:[%s1000_s4 + $0x20] sm:$0xff] %vm403_vm0, %v344_v5 }
 0x1d8   :  { %v726_v6 = vpop.f32.mrb[6].mxu1 }
 0x1d9   :  { %411 = vst.msk [vmem:[%s1000_s4 + $0x38] sm:$0xff] %vm403_vm0, %v726_v6  ;;  %v354_v7 = vpop.f32.mrb[7].mxu1 }
 0x1da   :  { %410 = vst.msk [vmem:[%s1000_s4 + $0x30] sm:$0xff] %vm403_vm0, %v354_v7 }
 0x1dc   :  { %v729_v8 = vpop.f32.mrb[8].mxu1 }
 0x1dd   :  { %413 = vst.msk [vmem:[%s1000_s4 + $0x48] sm:$0xff] %vm403_vm0, %v729_v8  ;;  %v364_v9 = vpop.f32.mrb[9].mxu1 }
 0x1de   :  { %412 = vst.msk [vmem:[%s1000_s4 + $0x40] sm:$0xff] %vm403_vm0, %v364_v9 }
 0x1e0   :  { %v732_v10 = vpop.f32.mrb[10].mxu1 }
 0x1e1   :  { %415 = vst.msk [vmem:[%s1000_s4 + $0x58] sm:$0xff] %vm403_vm0, %v732_v10  ;;  %v374_v11 = vpop.f32.mrb[11].mxu1 }
 0x1e2   :  { %414 = vst.msk [vmem:[%s1000_s4 + $0x50] sm:$0xff] %vm403_vm0, %v374_v11 }
 0x1e4   :  { %v735_v12 = vpop.f32.mrb[12].mxu1 }
 0x1e5   :  { %417 = vst.msk [vmem:[%s1000_s4 + $0x68] sm:$0xff] %vm403_vm0, %v735_v12  ;;  %v384_v13 = vpop.f32.mrb[13].mxu1 }
 0x1e6   :  { %416 = vst.msk [vmem:[%s1000_s4 + $0x60] sm:$0xff] %vm403_vm0, %v384_v13 }
 0x1e8   :  { %v738_v14 = vpop.f32.mrb[14].mxu1 }
 0x1e9   :  { %419 = vst.msk [vmem:[%s1000_s4 + $0x78] sm:$0xff] %vm403_vm0, %v738_v14  ;;  %v394_v15 = vpop.f32.mrb[15].mxu1 }
 0x1ea   :  { %418 = vst.msk [vmem:[%s1000_s4 + $0x70] sm:$0xff] %vm403_vm0, %v394_v15 }

// kernel: gat_model_forward.7
= control target key start
LH: loop header
LB: loop body
LE: loop exit
PB: predicated region body
PF: predicated region fallthrough
CT: control target
= control target key end

     0   :  { %v1498_v0 = vmov 0   ;;  %vm29_vm0 = vcmask 7168   ;;  %v1499_v17 = vmov -1e+30   ;;  %s1501_s29 = smov 1   ;;  %s2403_s0 = inlined_call_operand.vmem [shape: f32[128,1], index: 0, kind: input, shape index: {}]   ;;  %s2404_s2 = inlined_call_operand.vmem [shape: s8[128,128], index: 2, kind: input, shape index: {}]   ;;  %s2405_s1 = inlined_call_operand.vmem [shape: f32[1,128], index: 1, kind: input, shape index: {}]   ;;  %s2406_s3 = inlined_call_operand.vmem [shape: bf16[128,128], index: 3, kind: input, shape index: {}]   ;;  %s2407_s6 = inlined_call_operand.vmem [shape: f32[128,2], index: 6, kind: output, shape index: {1}]   ;;  %s2408_s4 = inlined_call_operand.vmem [shape: f32[1,128], index: 4, kind: input, shape index: {}]   ;;  %s2409_s5 = inlined_call_operand.vmem [shape: f32[128,128], index: 5, kind: output, shape index: {0}]  }
   0x1   :  { %1393 = vset.pattern.permute.xlu1 %v1498_v0  ;;  %1392 = vset.pattern.permute.xlu0 %v1498_v0  ;;  %v86_v1 = vld [vmem:[%s2403_s0 + $0x40] sm:$0xff]  ;;  %v87_v3 = vld [vmem:[%s2403_s0 + $0x48] sm:$0xff]  ;;  %v81_v5 = vld [vmem:[%s2403_s0 + $0x18] sm:$0xff]  ;;  %30 = vst.msk [vmem:[#allocation2] sm:$0xff] %vm29_vm0, %v1499_v17 }
   0x2   :  { %v78_v2 = vld [vmem:[%s2403_s0] sm:$0xff]  ;;  %137 = vperm.xlu1 %1393, %v86_v1   ;;  %v79_v4 = vld [vmem:[%s2403_s0 + $0x8] sm:$0xff]  ;;  %v80_v6 = vld [vmem:[%s2403_s0 + $0x10] sm:$0xff]  ;;  %31 = vst.msk [vmem:[#allocation2 + $0x8] sm:$0xff] %vm29_vm0, %v1499_v17 }
   0x3   :  { %97 = vperm.xlu0 %1392, %v78_v2   ;;  %v89_v7 = vld [vmem:[%s2403_s0 + $0x58] sm:$0xff]  ;;  %v88_v8 = vld [vmem:[%s2403_s0 + $0x50] sm:$0xff]  ;;  %v83_v9 = vld [vmem:[%s2403_s0 + $0x28] sm:$0xff]  ;;  %32 = vst.msk [vmem:[#allocation2 + $0x10] sm:$0xff] %vm29_vm0, %v1499_v17 }
   0x4   :  { %v82_v10 = vld [vmem:[%s2403_s0 + $0x20] sm:$0xff]  ;;  %v91_v11 = vld [vmem:[%s2403_s0 + $0x68] sm:$0xff]  ;;  %v85_v13 = vld [vmem:[%s2403_s0 + $0x38] sm:$0xff]  ;;  %33 = vst.msk [vmem:[#allocation2 + $0x18] sm:$0xff] %vm29_vm0, %v1499_v17 }
   0x5   :  { %v90_v12 = vld [vmem:[%s2403_s0 + $0x60] sm:$0xff]  ;;  %v84_v14 = vld [vmem:[%s2403_s0 + $0x30] sm:$0xff]  ;;  %v93_v15 = vld [vmem:[%s2403_s0 + $0x78] sm:$0xff]  ;;  %34 = vst.msk [vmem:[#allocation2 + $0x20] sm:$0xff] %vm29_vm0, %v1499_v17 }
   0x6   :  { %142 = vperm.xlu1 %1393, %v87_v3   ;;  %v92_v16 = vld [vmem:[%s2403_s0 + $0x70] sm:$0xff]  ;;  %35 = vst.msk [vmem:[#allocation2 + $0x28] sm:$0xff] %vm29_vm0, %v1499_v17  ;;  %36 = vst.msk [vmem:[#allocation2 + $0x30] sm:$0xff] %vm29_vm0, %v1499_v17  ;;  %v229_v18 = vld [vmem:[%s2404_s2] sm:$0x3] }
   0x7   :  { %102 = vperm.xlu0 %1392, %v79_v4   ;;  %37 = vst.msk [vmem:[#allocation2 + $0x38] sm:$0xff] %vm29_vm0, %v1499_v17  ;;  %38 = vst.msk [vmem:[#allocation2 + $0x40] sm:$0xff] %vm29_vm0, %v1499_v17  ;;  %v237_v19 = vld [vmem:[%s2404_s2 + $0x10] sm:$0x3]  ;;  %v230_v20 = vld [vmem:[%s2404_s2 + $0x2] sm:$0x3]  ;;  %vm245_vm1 = vnez %v229_v18 }
   0x8   :  { %39 = vst.msk [vmem:[#allocation2 + $0x48] sm:$0xff] %vm29_vm0, %v1499_v17  ;;  %40 = vst.msk [vmem:[#allocation2 + $0x50] sm:$0xff] %vm29_vm0, %v1499_v17  ;;  %v238_v21 = vld [vmem:[%s2404_s2 + $0x12] sm:$0x3]  ;;  %vm253_vm2 = vnez %v237_v19  ;;  %vm246_vm3 = vnez %v230_v20  ;;  %v261_v22 = vsel %vm245_vm1, 16843009, %v1498_v0 }
   0x9   :  { %41 = vst.msk [vmem:[#allocation2 + $0x58] sm:$0xff] %vm29_vm0, %v1499_v17  ;;  %42 = vst.msk [vmem:[#allocation2 + $0x60] sm:$0xff] %vm29_vm0, %v1499_v17  ;;  %vm254_vm4 = vnez %v238_v21  ;;  %v269_v23 = vsel %vm253_vm2, 16843009, %v1498_v0  ;;  %v262_v24 = vsel %vm246_vm3, 16843009, %v1498_v0  ;;  %v277_v27 = vunpack.c.0.s8 %v261_v22 }
   0xa   :  { %112 = vperm.xlu1 %1393, %v81_v5   ;;  %43 = vst.msk [vmem:[#allocation2 + $0x68] sm:$0xff] %vm29_vm0, %v1499_v17  ;;  %44 = vst.msk [vmem:[#allocation2 + $0x70] sm:$0xff] %vm29_vm0, %v1499_v17  ;;  %v1621_v25 = vld [vmem:[%s2405_s1] ss:$0 sm:$0xff]  ;;  %v231_v26 = vld [vmem:[%s2404_s2 + $0x4] sm:$0x3]  ;;  %v285_v31 = vunpack.c.0.s8 %v269_v23  ;;  %v278_v32 = vunpack.c.0.s8 %v262_v24 }
   0xb   :  { %107 = vperm.xlu0 %1392, %v80_v6   ;;  %45 = vst.msk [vmem:[#allocation2 + $0x78] sm:$0xff] %vm29_vm0, %v1499_v17  ;;  %v270_v28 = vsel %vm254_vm4, 16843009, %v1498_v0  ;;  %v232_v33 = vld [vmem:[%s2404_s2 + $0x6] sm:$0x3]  ;;  %vm247_vm5 = vnez %v231_v26  ;;  %vm1638_vm6 = vcmp.ne.s32.totalorder %v277_v27, 0 }
   0xc   :  { %v239_v36 = vld [vmem:[%s2404_s2 + $0x14] sm:$0x3]  ;;  %v286_v37 = vunpack.c.0.s8 %v270_v28  ;;  %v240_v38 = vld [vmem:[%s2404_s2 + $0x16] sm:$0x3]  ;;  %vm248_vm7 = vnez %v232_v33  ;;  %vm1642_vm8 = vcmp.ne.s32.totalorder %v285_v31, 0  ;;  %vm1646_vm9 = vcmp.ne.s32.totalorder %v278_v32, 0 }
   0xd   :  { %v263_v46 = vsel %vm247_vm5, 16843009, %v1498_v0  ;;  %vm255_vm10 = vnez %v239_v36  ;;  %vm256_vm11 = vnez %v240_v38  ;;  %v264_v51 = vsel %vm248_vm7, 16843009, %v1498_v0  ;;  %v233_v52 = vld [vmem:[%s2404_s2 + $0x8] sm:$0x3] }
   0xe   :  { %152 = vperm.xlu1 %1393, %v89_v7   ;;  %v234_v53 = vld [vmem:[%s2404_s2 + $0xa] sm:$0x3]  ;;  %vm1665_vm12 = vcmp.ne.s32.totalorder %v286_v37, 0  ;;  %v279_v60 = vunpack.c.0.s8 %v263_v46  ;;  %v271_v61 = vsel %vm255_vm10, 16843009, %v1498_v0  ;;  %vm249_vm13 = vnez %v233_v52 }
   0xf   :  { %147 = vperm.xlu0 %1392, %v88_v8   ;;  %v272_v62 = vsel %vm256_vm11, 16843009, %v1498_v0  ;;  %v280_v5 = vunpack.c.0.s8 %v264_v51  ;;  %vm250_vm14 = vnez %v234_v53  ;;  %v241_v6 = vld [vmem:[%s2404_s2 + $0x18] sm:$0x3]  ;;  %v235_v24 = vld [vmem:[%s2404_s2 + $0xc] sm:$0x3] }
  0x10   :  { %vm1687_vm15 = vcmp.ne.s32.totalorder %v279_v60, 0  ;;  %v266_v20 = vsel %vm250_vm14, 16843009, %v1498_v0  ;;  %vm257_vm2 = vnez %v241_v6  ;;  %v244_v59 = vld [vmem:[%s2404_s2 + $0x1e] sm:$0x3] }
  0x11   :  { %vm1704_vm1 = vcmp.ne.s32.totalorder %v280_v5, 0  ;;  %v273_v38 = vsel %vm257_vm2, 16843009, %v1498_v0 }
  0x12   :  { %122 = vperm.xlu1 %1393, %v83_v9  }
  0x13   :  { %117 = vperm.xlu0 %1392, %v82_v10  }
  0x16   :  { %162 = vperm.xlu1 %1393, %v91_v11  }
  0x17   :  { %157 = vperm.xlu0 %1392, %v90_v12  }
  0x1a   :  { %132 = vperm.xlu1 %1393, %v85_v13   ;;  %v287_v13 = vunpack.c.0.s8 %v271_v61 }
  0x1b   :  { %127 = vperm.xlu0 %1392, %v84_v14   ;;  %v288_v14 = vunpack.c.0.s8 %v272_v62 }
  0x1c   :  { %vm1717_vm4 = vcmp.ne.s32.totalorder %v287_v13, 0 }
  0x1d   :  { %vm1721_vm5 = vcmp.ne.s32.totalorder %v288_v14, 0 }
  0x1e   :  { %172 = vperm.xlu1 %1393, %v93_v15   ;;  %v265_v15 = vsel %vm249_vm13, 16843009, %v1498_v0  ;;  %vm260_vm13 = vnez %v244_v59 }
  0x1f   :  { %167 = vperm.xlu0 %1392, %v92_v16   ;;  %v242_v16 = vld [vmem:[%s2404_s2 + $0x1a] sm:$0x3]  ;;  %v281_v33 = vunpack.c.0.s8 %v265_v15 }
  0x20   :  { %vm258_vm3 = vnez %v242_v16 }
  0x21   :  { %vm297_vm7 = vcmp.ne.s32.totalorder %v281_v33, 0 }
  0x81   :  { %v138_v29 = vpop.permute.xlu1 %137 }
  0x82   :  { %v98_v30 = vpop.permute.xlu0 %97  ;;  %v189_v34 = vadd.f32 %v1621_v25, %v138_v29 }
  0x83   :  { %v181_v35 = vadd.f32 %v1621_v25, %v98_v30 }
  0x84   :  { %v205_v39 = vmul.f32 0.2, %v189_v34 }
  0x85   :  { %v197_v40 = vmul.f32 0.2, %v181_v35  ;;  %v143_v42 = vpop.permute.xlu1 %142 }
  0x86   :  { %v103_v43 = vpop.permute.xlu0 %102  ;;  %v190_v47 = vadd.f32 %v1621_v25, %v143_v42  ;;  %v221_v50 = vmax.f32 %v189_v34, %v205_v39  ;;  %v282_v34 = vunpack.c.0.s8 %v266_v20  ;;  %v236_v39 = vld [vmem:[%s2404_s2 + $0xe] sm:$0x3]  ;;  %v274_v42 = vsel %vm258_vm3, 16843009, %v1498_v0 }
  0x87   :  { %v182_v48 = vadd.f32 %v1621_v25, %v103_v43  ;;  %v213_v49 = vmax.f32 %v181_v35, %v197_v40  ;;  %v243_v43 = vld [vmem:[%s2404_s2 + $0x1c] sm:$0x3] }
  0x88   :  { %v206_v54 = vmul.f32 0.2, %v190_v47  ;;  %v1676_v3 = vsel %vm1642_vm8, %v221_v50, -1e+30  ;;  %vm1747_vm8 = vcmp.ne.s32.totalorder %v282_v34, 0  ;;  %v289_v50 = vunpack.c.0.s8 %v273_v38 }
  0x89   :  { %v198_v55 = vmul.f32 0.2, %v182_v48  ;;  %v1662_v56 = vsel %vm1638_vm6, %v213_v49, -1e+30  ;;  %v113_v57 = vpop.permute.xlu1 %112  ;;  %vm251_vm6 = vnez %v235_v24  ;;  %vm259_vm10 = vnez %v243_v43 }
  0x8a   :  { %341 = vmax.xlane.f32.xlu0 %v1662_v56  ;;  %v108_v58 = vpop.permute.xlu0 %107  ;;  %v184_v63 = vadd.f32 %v1621_v25, %v113_v57  ;;  %v222_v4 = vmax.f32 %v190_v47, %v206_v54  ;;  %v267_v54 = vsel %vm251_vm6, 16843009, %v1498_v0  ;;  %vm305_vm11 = vcmp.ne.s32.totalorder %v289_v50, 0 }
  0x8b   :  { %v183_v1 = vadd.f32 %v1621_v25, %v108_v58  ;;  %v214_v2 = vmax.f32 %v182_v48, %v198_v55  ;;  %v290_v58 = vunpack.c.0.s8 %v274_v42  ;;  %v276_v24 = vsel %vm260_vm13, 16843009, %v1498_v0 }
  0x8c   :  { %v200_v7 = vmul.f32 0.2, %v184_v63  ;;  %v1702_v21 = vsel %vm1665_vm12, %v222_v4, -1e+30  ;;  %v1500_v34 = vmov 0.0  }
  0x8d   :  { %v199_v8 = vmul.f32 0.2, %v183_v1  ;;  %v1683_v9 = vsel %vm1646_vm9, %v214_v2, -1e+30  ;;  %v153_v10 = vpop.permute.xlu1 %152  ;;  %vm252_vm9 = vnez %v236_v39  ;;  %v283_v2 = vunpack.c.0.s8 %v267_v54  ;;  %46 = vst.msk [vmem:[#allocation3] sm:$0xff] %vm29_vm0, %v1500_v34  ;;  %47 = vst.msk [vmem:[#allocation3 + $0x8] sm:$0xff] %vm29_vm0, %v1500_v34 }
  0x8e   :  { %357 = vmax.xlane.f32.xlu0 %v1676_v3  ;;  %343 = vmax.xlane.f32.xlu1 %v1683_v9  ;;  %v148_v11 = vpop.permute.xlu0 %147  ;;  %v192_v17 = vadd.f32 %v1621_v25, %v153_v10  ;;  %v216_v22 = vmax.f32 %v184_v63, %v200_v7  ;;  %v268_v4 = vsel %vm252_vm9, 16843009, %v1498_v0  ;;  %vm1775_vm12 = vcmp.ne.s32.totalorder %v290_v58, 0  ;;  %48 = vst.msk [vmem:[#allocation3 + $0x10] sm:$0xff] %vm29_vm0, %v1500_v34  ;;  %v1394_v39 = vld [vmem:[%s2406_s3] sm:$0xff]   ;;  %v1396_v54 = vld [vmem:[%s2406_s3 + $0x10] sm:$0xff]  }
  0x8f   :  { %v191_v18 = vadd.f32 %v1621_v25, %v148_v11  ;;  %v215_v19 = vmax.f32 %v183_v1, %v199_v8  ;;  %v275_v8 = vsel %vm259_vm10, 16843009, %v1498_v0  ;;  %vm299_vm14 = vcmp.ne.s32.totalorder %v283_v2, 0  ;;  %49 = vst.msk [vmem:[#allocation3 + $0x18] sm:$0xff] %vm29_vm0, %v1500_v34  ;;  %50 = vst.msk [vmem:[#allocation3 + $0x20] sm:$0xff] %vm29_vm0, %v1500_v34  ;;  %1340 = vmatprep.subr.bf16.mxu0 %v1394_v39  ;;  %v1397_v2 = vld [vmem:[%s2406_s3 + $0x18] sm:$0xff]  }
  0x90   :  { %v208_v26 = vmul.f32 0.2, %v192_v17  ;;  %v1734_v40 = vsel %vm1704_vm1, %v216_v22, -1e+30  ;;  %v292_v0 = vunpack.c.0.s8 %v276_v24  ;;  %51 = vst.msk [vmem:[#allocation3 + $0x28] sm:$0xff] %vm29_vm0, %v1500_v34  ;;  %52 = vst.msk [vmem:[#allocation3 + $0x30] sm:$0xff] %vm29_vm0, %v1500_v34  ;;  %1372 = vmatprep.subr.bf16.mxu1 %v1394_v39  ;;  %1341 = vmatpush3.bf16.msra.mxu0 %v1394_v39 }
  0x91   :  { %v207_v27 = vmul.f32 0.2, %v191_v18  ;;  %v1713_v28 = vsel %vm1687_vm15, %v215_v19, -1e+30  ;;  %v123_v29 = vpop.permute.xlu1 %122  ;;  %v291_v19 = vunpack.c.0.s8 %v275_v8  ;;  %53 = vst.msk [vmem:[#allocation3 + $0x38] sm:$0xff] %vm29_vm0, %v1500_v34  ;;  %54 = vst.msk [vmem:[#allocation3 + $0x40] sm:$0xff] %vm29_vm0, %v1500_v34  ;;  %1380 = vmatpush3.bf16.msra.mxu1 %v1394_v39 }
  0x92   :  { %359 = vmax.xlane.f32.xlu0 %v1702_v21  ;;  %345 = vmax.xlane.f32.xlu1 %v1713_v28  ;;  %v118_v30 = vpop.permute.xlu0 %117  ;;  %v186_v35 = vadd.f32 %v1621_v25, %v123_v29  ;;  %v224_v41 = vmax.f32 %v192_v17, %v208_v26  ;;  %55 = vst.msk [vmem:[#allocation3 + $0x48] sm:$0xff] %vm29_vm0, %v1500_v34  ;;  %56 = vst.msk [vmem:[#allocation3 + $0x50] sm:$0xff] %vm29_vm0, %v1500_v34  ;;  %vm308_vm2 = vcmp.ne.s32.totalorder %v292_v0, 0  ;;  %v1897_v8 = vld [vmem:[#allocation2 + $0x20] sm:$0xff]  ;;  %v1928_v24 = vld [vmem:[#allocation2 + $0x28] sm:$0xff] }
  0x93   :  { %v185_v36 = vadd.f32 %v1621_v25, %v118_v30  ;;  %v223_v37 = vmax.f32 %v191_v18, %v207_v27  ;;  %v284_v18 = vunpack.c.0.s8 %v268_v4  ;;  %vm1798_vm1 = vcmp.ne.s32.totalorder %v291_v19, 0  ;;  %57 = vst.msk [vmem:[#allocation3 + $0x58] sm:$0xff] %vm29_vm0, %v1500_v34  ;;  %58 = vst.msk [vmem:[#allocation3 + $0x60] sm:$0xff] %vm29_vm0, %v1500_v34 }
  0x94   :  { %v202_v44 = vmul.f32 0.2, %v186_v35  ;;  %v1757_v55 = vsel %vm1721_vm5, %v224_v41, -1e+30  ;;  %59 = vst.msk [vmem:[#allocation3 + $0x68] sm:$0xff] %vm29_vm0, %v1500_v34  ;;  %60 = vst.msk [vmem:[#allocation3 + $0x70] sm:$0xff] %vm29_vm0, %v1500_v34 }
  0x95   :  { %v201_v45 = vmul.f32 0.2, %v185_v36  ;;  %v1743_v46 = vsel %vm1717_vm4, %v223_v37, -1e+30  ;;  %v163_v47 = vpop.permute.xlu1 %162  ;;  %vm1794_vm15 = vcmp.ne.s32.totalorder %v284_v18, 0  ;;  %61 = vst.msk [vmem:[#allocation3 + $0x78] sm:$0xff] %vm29_vm0, %v1500_v34 }
  0x96   :  { %347 = vmax.xlane.f32.xlu0 %v1734_v40  ;;  %361 = vmax.xlane.f32.xlu1 %v1743_v46  ;;  %v158_v48 = vpop.permute.xlu0 %157  ;;  %v194_v51 = vadd.f32 %v1621_v25, %v163_v47  ;;  %v218_v57 = vmax.f32 %v186_v35, %v202_v44  ;;  %v1834_v41 = vld [vmem:[#allocation2] sm:$0xff]  ;;  %v1839_v44 = vld [vmem:[#allocation2 + $0x8] sm:$0xff] }
  0x97   :  { %v193_v52 = vadd.f32 %v1621_v25, %v158_v48  ;;  %v217_v53 = vmax.f32 %v185_v36, %v201_v45  ;;  %v1841_v45 = vld [vmem:[#allocation2 + $0x40] sm:$0xff]  ;;  %v1395_v47 = vld [vmem:[%s2406_s3 + $0x8] sm:$0xff]  }
  0x98   :  { %v210_v60 = vmul.f32 0.2, %v194_v51  ;;  %v1773_v10 = vsel %vm1747_vm8, %v218_v57, -1e+30  ;;  %1342 = vmatprep.subr.bf16.mxu0 %v1395_v47  ;;  %1373 = vmatprep.subr.bf16.mxu1 %v1395_v47 }
  0x99   :  { %v209_v61 = vmul.f32 0.2, %v193_v52  ;;  %v1762_v62 = vsel %vm297_vm7, %v217_v53, -1e+30  ;;  %v133_v63 = vpop.permute.xlu1 %132  ;;  %v1857_v53 = vld [vmem:[#allocation2 + $0x48] sm:$0xff]  ;;  %1343 = vmatpush3.bf16.msra.mxu0 %v1395_v47  ;;  %1381 = vmatpush3.bf16.msra.mxu1 %v1395_v47 }
  0x9a   :  { %363 = vmax.xlane.f32.xlu0 %v1757_v55  ;;  %349 = vmax.xlane.f32.xlu1 %v1762_v62  ;;  %v128_v1 = vpop.permute.xlu0 %127  ;;  %v188_v5 = vadd.f32 %v1621_v25, %v133_v63  ;;  %v226_v11 = vmax.f32 %v194_v51, %v210_v60  ;;  %v1876_v63 = vld [vmem:[#allocation2 + $0x18] sm:$0xff] }
  0x9b   :  { %v187_v6 = vadd.f32 %v1621_v25, %v128_v1  ;;  %v225_v7 = vmax.f32 %v193_v52, %v209_v61  ;;  %v1855_v52 = vld [vmem:[#allocation2 + $0x10] sm:$0xff]  ;;  %1344 = vmatprep.subr.bf16.mxu0 %v1396_v54  ;;  %1374 = vmatprep.subr.bf16.mxu1 %v1396_v54 }
  0x9c   :  { %v204_v13 = vmul.f32 0.2, %v188_v5  ;;  %v1788_v26 = vsel %vm1775_vm12, %v226_v11, -1e+30  ;;  %v1874_v61 = vld [vmem:[#allocation2 + $0x50] sm:$0xff]  ;;  %v1899_v11 = vld [vmem:[#allocation2 + $0x58] sm:$0xff] }
  0x9d   :  { %v203_v14 = vmul.f32 0.2, %v187_v6  ;;  %v1779_v15 = vsel %vm305_vm11, %v225_v7, -1e+30  ;;  %v173_v16 = vpop.permute.xlu1 %172  ;;  %1345 = vmatpush3.bf16.msra.mxu0 %v1396_v54  ;;  %1382 = vmatpush3.bf16.msra.mxu1 %v1396_v54 }
  0x9e   :  { %351 = vmax.xlane.f32.xlu0 %v1773_v10  ;;  %365 = vmax.xlane.f32.xlu1 %v1779_v15  ;;  %v168_v17 = vpop.permute.xlu0 %167  ;;  %v196_v20 = vadd.f32 %v1621_v25, %v173_v16  ;;  %v220_v31 = vmax.f32 %v188_v5, %v204_v13  ;;  %v1398_v16 = vld [vmem:[%s2406_s3 + $0x20] sm:$0xff]  }
  0x9f   :  { %v195_v22 = vadd.f32 %v1621_v25, %v168_v17  ;;  %v219_v23 = vmax.f32 %v187_v6, %v203_v14  ;;  %1346 = vmatprep.subr.bf16.mxu0 %v1397_v2  ;;  %1375 = vmatprep.subr.bf16.mxu1 %v1397_v2  ;;  %v1399_v25 = vld [vmem:[%s2406_s3 + $0x28] sm:$0xff]  }
  0xa0   :  { %v212_v27 = vmul.f32 0.2, %v196_v20  ;;  %v1820_v35 = vsel %vm1794_vm15, %v220_v31, -1e+30 }
  0xa1   :  { %v211_v29 = vmul.f32 0.2, %v195_v22  ;;  %v1790_v30 = vsel %vm299_vm14, %v219_v23, -1e+30  ;;  %1347 = vmatpush3.bf16.msra.mxu0 %v1397_v2  ;;  %1383 = vmatpush3.bf16.msra.mxu1 %v1397_v2  ;;  %v1926_v23 = vld [vmem:[#allocation2 + $0x60] sm:$0xff] }
  0xa2   :  { %367 = vmax.xlane.f32.xlu0 %v1788_v26  ;;  %353 = vmax.xlane.f32.xlu1 %v1790_v30  ;;  %v228_v37 = vmax.f32 %v196_v20, %v212_v27 }
  0xa3   :  { %v227_v33 = vmax.f32 %v195_v22, %v211_v29  ;;  %1348 = vmatprep.subr.bf16.mxu0 %v1398_v16  ;;  %1376 = vmatprep.subr.bf16.mxu1 %v1398_v16 }
  0xa4   :  { %v1828_v38 = vsel %vm308_vm2, %v228_v37, -1e+30 }
  0xa5   :  { %v1824_v36 = vsel %vm1798_vm1, %v227_v33, -1e+30  ;;  %1349 = vmatpush3.bf16.msra.mxu0 %v1398_v16  ;;  %1384 = vmatpush3.bf16.msra.mxu1 %v1398_v16 }
  0xa6   :  { %355 = vmax.xlane.f32.xlu0 %v1820_v35  ;;  %369 = vmax.xlane.f32.xlu1 %v1824_v36 }
  0xa7   :  { %1350 = vmatprep.subr.bf16.mxu0 %v1399_v25  ;;  %1377 = vmatprep.subr.bf16.mxu1 %v1399_v25 }
  0xa9   :  { %1351 = vmatpush3.bf16.msra.mxu0 %v1399_v25  ;;  %1385 = vmatpush3.bf16.msra.mxu1 %v1399_v25 }
  0xaa   :  { %371 = vmax.xlane.f32.xlu0 %v1828_v38 }
 0x117   :  { %v342_v42 = vpop.xlane.xlu0 %341 }
 0x118   :  { %v1837_v43 = vmax.f32 %v1834_v41, %v342_v42  ;;  %v331_v42 = vld [vmem:[#allocation2 + $0x30] sm:$0xff] }
 0x11a   :  { %975 = vst.msk [vmem:[#allocation2] sm:$0xff] %vm29_vm0, %v1837_v43  ;;  %439 = vperm.xlu1 %1393, %v1837_v43   ;;  %v389_v31 = vsub.f32 %v1834_v41, %v1837_v43  ;;  %v1956_v43 = vld [vmem:[#allocation2 + $0x68] sm:$0xff] }
 0x11b   :  { %v344_v48 = vpop.xlane.xlu1 %343  ;;  %v358_v49 = vpop.xlane.xlu0 %357 }
 0x11c   :  { %v1850_v50 = vmax.f32 %v1839_v44, %v344_v48  ;;  %v1853_v51 = vmax.f32 %v1841_v45, %v358_v49  ;;  %v405_v48 = vmul.f32 1.442695, %v389_v31  ;;  %v2011_v31 = vld [vmem:[#allocation2 + $0x78] sm:$0xff] }
 0x11e   :  { %976 = vst.msk [vmem:[#allocation2 + $0x8] sm:$0xff] %vm29_vm0, %v1850_v50  ;;  %983 = vst.msk [vmem:[#allocation2 + $0x40] sm:$0xff] %vm29_vm0, %v1853_v51  ;;  %444 = vperm.xlu0 %1392, %v1850_v50   ;;  %479 = vperm.xlu1 %1393, %v1853_v51   ;;  %v390_v17 = vsub.f32 %v1839_v44, %v1850_v50  ;;  %v1400_v50 = vld [vmem:[%s2406_s3 + $0x30] sm:$0xff]  }
 0x11f   :  { %v346_v57 = vpop.xlane.xlu1 %345  ;;  %v360_v58 = vpop.xlane.xlu0 %359  ;;  %1352 = vmatprep.subr.bf16.mxu0 %v1400_v50  ;;  %1378 = vmatprep.subr.bf16.mxu1 %v1400_v50 }
 0x120   :  { %v1869_v59 = vmax.f32 %v1855_v52, %v346_v57  ;;  %v1872_v60 = vmax.f32 %v1857_v53, %v360_v58  ;;  %v407_v0 = vmul.f32 1.442695, %v390_v17  ;;  %1353 = vmatpush3.bf16.msra.mxu0 %v1400_v50  ;;  %1386 = vmatpush3.bf16.msra.mxu1 %v1400_v50  ;;  %v1401_v17 = vld [vmem:[%s2406_s3 + $0x38] sm:$0xff]  }
 0x121   :  { %v1161_v1 = vld [vmem:[#allocation2] sm:$0xff]  ;;  %1354 = vmatprep.subr.bf16.mxu0 %v1401_v17  ;;  %1379 = vmatprep.subr.bf16.mxu1 %v1401_v17 }
 0x122   :  { %977 = vst.msk [vmem:[#allocation2 + $0x10] sm:$0xff] %vm29_vm0, %v1869_v59  ;;  %984 = vst.msk [vmem:[#allocation2 + $0x48] sm:$0xff] %vm29_vm0, %v1872_v60  ;;  %449 = vperm.xlu0 %1392, %v1869_v59   ;;  %484 = vperm.xlu1 %1393, %v1872_v60   ;;  %1402 = vpow2.f32 %v407_v0  ;;  %v391_v54 = vsub.f32 %v1855_v52, %v1869_v59  ;;  %v397_v52 = vsub.f32 %v1841_v45, %v1853_v51 }
 0x123   :  { %1177 = vst.msk [vmem:[%s2407_s6] sm:$0xff] %vm29_vm0, %v1161_v1  ;;  %v362_v4 = vpop.xlane.xlu1 %361  ;;  %v348_v5 = vpop.xlane.xlu0 %347  ;;  %1404 = vpow2.f32 %v405_v48 }
 0x124   :  { %v1892_v6 = vmax.f32 %v1874_v61, %v362_v4  ;;  %v1895_v7 = vmax.f32 %v1876_v63, %v348_v5  ;;  %v1982_v5 = vld [vmem:[#allocation2 + $0x70] sm:$0xff]  ;;  %v409_v45 = vmul.f32 1.442695, %v391_v54  ;;  %1355 = vmatpush3.bf16.msra.mxu0 %v1401_v17  ;;  %1387 = vmatpush3.bf16.msra.mxu1 %v1401_v17 }
 0x125   :  { %v1162_v12 = vld [vmem:[#allocation2 + $0x8] sm:$0xff]  ;;  %v1169_v13 = vld [vmem:[#allocation2 + $0x40] sm:$0xff] }
 0x126   :  { %v399_v14 = vsub.f32 %v1874_v61, %v1892_v6  ;;  %985 = vst.msk [vmem:[#allocation2 + $0x50] sm:$0xff] %vm29_vm0, %v1892_v6  ;;  %978 = vst.msk [vmem:[#allocation2 + $0x18] sm:$0xff] %vm29_vm0, %v1895_v7  ;;  %489 = vperm.xlu0 %1392, %v1892_v6   ;;  %454 = vperm.xlu1 %1393, %v1895_v7   ;;  %v392_v51 = vsub.f32 %v1876_v63, %v1895_v7 }
 0x127   :  { %1178 = vst.msk [vmem:[%s2407_s6 + $0x8] sm:$0xff] %vm29_vm0, %v1162_v12  ;;  %1185 = vst.msk [vmem:[%s2407_s6 + $0x40] sm:$0xff] %vm29_vm0, %v1169_v13  ;;  %v350_v18 = vpop.xlane.xlu1 %349  ;;  %v364_v19 = vpop.xlane.xlu0 %363 }
 0x128   :  { %v377_v20 = vmax.f32 %v1897_v8, %v350_v18  ;;  %v1924_v22 = vmax.f32 %v1899_v11, %v364_v19  ;;  %v411_v7 = vmul.f32 1.442695, %v392_v51 }
 0x129   :  { %v1163_v27 = vld [vmem:[#allocation2 + $0x10] sm:$0xff]  ;;  %v1170_v29 = vld [vmem:[#allocation2 + $0x48] sm:$0xff] }
 0x12a   :  { %979 = vst.msk [vmem:[#allocation2 + $0x20] sm:$0xff] %vm29_vm0, %v377_v20  ;;  %v400_v32 = vsub.f32 %v1899_v11, %v1924_v22  ;;  %986 = vst.msk [vmem:[#allocation2 + $0x58] sm:$0xff] %vm29_vm0, %v1924_v22  ;;  %459 = vperm.xlu0 %1392, %v377_v20   ;;  %494 = vperm.xlu1 %1393, %v1924_v22   ;;  %v393_v33 = vsub.f32 %v1897_v8, %v377_v20  ;;  %v1984_v8 = vld [vmem:[#allocation2 + $0x38] sm:$0xff] }
 0x12b   :  { %1179 = vst.msk [vmem:[%s2407_s6 + $0x10] sm:$0xff] %vm29_vm0, %v1163_v27  ;;  %1186 = vst.msk [vmem:[%s2407_s6 + $0x48] sm:$0xff] %vm29_vm0, %v1170_v29  ;;  %v366_v34 = vpop.xlane.xlu1 %365  ;;  %v352_v37 = vpop.xlane.xlu0 %351 }
 0x12c   :  { %v1951_v39 = vmax.f32 %v1926_v23, %v366_v34  ;;  %v1954_v41 = vmax.f32 %v1928_v24, %v352_v37  ;;  %v413_v57 = vmul.f32 1.442695, %v393_v33  ;;  %v421_v33 = vmul.f32 1.442695, %v397_v52 }
 0x12d   :  { %v1164_v44 = vld [vmem:[#allocation2 + $0x18] sm:$0xff]  ;;  %v1171_v47 = vld [vmem:[#allocation2 + $0x50] sm:$0xff] }
 0x12e   :  { %v401_v49 = vsub.f32 %v1926_v23, %v1951_v39  ;;  %987 = vst.msk [vmem:[#allocation2 + $0x60] sm:$0xff] %vm29_vm0, %v1951_v39  ;;  %980 = vst.msk [vmem:[#allocation2 + $0x28] sm:$0xff] %vm29_vm0, %v1954_v41  ;;  %499 = vperm.xlu0 %1392, %v1951_v39   ;;  %464 = vperm.xlu1 %1393, %v1954_v41   ;;  %1406 = vpow2.f32 %v413_v57  ;;  %v394_v34 = vsub.f32 %v1928_v24, %v1954_v41 }
 0x12f   :  { %1180 = vst.msk [vmem:[%s2407_s6 + $0x18] sm:$0xff] %vm29_vm0, %v1164_v44  ;;  %1187 = vst.msk [vmem:[%s2407_s6 + $0x50] sm:$0xff] %vm29_vm0, %v1171_v47  ;;  %v354_v58 = vpop.xlane.xlu1 %353  ;;  %v368_v1 = vpop.xlane.xlu0 %367 }
 0x130   :  { %v379_v2 = vmax.f32 %v331_v42, %v354_v58  ;;  %v1980_v4 = vmax.f32 %v1956_v43, %v368_v1  ;;  %v2032_v44 = vpop.eup %1402  ;;  %v415_v24 = vmul.f32 1.442695, %v394_v34  ;;  %v429_v11 = vmul.f32 1.442695, %v401_v49 }
 0x131   :  { %v1165_v12 = vld [vmem:[#allocation2 + $0x20] sm:$0xff]  ;;  %v1172_v13 = vld [vmem:[#allocation2 + $0x58] sm:$0xff]  ;;  %v2049_v54 = vpop.eup %1404 }
 0x132   :  { %v395_v59 = vsub.f32 %v331_v42, %v379_v2  ;;  %981 = vst.msk [vmem:[#allocation2 + $0x30] sm:$0xff] %vm29_vm0, %v379_v2  ;;  %v402_v16 = vsub.f32 %v1956_v43, %v1980_v4  ;;  %988 = vst.msk [vmem:[#allocation2 + $0x68] sm:$0xff] %vm29_vm0, %v1980_v4  ;;  %469 = vperm.xlu0 %1392, %v379_v2   ;;  %504 = vperm.xlu1 %1393, %v1980_v4  }
 0x133   :  { %1181 = vst.msk [vmem:[%s2407_s6 + $0x20] sm:$0xff] %vm29_vm0, %v1165_v12  ;;  %1188 = vst.msk [vmem:[%s2407_s6 + $0x58] sm:$0xff] %vm29_vm0, %v1172_v13  ;;  %v370_v18 = vpop.xlane.xlu1 %369  ;;  %v356_v19 = vpop.xlane.xlu0 %355  ;;  %v398_v2 = vsub.f32 %v1857_v53, %v1872_v60 }
 0x134   :  { %v417_v20 = vmul.f32 1.442695, %v395_v59  ;;  %v2008_v27 = vmax.f32 %v1982_v5, %v370_v18  ;;  %v380_v29 = vmax.f32 %v1984_v8, %v356_v19 }
 0x135   :  { %v1166_v25 = vld [vmem:[#allocation2 + $0x28] sm:$0xff]  ;;  %v1173_v0 = vld [vmem:[#allocation2 + $0x60] sm:$0xff]  ;;  %v423_v59 = vmul.f32 1.442695, %v398_v2 }
 0x136   :  { %1408 = vpow2.f32 %v417_v20  ;;  %v403_v63 = vsub.f32 %v1982_v5, %v2008_v27  ;;  %989 = vst.msk [vmem:[#allocation2 + $0x70] sm:$0xff] %vm29_vm0, %v2008_v27  ;;  %982 = vst.msk [vmem:[#allocation2 + $0x38] sm:$0xff] %vm29_vm0, %v380_v29  ;;  %509 = vperm.xlu0 %1392, %v2008_v27   ;;  %474 = vperm.xlu1 %1393, %v380_v29   ;;  %v396_v41 = vsub.f32 %v1984_v8, %v380_v29 }
 0x137   :  { %1182 = vst.msk [vmem:[%s2407_s6 + $0x28] sm:$0xff] %vm29_vm0, %v1166_v25  ;;  %1189 = vst.msk [vmem:[%s2407_s6 + $0x60] sm:$0xff] %vm29_vm0, %v1173_v0  ;;  %1410 = vpow2.f32 %v409_v45  ;;  %v372_v37 = vpop.xlane.xlu0 %371 }
 0x138   :  { %v2030_v42 = vmax.f32 %v2011_v31, %v372_v37  ;;  %1412 = vpow2.f32 %v421_v33  ;;  %v2051_v57 = vpop.eup %1406  ;;  %v419_v8 = vmul.f32 1.442695, %v396_v41  ;;  %v433_v61 = vmul.f32 1.442695, %v403_v63 }
 0x139   :  { %v1167_v47 = vld [vmem:[#allocation2 + $0x30] sm:$0xff]  ;;  %v1174_v48 = vld [vmem:[#allocation2 + $0x68] sm:$0xff]  ;;  %1414 = vpow2.f32 %v411_v7 }
 0x13a   :  { %v404_v50 = vsub.f32 %v2011_v31, %v2030_v42  ;;  %990 = vst.msk [vmem:[#allocation2 + $0x78] sm:$0xff] %vm29_vm0, %v2030_v42  ;;  %685 = vperm.xlu0 %1392, %v2032_v44   ;;  %514 = vperm.xlu1 %1393, %v2030_v42   ;;  %1183 = vst.msk [vmem:[%s2407_s6 + $0x30] sm:$0xff] %vm29_vm0, %v1167_v47  ;;  %1416 = vpow2.f32 %v415_v24 }
 0x13b   :  { %1190 = vst.msk [vmem:[%s2407_s6 + $0x68] sm:$0xff] %vm29_vm0, %v1174_v48  ;;  %1418 = vpow2.f32 %v419_v8 }
 0x13c   :  { %1420 = vpow2.f32 %v423_v59 }
 0x13d   :  { %v1168_v58 = vld [vmem:[#allocation2 + $0x38] sm:$0xff]  ;;  %v1175_v1 = vld [vmem:[#allocation2 + $0x70] sm:$0xff] }
 0x13e   :  { %700 = vperm.xlu0 %1392, %v2051_v57   ;;  %680 = vperm.xlu1 %1393, %v2049_v54   ;;  %1184 = vst.msk [vmem:[%s2407_s6 + $0x38] sm:$0xff] %vm29_vm0, %v1168_v58  ;;  %1191 = vst.msk [vmem:[%s2407_s6 + $0x70] sm:$0xff] %vm29_vm0, %v1175_v1 }
 0x140   :  { %v2065_v12 = vpop.eup %1408 }
 0x141   :  { %v2067_v13 = vpop.eup %1410  ;;  %v1176_v52 = vld [vmem:[#allocation2 + $0x78] sm:$0xff] }
 0x142   :  { %710 = vperm.xlu0 %1392, %v2065_v12   ;;  %690 = vperm.xlu1 %1393, %v2067_v13   ;;  %1192 = vst.msk [vmem:[%s2407_s6 + $0x78] sm:$0xff] %vm29_vm0, %v1176_v52  ;;  %v2075_v17 = vpop.eup %1412 }
 0x143   :  { %v2077_v53 = vpop.eup %1414 }
 0x144   :  { %v2081_v60 = vpop.eup %1416 }
 0x145   :  { %v2084_v45 = vpop.eup %1418 }
 0x146   :  { %720 = vperm.xlu0 %1392, %v2075_v17   ;;  %695 = vperm.xlu1 %1393, %v2077_v53   ;;  %v2087_v51 = vpop.eup %1420 }
 0x14a   :  { %705 = vperm.xlu1 %1393, %v2081_v60  }
 0x14e   :  { %715 = vperm.xlu1 %1393, %v2084_v45  }
 0x152   :  { %725 = vperm.xlu1 %1393, %v2087_v51  }
 0x199   :  { %v440_v18 = vpop.permute.xlu1 %439 }
 0x19a   :  { %v517_v19 = vsub.f32 %v1662_v56, %v440_v18 }
 0x19c   :  { %v533_v20 = vmul.f32 1.442695, %v517_v19 }
 0x19d   :  { %v480_v29 = vpop.permute.xlu1 %479  ;;  %v445_v25 = vpop.permute.xlu0 %444 }
 0x19e   :  { %1422 = vpow2.f32 %v533_v20  ;;  %v525_v0 = vsub.f32 %v1676_v3, %v480_v29  ;;  %v518_v33 = vsub.f32 %v1683_v9, %v445_v25 }
 0x1a0   :  { %v535_v7 = vmul.f32 1.442695, %v518_v33  ;;  %v549_v34 = vmul.f32 1.442695, %v525_v0 }
 0x1a1   :  { %v485_v37 = vpop.permute.xlu1 %484  ;;  %v450_v47 = vpop.permute.xlu0 %449 }
 0x1a2   :  { %v526_v48 = vsub.f32 %v1702_v21, %v485_v37  ;;  %v519_v24 = vsub.f32 %v1713_v28, %v450_v47  ;;  %1424 = vpow2.f32 %v535_v7 }
 0x1a3   :  { %1426 = vpow2.f32 %v549_v34 }
 0x1a4   :  { %v551_v41 = vmul.f32 1.442695, %v526_v48  ;;  %v537_v58 = vmul.f32 1.442695, %v519_v24 }
 0x1a5   :  { %v455_v56 = vpop.permute.xlu1 %454  ;;  %v490_v1 = vpop.permute.xlu0 %489 }
 0x1a6   :  { %1428 = vpow2.f32 %v551_v41  ;;  %v520_v2 = vsub.f32 %v1734_v40, %v455_v56  ;;  %v527_v3 = vsub.f32 %v1743_v46, %v490_v1 }
 0x1a7   :  { %1430 = vpow2.f32 %v537_v58 }
 0x1a8   :  { %v1423_v9 = vpop.eup %1422  ;;  %v539_v8 = vmul.f32 1.442695, %v520_v2  ;;  %v553_v52 = vmul.f32 1.442695, %v527_v3 }
 0x1a9   :  { %597 = vadd.xlane.f32.xlu0 %v1423_v9  ;;  %v495_v59 = vpop.permute.xlu1 %494  ;;  %v460_v21 = vpop.permute.xlu0 %459 }
 0x1aa   :  { %1432 = vpow2.f32 %v539_v8  ;;  %v528_v28 = vsub.f32 %v1757_v55, %v495_v59  ;;  %v521_v18 = vsub.f32 %v1762_v62, %v460_v21 }
 0x1ab   :  { %1434 = vpow2.f32 %v553_v52 }
 0x1ac   :  { %v555_v19 = vmul.f32 1.442695, %v528_v28  ;;  %v541_v20 = vmul.f32 1.442695, %v521_v18  ;;  %v1425_v29 = vpop.eup %1424 }
 0x1ad   :  { %v465_v25 = vpop.permute.xlu1 %464  ;;  %v500_v40 = vpop.permute.xlu0 %499  ;;  %599 = vadd.xlane.f32.xlu1 %v1425_v29  ;;  %v774_v33 = vpack.c.bf16 %v1425_v29, %v1423_v9 }
 0x1ae   :  { %1436 = vpow2.f32 %v555_v19  ;;  %v522_v46 = vsub.f32 %v1773_v10, %v465_v25  ;;  %v529_v0 = vsub.f32 %v1779_v15, %v500_v40  ;;  %v1427_v7 = vpop.eup %1426 }
 0x1af   :  { %1438 = vpow2.f32 %v541_v20  ;;  %1356 = vmatprep.mubr.bf16.mxu0 %v774_v33 }
 0x1b0   :  { %v1429_v34 = vpop.eup %1428  ;;  %v543_v37 = vmul.f32 1.442695, %v522_v46  ;;  %v557_v62 = vmul.f32 1.442695, %v529_v0 }
 0x1b1   :  { %v1431_v55 = vpop.eup %1430  ;;  %v505_v47 = vpop.permute.xlu1 %504  ;;  %v778_v24 = vpack.c.bf16 %v1429_v34, %v1427_v7 }
 0x1b2   :  { %v470_v48 = vpop.permute.xlu0 %469  ;;  %1440 = vpow2.f32 %v543_v37  ;;  %v530_v41 = vsub.f32 %v1788_v26, %v505_v47  ;;  %601 = vadd.xlane.f32.xlu0 %v1431_v55  ;;  %v435_v47 = vmul.f32 1.442695, %v404_v50  ;;  %v565_v50 = vld [vmem:[#allocation3] sm:$0xff] }
 0x1b3   :  { %v523_v10 = vsub.f32 %v1790_v30, %v470_v48  ;;  %1364 = vmatprep.mubr.bf16.mxu1 %v778_v24  ;;  %1442 = vpow2.f32 %v557_v62  ;;  %v427_v62 = vmul.f32 1.442695, %v400_v32  ;;  %v581_v48 = vmul.f32 %v2049_v54, %v565_v50 }
 0x1b4   :  { %v1433_v58 = vpop.eup %1432  ;;  %v559_v15 = vmul.f32 1.442695, %v530_v41 }
 0x1b5   :  { %v545_v56 = vmul.f32 1.442695, %v523_v10  ;;  %v475_v1 = vpop.permute.xlu1 %474  ;;  %v775_v3 = vpack.c.bf16 %v1433_v58, %v1431_v55  ;;  %v1435_v52 = vpop.eup %1434 }
 0x1b6   :  { %v510_v2 = vpop.permute.xlu0 %509  ;;  %1444 = vpow2.f32 %v559_v15  ;;  %v524_v9 = vsub.f32 %v1820_v35, %v475_v1  ;;  %603 = vadd.xlane.f32.xlu0 %v1433_v58  ;;  %v566_v58 = vld [vmem:[#allocation3 + $0x8] sm:$0xff]  ;;  %v567_v1 = vld [vmem:[#allocation3 + $0x10] sm:$0xff] }
 0x1b7   :  { %v531_v8 = vsub.f32 %v1824_v36, %v510_v2  ;;  %1446 = vpow2.f32 %v545_v56  ;;  %1357 = vmatmul.mubr.bf16.vlgmr.msra.gmra.mrb[0].mxu0 %v775_v3  ;;  %v582_v15 = vmul.f32 %v2032_v44, %v566_v58  ;;  %v583_v3 = vmul.f32 %v2067_v13, %v567_v1 }
 0x1b8   :  { %v1437_v26 = vpop.eup %1436  ;;  %v547_v59 = vmul.f32 1.442695, %v524_v9 }
 0x1b9   :  { %v1439_v30 = vpop.eup %1438  ;;  %v561_v21 = vmul.f32 1.442695, %v531_v8  ;;  %v515_v28 = vpop.permute.xlu1 %514  ;;  %v779_v18 = vpack.c.bf16 %v1437_v26, %v1435_v52  ;;  %v568_v8 = vld [vmem:[#allocation3 + $0x18] sm:$0xff] }
 0x1ba   :  { %1448 = vpow2.f32 %v547_v59  ;;  %v532_v19 = vsub.f32 %v1828_v38, %v515_v28  ;;  %605 = vadd.xlane.f32.xlu1 %v1439_v30  ;;  %v2146_v4 = vpop.permute.xlu0 %685  ;;  %v584_v44 = vmul.f32 %v2077_v53, %v568_v8  ;;  %v569_v59 = vld [vmem:[#allocation3 + $0x20] sm:$0xff]  ;;  %v570_v28 = vld [vmem:[#allocation3 + $0x28] sm:$0xff] }
 0x1bb   :  { %1365 = vmatmul.mubr.bf16.vlgmr.msra.gmra.mrb[0].mxu1 %v779_v18  ;;  %1450 = vpow2.f32 %v561_v21  ;;  %v585_v13 = vmul.f32 %v2051_v57, %v569_v59  ;;  %v580_v59 = vld [vmem:[#allocation3 + $0x78] sm:$0xff] }
 0x1bc   :  { %v1441_v20 = vpop.eup %1440  ;;  %v563_v29 = vmul.f32 1.442695, %v532_v19 }
 0x1bd   :  { %607 = vadd.xlane.f32.xlu0 %v1441_v20  ;;  %v776_v35 = vpack.c.bf16 %v1441_v20, %v1439_v30  ;;  %v1443_v36 = vpop.eup %1442  ;;  %v2142_v43 = vpop.permute.xlu1 %680 }
 0x1be   :  { %1452 = vpow2.f32 %v563_v29  ;;  %v586_v29 = vmul.f32 %v2081_v60, %v570_v28 }
 0x1bf   :  { %1360 = vmatprep.mubr.bf16.mxu0 %v776_v35  ;;  %1454 = vpow2.f32 %v427_v62  ;;  %v574_v62 = vld [vmem:[#allocation3 + $0x48] sm:$0xff] }
 0x1c0   :  { %v1445_v25 = vpop.eup %1444 }
 0x1c1   :  { %v1447_v40 = vpop.eup %1446  ;;  %v780_v46 = vpack.c.bf16 %v1445_v25, %v1443_v36  ;;  %v2144_v49 = vpop.permute.xlu1 %690 }
 0x1c2   :  { %609 = vadd.xlane.f32.xlu1 %v1447_v40 }
 0x1c3   :  { %1368 = vmatprep.mubr.bf16.mxu1 %v780_v46 }
 0x1c4   :  { %v1449_v0 = vpop.eup %1448 }
 0x1c5   :  { %611 = vadd.xlane.f32.xlu0 %v1449_v0  ;;  %v777_v33 = vpack.c.bf16 %v1449_v0, %v1447_v40  ;;  %v1451_v38 = vpop.eup %1450  ;;  %v2148_v5 = vpop.permute.xlu1 %695  ;;  %v572_v40 = vld [vmem:[#allocation3 + $0x38] sm:$0xff]  ;;  %v573_v0 = vld [vmem:[#allocation3 + $0x40] sm:$0xff] }
 0x1c6   :  { %613 = vadd.xlane.f32.xlu1 %v1427_v7  ;;  %v431_v7 = vmul.f32 1.442695, %v402_v16  ;;  %v2150_v16 = vpop.permute.xlu0 %700 }
 0x1c7   :  { %1361 = vmatmul.mubr.bf16.gmra.mrb[4].mxu0 %v777_v33 }
 0x1c8   :  { %v1453_v37 = vpop.eup %1452  ;;  %1456 = vpow2.f32 %v431_v7 }
 0x1c9   :  { %615 = vadd.xlane.f32.xlu0 %v1429_v34  ;;  %v781_v55 = vpack.c.bf16 %v1453_v37, %v1451_v38  ;;  %v425_v34 = vmul.f32 1.442695, %v399_v14  ;;  %v2121_v22 = vpop.eup %1454  ;;  %v2152_v27 = vpop.permute.xlu1 %705 }
 0x1ca   :  { %617 = vadd.xlane.f32.xlu1 %v1435_v52  ;;  %v2154_v31 = vpop.permute.xlu0 %710 }
 0x1cb   :  { %1369 = vmatmul.mubr.bf16.gmra.mrb[4].mxu1 %v781_v55  ;;  %1458 = vpow2.f32 %v425_v34 }
 0x1cc   :  { %1460 = vpow2.f32 %v435_v47  ;;  %v575_v47 = vld [vmem:[#allocation3 + $0x50] sm:$0xff] }
 0x1cd   :  { %619 = vadd.xlane.f32.xlu0 %v1437_v26  ;;  %1462 = vpow2.f32 %v429_v11  ;;  %v2156_v63 = vpop.permute.xlu1 %715 }
 0x1ce   :  { %621 = vadd.xlane.f32.xlu1 %v1443_v36  ;;  %1464 = vpow2.f32 %v433_v61  ;;  %v2158_v42 = vpop.permute.xlu0 %720  ;;  %v571_v36 = vld [vmem:[#allocation3 + $0x30] sm:$0xff]  ;;  %v590_v61 = vmul.f32 %v2087_v51, %v574_v62 }
 0x1cf   :  { %v587_v57 = vmul.f32 %v2065_v12, %v571_v36 }
 0x1d1   :  { %623 = vadd.xlane.f32.xlu0 %v1445_v25  ;;  %v2161_v41 = vpop.permute.xlu1 %725 }
 0x1d2   :  { %625 = vadd.xlane.f32.xlu1 %v1451_v38  ;;  %v2127_v6 = vpop.eup %1456  ;;  %v588_v38 = vmul.f32 %v2084_v45, %v572_v40 }
 0x1d5   :  { %627 = vadd.xlane.f32.xlu0 %v1453_v37  ;;  %v2130_v14 = vpop.eup %1458  ;;  %v589_v37 = vmul.f32 %v2075_v17, %v573_v0 }
 0x1d6   :  { %v2132_v32 = vpop.eup %1460  ;;  %v591_v45 = vmul.f32 %v2130_v14, %v575_v47 }
 0x1d7   :  { %v2136_v23 = vpop.eup %1462 }
 0x1d8   :  { %v2139_v39 = vpop.eup %1464 }
 0x1e3   :  { %735 = vperm.xlu1 %1393, %v2121_v22  }
 0x1e7   :  { %745 = vperm.xlu1 %1393, %v2127_v6  }
 0x1eb   :  { %755 = vperm.xlu1 %1393, %v2132_v32   ;;  %730 = vperm.xlu0 %1392, %v2130_v14  }
 0x1ef   :  { %740 = vperm.xlu0 %1392, %v2136_v23  }
 0x1f3   :  { %750 = vperm.xlu0 %1392, %v2139_v39  }
 0x236   :  { %v598_v24 = vpop.xlane.xlu0 %597 }
 0x237   :  { %v629_v10 = vadd.f32 %v598_v24, %v581_v48  ;;  %v576_v48 = vld [vmem:[#allocation3 + $0x58] sm:$0xff] }
 0x239   :  { %646 = vst.msk [vmem:[#allocation3] sm:$0xff] %vm29_vm0, %v629_v10  ;;  %v577_v10 = vld [vmem:[#allocation3 + $0x60] sm:$0xff] }
 0x23a   :  { %v600_v56 = vpop.xlane.xlu1 %599  ;;  %v593_v51 = vmul.f32 %v2136_v23, %v577_v10 }
 0x23b   :  { %v630_v2 = vadd.f32 %v600_v56, %v582_v15  ;;  %v592_v56 = vmul.f32 %v2121_v22, %v576_v48 }
 0x23d   :  { %647 = vst.msk [vmem:[#allocation3 + $0x8] sm:$0xff] %vm29_vm0, %v630_v2  ;;  %v578_v2 = vld [vmem:[#allocation3 + $0x68] sm:$0xff] }
 0x23e   :  { %v594_v22 = vmul.f32 %v2127_v6, %v578_v2  ;;  %v596_v6 = vmul.f32 %v2132_v32, %v580_v59 }
 0x23f   :  { %v602_v9 = vpop.xlane.xlu0 %601 }
 0x240   :  { %v631_v52 = vadd.f32 %v602_v9, %v583_v3  ;;  %v2167_v54 = vld [vmem:[#allocation3] sm:$0xff]  ;;  %v579_v9 = vld [vmem:[#allocation3 + $0x70] sm:$0xff] }
 0x241   :  { %1225 = vrot.lane.b32.xlu0 %v2167_v54, %s1501_s29  ;;  %v595_v23 = vmul.f32 %v2139_v39, %v579_v9 }
 0x242   :  { %648 = vst.msk [vmem:[#allocation3 + $0x10] sm:$0xff] %vm29_vm0, %v631_v52 }
 0x243   :  { %v604_v26 = vpop.xlane.xlu0 %603 }
 0x244   :  { %v632_v30 = vadd.f32 %v604_v26, %v584_v44  ;;  %v1194_v21 = vld [vmem:[#allocation3 + $0x8] sm:$0xff] }
 0x245   :  { %1227 = vrot.lane.b32.xlu1 %v1194_v21, %s1501_s29  ;;  %1466 = vrcp.f32 %v1194_v21 }
 0x246   :  { %649 = vst.msk [vmem:[#allocation3 + $0x18] sm:$0xff] %vm29_vm0, %v632_v30  ;;  %1468 = vrcp.f32 %v2167_v54 }
 0x247   :  { %v606_v18 = vpop.xlane.xlu1 %605 }
 0x248   :  { %v633_v19 = vadd.f32 %v606_v18, %v585_v13 }
 0x249   :  { %v2176_v20 = vld [vmem:[#allocation3 + $0x10] sm:$0xff] }
 0x24a   :  { %650 = vst.msk [vmem:[#allocation3 + $0x20] sm:$0xff] %vm29_vm0, %v633_v19  ;;  %1229 = vrot.lane.b32.xlu0 %v2176_v20, %s1501_s29  ;;  %v608_v53 = vpop.xlane.xlu0 %607 }
 0x24b   :  { %v634_v35 = vadd.f32 %v608_v53, %v586_v29 }
 0x24d   :  { %651 = vst.msk [vmem:[#allocation3 + $0x28] sm:$0xff] %vm29_vm0, %v634_v35  ;;  %v1196_v25 = vld [vmem:[#allocation3 + $0x18] sm:$0xff] }
 0x24e   :  { %1231 = vrot.lane.b32.xlu1 %v1196_v25, %s1501_s29  ;;  %1470 = vrcp.f32 %v1196_v25 }
 0x24f   :  { %v610_v46 = vpop.xlane.xlu1 %609  ;;  %1472 = vrcp.f32 %v2176_v20  ;;  %v1467_v19 = vpop.eup %1466 }
 0x250   :  { %v635_v33 = vadd.f32 %v610_v46, %v587_v57  ;;  %v1469_v29 = vpop.eup %1468 }
 0x251   :  { %v1197_v60 = vld [vmem:[#allocation3 + $0x20] sm:$0xff] }
 0x252   :  { %652 = vst.msk [vmem:[#allocation3 + $0x30] sm:$0xff] %vm29_vm0, %v635_v33  ;;  %1233 = vrot.lane.b32.xlu0 %v1197_v60, %s1501_s29  ;;  %v612_v55 = vpop.xlane.xlu0 %611 }
 0x253   :  { %v614_v7 = vpop.xlane.xlu1 %613  ;;  %v636_v34 = vadd.f32 %v612_v55, %v588_v38 }
 0x254   :  { %v637_v11 = vadd.f32 %v614_v7, %v589_v37  ;;  %v1198_v12 = vld [vmem:[#allocation3 + $0x28] sm:$0xff] }
 0x255   :  { %653 = vst.msk [vmem:[#allocation3 + $0x38] sm:$0xff] %vm29_vm0, %v636_v34  ;;  %1235 = vrot.lane.b32.xlu1 %v1198_v12, %s1501_s29  ;;  %1474 = vrcp.f32 %v1198_v12  ;;  %v758_v12 = vmul.f32 0.0, %v2142_v43 }
 0x256   :  { %654 = vst.msk [vmem:[#allocation3 + $0x40] sm:$0xff] %vm29_vm0, %v637_v11  ;;  %v616_v50 = vpop.xlane.xlu0 %615  ;;  %1476 = vrcp.f32 %v1197_v60  ;;  %v760_v11 = vmul.f32 0.0, %v2144_v49 }
 0x257   :  { %v618_v17 = vpop.xlane.xlu1 %617  ;;  %v638_v24 = vadd.f32 %v616_v50, %v590_v61  ;;  %v761_v50 = vmul.f32 0.0, %v2148_v5 }
 0x258   :  { %v639_v58 = vadd.f32 %v618_v17, %v591_v45  ;;  %v1471_v20 = vpop.eup %1470 }
 0x259   :  { %v1000_v15 = vld [vmem:[#allocation3 + $0x30] sm:$0xff]  ;;  %655 = vst.msk [vmem:[#allocation3 + $0x48] sm:$0xff] %vm29_vm0, %v638_v24  ;;  %v1473_v53 = vpop.eup %1472  ;;  %v759_v24 = vmul.f32 0.0, %v2146_v4 }
 0x25a   :  { %656 = vst.msk [vmem:[#allocation3 + $0x50] sm:$0xff] %vm29_vm0, %v639_v58  ;;  %1237 = vrot.lane.b32.xlu0 %v1000_v15, %s1501_s29  ;;  %v620_v1 = vpop.xlane.xlu0 %619 }
 0x25b   :  { %v622_v14 = vpop.xlane.xlu1 %621  ;;  %v640_v3 = vadd.f32 %v620_v1, %v592_v56 }
 0x25c   :  { %v641_v8 = vadd.f32 %v622_v14, %v593_v51  ;;  %v1200_v52 = vld [vmem:[#allocation3 + $0x38] sm:$0xff] }
 0x25d   :  { %v1002_v44 = vld [vmem:[#allocation3 + $0x40] sm:$0xff]  ;;  %657 = vst.msk [vmem:[#allocation3 + $0x58] sm:$0xff] %vm29_vm0, %v640_v3  ;;  %1239 = vrot.lane.b32.xlu1 %v1200_v52, %s1501_s29  ;;  %1478 = vrcp.f32 %v1200_v52  ;;  %v764_v52 = vmul.f32 0.0, %v2154_v31 }
 0x25e   :  { %658 = vst.msk [vmem:[#allocation3 + $0x60] sm:$0xff] %vm29_vm0, %v641_v8  ;;  %1241 = vrot.lane.b32.xlu0 %v1002_v44, %s1501_s29  ;;  %v624_v26 = vpop.xlane.xlu0 %623  ;;  %1480 = vrcp.f32 %v1000_v15 }
 0x25f   :  { %v626_v30 = vpop.xlane.xlu1 %625  ;;  %v642_v54 = vadd.f32 %v624_v26, %v594_v22  ;;  %v1475_v35 = vpop.eup %1474  ;;  %v765_v26 = vmul.f32 0.0, %v2156_v63 }
 0x260   :  { %v1003_v21 = vld [vmem:[#allocation3 + $0x48] sm:$0xff]  ;;  %v643_v13 = vadd.f32 %v626_v30, %v595_v23  ;;  %v1477_v36 = vpop.eup %1476 }
 0x261   :  { %v1004_v28 = vld [vmem:[#allocation3 + $0x50] sm:$0xff]  ;;  %659 = vst.msk [vmem:[#allocation3 + $0x68] sm:$0xff] %vm29_vm0, %v642_v54  ;;  %1243 = vrot.lane.b32.xlu1 %v1003_v21, %s1501_s29  ;;  %1482 = vrcp.f32 %v1003_v21  ;;  %v763_v54 = vmul.f32 0.0, %v2152_v27 }
 0x262   :  { %660 = vst.msk [vmem:[#allocation3 + $0x70] sm:$0xff] %vm29_vm0, %v643_v13  ;;  %1245 = vrot.lane.b32.xlu0 %v1004_v28, %s1501_s29  ;;  %v628_v39 = vpop.xlane.xlu0 %627  ;;  %1484 = vrcp.f32 %v1002_v44  ;;  %v762_v44 = vmul.f32 0.0, %v2150_v16 }
 0x263   :  { %v644_v18 = vadd.f32 %v628_v39, %v596_v6  ;;  %v736_v10 = vpop.permute.xlu1 %735 }
 0x264   :  { %v1005_v32 = vld [vmem:[#allocation3 + $0x58] sm:$0xff]  ;;  %v769_v2 = vmul.f32 0.0, %v736_v10 }
 0x265   :  { %661 = vst.msk [vmem:[#allocation3 + $0x78] sm:$0xff] %vm29_vm0, %v644_v18  ;;  %1049 = vperm.xlu1 %1393, %v1467_v19   ;;  %1486 = vrcp.f32 %v1005_v32  ;;  %v1006_v40 = vld [vmem:[#allocation3 + $0x60] sm:$0xff]  ;;  %vm1273_vm0 = vcmask 15368  }
 0x266   :  { %1044 = vperm.xlu0 %1392, %v1469_v29   ;;  %1488 = vrcp.f32 %v1004_v28 }
 0x267   :  { %v1479_v57 = vpop.eup %1478  ;;  %v746_v28 = vpop.permute.xlu1 %745 }
 0x268   :  { %v1007_v25 = vld [vmem:[#allocation3 + $0x68] sm:$0xff]  ;;  %v1481_v46 = vpop.eup %1480 }
 0x269   :  { %1059 = vperm.xlu1 %1393, %v1471_v20   ;;  %1490 = vrcp.f32 %v1007_v25  ;;  %v1008_v60 = vld [vmem:[#allocation3 + $0x70] sm:$0xff] }
 0x26a   :  { %1054 = vperm.xlu0 %1392, %v1473_v53   ;;  %1492 = vrcp.f32 %v1006_v40  ;;  %v731_v61 = vpop.permute.xlu0 %730  ;;  %v771_v53 = vmul.f32 0.0, %v746_v28 }
 0x26b   :  { %v1483_v33 = vpop.eup %1482  ;;  %v768_v49 = vmul.f32 0.0, %v731_v61 }
 0x26c   :  { %v1009_v0 = vld [vmem:[#allocation3 + $0x78] sm:$0xff]  ;;  %v1485_v38 = vpop.eup %1484 }
 0x26d   :  { %1069 = vperm.xlu1 %1393, %v1475_v35   ;;  %1494 = vrcp.f32 %v1009_v0 }
 0x26e   :  { %1064 = vperm.xlu0 %1392, %v1477_v36   ;;  %1496 = vrcp.f32 %v1008_v60  ;;  %v741_v8 = vpop.permute.xlu0 %740 }
 0x26f   :  { %v1487_v37 = vpop.eup %1486  ;;  %v770_v19 = vmul.f32 0.0, %v741_v8 }
 0x270   :  { %v1489_v55 = vpop.eup %1488 }
 0x271   :  { %1079 = vperm.xlu1 %1393, %v1479_v57  }
 0x272   :  { %1074 = vperm.xlu0 %1392, %v1481_v46   ;;  %v751_v22 = vpop.permute.xlu0 %750 }
 0x273   :  { %v1491_v62 = vpop.eup %1490  ;;  %v772_v6 = vmul.f32 0.0, %v751_v22 }
 0x274   :  { %v1493_v7 = vpop.eup %1492 }
 0x275   :  { %1089 = vperm.xlu1 %1393, %v1483_v33  }
 0x276   :  { %1084 = vperm.xlu0 %1392, %v1485_v38  }
 0x277   :  { %v1495_v34 = vpop.eup %1494 }
 0x278   :  { %v1497_v47 = vpop.eup %1496 }
 0x279   :  { %1099 = vperm.xlu1 %1393, %v1487_v37  }
 0x27a   :  { %1094 = vperm.xlu0 %1392, %v1489_v55  }
 0x27d   :  { %1109 = vperm.xlu1 %1393, %v1491_v62  }
 0x27e   :  { %1104 = vperm.xlu0 %1392, %v1493_v7   ;;  %v2301_v7 = vld [vmem:[%s2408_s4] ss:$0 sm:$0xff] }
 0x281   :  { %1119 = vperm.xlu1 %1393, %v1495_v34  }
 0x282   :  { %1114 = vperm.xlu0 %1392, %v1497_v47  }
 0x285   :  { %1247 = vrot.lane.b32.xlu1 %v1005_v32, %s1501_s29 }
 0x286   :  { %1249 = vrot.lane.b32.xlu0 %v1006_v40, %s1501_s29 }
 0x289   :  { %1251 = vrot.lane.b32.xlu1 %v1007_v25, %s1501_s29  ;;  %v2252_v25 = vpop.permute.xlu1 %755 }
 0x28a   :  { %1253 = vrot.lane.b32.xlu0 %v1008_v60, %s1501_s29  ;;  %v1358_v45 = vpop.f32.mrb[0].mxu0 }
 0x28b   :  { %v2220_v48 = vadd.f32 %v1358_v45, %v760_v11  ;;  %v880_v17 = vpop.f32.mrb[1].mxu0 }
 0x28c   :  { %v2223_v58 = vadd.f32 %v880_v17, %v758_v12  ;;  %v1359_v15 = vpop.f32.mrb[2].mxu0 }
 0x28d   :  { %v2225_v56 = vadd.f32 %v1359_v15, %v761_v50  ;;  %v883_v51 = vpop.f32.mrb[3].mxu0  ;;  %1255 = vrot.lane.b32.xlu1 %v1009_v0, %s1501_s29 }
 0x28e   :  { %v944_v43 = vadd.f32 %v883_v51, %v759_v24  ;;  %v1366_v1 = vpop.f32.mrb[0].mxu1 }
 0x28f   :  { %v2228_v14 = vadd.f32 %v1366_v1, %v768_v49  ;;  %v2230_v5 = vpop.f32.mrb[1].mxu1 }
 0x290   :  { %v1367_v3 = vpop.f32.mrb[2].mxu1 }
 0x291   :  { %v2232_v9 = vadd.f32 %v1367_v3, %v769_v2  ;;  %v2234_v4 = vpop.f32.mrb[3].mxu1  ;;  %v767_v3 = vmul.f32 0.0, %v2161_v41 }
 0x29a   :  { %v1362_v23 = vpop.f32.mrb[4].mxu0 }
 0x29b   :  { %v2239_v59 = vadd.f32 %v1362_v23, %v764_v52  ;;  %v896_v30 = vpop.f32.mrb[5].mxu0  ;;  %v952_v23 = vadd.f32 %v2234_v4, %v767_v3 }
 0x29c   :  { %v947_v21 = vadd.f32 %v896_v30, %v762_v44  ;;  %v1363_v13 = vpop.f32.mrb[6].mxu0  ;;  %v766_v44 = vmul.f32 0.0, %v2158_v42 }
 0x29d   :  { %v2242_v39 = vadd.f32 %v1363_v13, %v765_v26  ;;  %v899_v18 = vpop.f32.mrb[7].mxu0 }
 0x29e   :  { %v948_v31 = vadd.f32 %v899_v18, %v763_v54  ;;  %v1370_v29 = vpop.f32.mrb[4].mxu1  ;;  %v951_v41 = vadd.f32 %v2230_v5, %v766_v44 }
 0x29f   :  { %v2244_v16 = vadd.f32 %v1370_v29, %v772_v6  ;;  %v928_v20 = vpop.f32.mrb[5].mxu1  ;;  %v773_v29 = vmul.f32 0.0, %v2252_v25 }
 0x2a0   :  { %v2246_v63 = vadd.f32 %v928_v20, %v770_v19  ;;  %v2248_v32 = vpop.f32.mrb[6].mxu1 }
 0x2a1   :  { %v931_v35 = vpop.f32.mrb[7].mxu1 }
 0x2a2   :  { %v2250_v27 = vadd.f32 %v931_v35, %v771_v53  ;;  %v958_v53 = vadd.f32 %v2248_v32, %v773_v29 }
 0x2b3   :  { %v1226_v36 = vpop.permute.xlu0 %1225 }
 0x2b4   :  { %1274 = vst.msk [vmem:[%s2407_s6] sm:$0xff] %vm1273_vm0, %v1226_v36 }
 0x2b7   :  { %v1228_v57 = vpop.permute.xlu1 %1227 }
 0x2b8   :  { %1275 = vst.msk [vmem:[%s2407_s6 + $0x8] sm:$0xff] %vm1273_vm0, %v1228_v57 }
 0x2bc   :  { %v1230_v40 = vpop.permute.xlu0 %1229 }
 0x2bd   :  { %1276 = vst.msk [vmem:[%s2407_s6 + $0x10] sm:$0xff] %vm1273_vm0, %v1230_v40 }
 0x2c0   :  { %v1232_v46 = vpop.permute.xlu1 %1231 }
 0x2c1   :  { %1277 = vst.msk [vmem:[%s2407_s6 + $0x18] sm:$0xff] %vm1273_vm0, %v1232_v46 }
 0x2c4   :  { %v1234_v0 = vpop.permute.xlu0 %1233 }
 0x2c5   :  { %1278 = vst.msk [vmem:[%s2407_s6 + $0x20] sm:$0xff] %vm1273_vm0, %v1234_v0 }
 0x2c7   :  { %v1236_v33 = vpop.permute.xlu1 %1235 }
 0x2c8   :  { %1279 = vst.msk [vmem:[%s2407_s6 + $0x28] sm:$0xff] %vm1273_vm0, %v1236_v33 }
 0x2cc   :  { %v1238_v60 = vpop.permute.xlu0 %1237 }
 0x2cd   :  { %1280 = vst.msk [vmem:[%s2407_s6 + $0x30] sm:$0xff] %vm1273_vm0, %v1238_v60 }
 0x2cf   :  { %v1240_v38 = vpop.permute.xlu1 %1239 }
 0x2d0   :  { %1281 = vst.msk [vmem:[%s2407_s6 + $0x38] sm:$0xff] %vm1273_vm0, %v1240_v38  ;;  %v1242_v37 = vpop.permute.xlu0 %1241 }
 0x2d1   :  { %1282 = vst.msk [vmem:[%s2407_s6 + $0x40] sm:$0xff] %vm1273_vm0, %v1242_v37 }
 0x2d3   :  { %v1244_v55 = vpop.permute.xlu1 %1243 }
 0x2d4   :  { %1283 = vst.msk [vmem:[%s2407_s6 + $0x48] sm:$0xff] %vm1273_vm0, %v1244_v55  ;;  %v1246_v62 = vpop.permute.xlu0 %1245 }
 0x2d5   :  { %1284 = vst.msk [vmem:[%s2407_s6 + $0x50] sm:$0xff] %vm1273_vm0, %v1246_v62 }
 0x2e4   :  { %v1050_v34 = vpop.permute.xlu1 %1049 }
 0x2e5   :  { %v1123_v47 = vmul.f32 %v1050_v34, %v944_v43  ;;  %v1045_v11 = vpop.permute.xlu0 %1044 }
 0x2e6   :  { %v1122_v12 = vmul.f32 %v1045_v11, %v2223_v58 }
 0x2e7   :  { %v1146_v61 = vadd.f32 %v2301_v7, %v1123_v47 }
 0x2e8   :  { %v1145_v45 = vadd.f32 %v2301_v7, %v1122_v12  ;;  %v1060_v50 = vpop.permute.xlu1 %1059 }
 0x2e9   :  { %1291 = vst [vmem:[%s2409_s5 + $0x8] sm:$0xff] %v1146_v61  ;;  %v1125_v17 = vmul.f32 %v1060_v50, %v2225_v56  ;;  %v1055_v24 = vpop.permute.xlu0 %1054 }
 0x2ea   :  { %1290 = vst [vmem:[%s2409_s5] sm:$0xff] %v1145_v45  ;;  %v1124_v10 = vmul.f32 %v1055_v24, %v2220_v48 }
 0x2eb   :  { %v1148_v58 = vadd.f32 %v2301_v7, %v1125_v17 }
 0x2ec   :  { %v1147_v15 = vadd.f32 %v2301_v7, %v1124_v10  ;;  %v1070_v49 = vpop.permute.xlu1 %1069 }
 0x2ed   :  { %1293 = vst [vmem:[%s2409_s5 + $0x18] sm:$0xff] %v1148_v58  ;;  %v1127_v51 = vmul.f32 %v1070_v49, %v948_v31  ;;  %v1065_v43 = vpop.permute.xlu0 %1064 }
 0x2ee   :  { %1292 = vst [vmem:[%s2409_s5 + $0x10] sm:$0xff] %v1147_v15  ;;  %v1126_v56 = vmul.f32 %v1065_v43, %v947_v21 }
 0x2ef   :  { %v1150_v1 = vadd.f32 %v2301_v7, %v1127_v51 }
 0x2f0   :  { %v1149_v48 = vadd.f32 %v2301_v7, %v1126_v56  ;;  %v1080_v2 = vpop.permute.xlu1 %1079 }
 0x2f1   :  { %1295 = vst [vmem:[%s2409_s5 + $0x28] sm:$0xff] %v1150_v1  ;;  %v1129_v8 = vmul.f32 %v1080_v2, %v2242_v39  ;;  %v1075_v52 = vpop.permute.xlu0 %1074 }
 0x2f2   :  { %1294 = vst [vmem:[%s2409_s5 + $0x20] sm:$0xff] %v1149_v48  ;;  %v1128_v22 = vmul.f32 %v1075_v52, %v2239_v59 }
 0x2f3   :  { %v1152_v26 = vadd.f32 %v2301_v7, %v1129_v8 }
 0x2f4   :  { %v1151_v30 = vadd.f32 %v2301_v7, %v1128_v22  ;;  %v1090_v54 = vpop.permute.xlu1 %1089 }
 0x2f5   :  { %1297 = vst [vmem:[%s2409_s5 + $0x38] sm:$0xff] %v1152_v26  ;;  %v1131_v42 = vmul.f32 %v1090_v54, %v952_v23  ;;  %v1085_v21 = vpop.permute.xlu0 %1084 }
 0x2f6   :  { %1296 = vst [vmem:[%s2409_s5 + $0x30] sm:$0xff] %v1151_v30  ;;  %v1130_v59 = vmul.f32 %v1085_v21, %v951_v41 }
 0x2f7   :  { %v1154_v4 = vadd.f32 %v2301_v7, %v1131_v42 }
 0x2f8   :  { %v1153_v13 = vadd.f32 %v2301_v7, %v1130_v59  ;;  %v1100_v28 = vpop.permute.xlu1 %1099 }
 0x2f9   :  { %1299 = vst [vmem:[%s2409_s5 + $0x48] sm:$0xff] %v1154_v4  ;;  %v1133_v5 = vmul.f32 %v1100_v28, %v2232_v9  ;;  %v1095_v6 = vpop.permute.xlu0 %1094 }
 0x2fa   :  { %1298 = vst [vmem:[%s2409_s5 + $0x40] sm:$0xff] %v1153_v13  ;;  %v1132_v39 = vmul.f32 %v1095_v6, %v2228_v14 }
 0x2fb   :  { %v1156_v18 = vadd.f32 %v2301_v7, %v1133_v5 }
 0x2fc   :  { %v1155_v19 = vadd.f32 %v2301_v7, %v1132_v39  ;;  %v1110_v31 = vpop.permute.xlu1 %1109 }
 0x2fd   :  { %1301 = vst [vmem:[%s2409_s5 + $0x58] sm:$0xff] %v1156_v18  ;;  %v1135_v9 = vmul.f32 %v1110_v31, %v2250_v27  ;;  %v1105_v20 = vpop.permute.xlu0 %1104 }
 0x2fe   :  { %1300 = vst [vmem:[%s2409_s5 + $0x50] sm:$0xff] %v1155_v19  ;;  %v1134_v14 = vmul.f32 %v1105_v20, %v2246_v63 }
 0x2ff   :  { %v1158_v35 = vadd.f32 %v2301_v7, %v1135_v9 }
 0x300   :  { %v1157_v36 = vadd.f32 %v2301_v7, %v1134_v14  ;;  %v1120_v25 = vpop.permute.xlu1 %1119 }
 0x301   :  { %1303 = vst [vmem:[%s2409_s5 + $0x68] sm:$0xff] %v1158_v35  ;;  %v1137_v57 = vmul.f32 %v1120_v25, %v958_v53  ;;  %v1115_v27 = vpop.permute.xlu0 %1114 }
 0x302   :  { %1302 = vst [vmem:[%s2409_s5 + $0x60] sm:$0xff] %v1157_v36  ;;  %v1136_v40 = vmul.f32 %v1115_v27, %v2244_v16 }
 0x303   :  { %v1160_v63 = vadd.f32 %v2301_v7, %v1137_v57 }
 0x304   :  { %v1159_v32 = vadd.f32 %v2301_v7, %v1136_v40  ;;  %v1248_v46 = vpop.permute.xlu1 %1247 }
 0x305   :  { %1305 = vst [vmem:[%s2409_s5 + $0x78] sm:$0xff] %v1160_v63  ;;  %1285 = vst.msk [vmem:[%s2407_s6 + $0x58] sm:$0xff] %vm1273_vm0, %v1248_v46  ;;  %v1250_v0 = vpop.permute.xlu0 %1249 }
 0x306   :  { %1304 = vst [vmem:[%s2409_s5 + $0x70] sm:$0xff] %v1159_v32  ;;  %1286 = vst.msk [vmem:[%s2407_s6 + $0x60] sm:$0xff] %vm1273_vm0, %v1250_v0 }
 0x308   :  { %v1252_v16 = vpop.permute.xlu1 %1251 }
 0x309   :  { %1287 = vst.msk [vmem:[%s2407_s6 + $0x68] sm:$0xff] %vm1273_vm0, %v1252_v16  ;;  %v1254_v33 = vpop.permute.xlu0 %1253 }
 0x30a   :  { %1288 = vst.msk [vmem:[%s2407_s6 + $0x70] sm:$0xff] %vm1273_vm0, %v1254_v33 }
 0x30c   :  { %v1256_v60 = vpop.permute.xlu1 %1255 }
 0x30d   :  { %1289 = vst.msk [vmem:[%s2407_s6 + $0x78] sm:$0xff] %vm1273_vm0, %v1256_v60 }

// kernel: gat_model_forward.5
= control target key start
LH: loop header
LB: loop body
LE: loop exit
PB: predicated region body
PF: predicated region fallthrough
CT: control target
= control target key end

     0   :  { %v2199_v0 = vmov 0   ;;  %vm36_vm0 = vcmask 7168   ;;  %v2200_v17 = vmov -1e+30   ;;  %s3325_s0 = inlined_call_operand.vmem [shape: f32[128,1], index: 0, kind: input, shape index: {}]   ;;  %s3326_s2 = inlined_call_operand.vmem [shape: s8[128,128], index: 2, kind: input, shape index: {}]   ;;  %s3327_s1 = inlined_call_operand.vmem [shape: f32[1,128], index: 1, kind: input, shape index: {}]   ;;  %s3328_s3 = inlined_call_operand.vmem [shape: bf16[128,128], index: 3, kind: input, shape index: {}]   ;;  %s3329_s9 = inlined_call_operand.vmem [shape: f32[128,2], index: 9, kind: output, shape index: {2}]   ;;  %s3330_s5 = inlined_call_operand.vmem [shape: bf16[128,128], index: 5, kind: input, shape index: {}]   ;;  %s3331_s6 = inlined_call_operand.vmem [shape: f32[128,2], index: 6, kind: input, shape index: {}]   ;;  %s3332_s4 = inlined_call_operand.vmem [shape: f32[1,128], index: 4, kind: input, shape index: {}]   ;;  %s3333_s7 = inlined_call_operand.vmem [shape: bf16[128,128], index: 7, kind: output, shape index: {0}]   ;;  %s3334_s8 = inlined_call_operand.vmem [shape: f32[128,2], index: 8, kind: output, shape index: {1}]  }
   0x1   :  { %2086 = vset.pattern.permute.xlu1 %v2199_v0  ;;  %2085 = vset.pattern.permute.xlu0 %v2199_v0  ;;  %v87_v1 = vld [vmem:[%s3325_s0 + $0x10] sm:$0xff]  ;;  %v85_v2 = vld [vmem:[%s3325_s0] sm:$0xff]  ;;  %v88_v3 = vld [vmem:[%s3325_s0 + $0x18] sm:$0xff]  ;;  %37 = vst.msk [vmem:[#allocation2] sm:$0xff] %vm36_vm0, %v2200_v17 }
   0x2   :  { %114 = vperm.xlu1 %2086, %v87_v1   ;;  %104 = vperm.xlu0 %2085, %v85_v2   ;;  %v86_v4 = vld [vmem:[%s3325_s0 + $0x8] sm:$0xff]  ;;  %v89_v6 = vld [vmem:[%s3325_s0 + $0x20] sm:$0xff]  ;;  %v92_v7 = vld [vmem:[%s3325_s0 + $0x38] sm:$0xff]  ;;  %38 = vst.msk [vmem:[#allocation2 + $0x8] sm:$0xff] %vm36_vm0, %v2200_v17 }
   0x3   :  { %v90_v5 = vld [vmem:[%s3325_s0 + $0x28] sm:$0xff]  ;;  %v91_v8 = vld [vmem:[%s3325_s0 + $0x30] sm:$0xff]  ;;  %v93_v10 = vld [vmem:[%s3325_s0 + $0x40] sm:$0xff]  ;;  %39 = vst.msk [vmem:[#allocation2 + $0x10] sm:$0xff] %vm36_vm0, %v2200_v17 }
   0x4   :  { %v94_v9 = vld [vmem:[%s3325_s0 + $0x48] sm:$0xff]  ;;  %v96_v11 = vld [vmem:[%s3325_s0 + $0x58] sm:$0xff]  ;;  %v95_v12 = vld [vmem:[%s3325_s0 + $0x50] sm:$0xff]  ;;  %40 = vst.msk [vmem:[#allocation2 + $0x18] sm:$0xff] %vm36_vm0, %v2200_v17 }
   0x5   :  { %v98_v13 = vld [vmem:[%s3325_s0 + $0x68] sm:$0xff]  ;;  %v97_v14 = vld [vmem:[%s3325_s0 + $0x60] sm:$0xff]  ;;  %v100_v15 = vld [vmem:[%s3325_s0 + $0x78] sm:$0xff]  ;;  %41 = vst.msk [vmem:[#allocation2 + $0x20] sm:$0xff] %vm36_vm0, %v2200_v17 }
   0x6   :  { %119 = vperm.xlu1 %2086, %v88_v3   ;;  %109 = vperm.xlu0 %2085, %v86_v4   ;;  %v99_v16 = vld [vmem:[%s3325_s0 + $0x70] sm:$0xff]  ;;  %42 = vst.msk [vmem:[#allocation2 + $0x28] sm:$0xff] %vm36_vm0, %v2200_v17  ;;  %43 = vst.msk [vmem:[#allocation2 + $0x30] sm:$0xff] %vm36_vm0, %v2200_v17  ;;  %v236_v18 = vld [vmem:[%s3326_s2] sm:$0x3] }
   0x7   :  { %44 = vst.msk [vmem:[#allocation2 + $0x38] sm:$0xff] %vm36_vm0, %v2200_v17  ;;  %45 = vst.msk [vmem:[#allocation2 + $0x40] sm:$0xff] %vm36_vm0, %v2200_v17  ;;  %v238_v19 = vld [vmem:[%s3326_s2 + $0x4] sm:$0x3]  ;;  %v237_v20 = vld [vmem:[%s3326_s2 + $0x2] sm:$0x3]  ;;  %vm252_vm1 = vnez %v236_v18 }
   0x8   :  { %46 = vst.msk [vmem:[#allocation2 + $0x48] sm:$0xff] %vm36_vm0, %v2200_v17  ;;  %47 = vst.msk [vmem:[#allocation2 + $0x50] sm:$0xff] %vm36_vm0, %v2200_v17  ;;  %v239_v21 = vld [vmem:[%s3326_s2 + $0x6] sm:$0x3]  ;;  %vm254_vm2 = vnez %v238_v19  ;;  %vm253_vm3 = vnez %v237_v20  ;;  %v268_v22 = vsel %vm252_vm1, 16843009, %v2199_v0 }
   0x9   :  { %48 = vst.msk [vmem:[#allocation2 + $0x58] sm:$0xff] %vm36_vm0, %v2200_v17  ;;  %49 = vst.msk [vmem:[#allocation2 + $0x60] sm:$0xff] %vm36_vm0, %v2200_v17  ;;  %vm255_vm4 = vnez %v239_v21  ;;  %v270_v23 = vsel %vm254_vm2, 16843009, %v2199_v0  ;;  %v269_v24 = vsel %vm253_vm3, 16843009, %v2199_v0  ;;  %v284_v27 = vunpack.c.0.s8 %v268_v22 }
   0xa   :  { %129 = vperm.xlu1 %2086, %v90_v5   ;;  %124 = vperm.xlu0 %2085, %v89_v6   ;;  %50 = vst.msk [vmem:[#allocation2 + $0x68] sm:$0xff] %vm36_vm0, %v2200_v17  ;;  %51 = vst.msk [vmem:[#allocation2 + $0x70] sm:$0xff] %vm36_vm0, %v2200_v17  ;;  %v2337_v25 = vld [vmem:[%s3327_s1] ss:$0 sm:$0xff]  ;;  %v240_v26 = vld [vmem:[%s3326_s2 + $0x8] sm:$0x3]  ;;  %v286_v31 = vunpack.c.0.s8 %v270_v23  ;;  %v285_v32 = vunpack.c.0.s8 %v269_v24 }
   0xb   :  { %52 = vst.msk [vmem:[#allocation2 + $0x78] sm:$0xff] %vm36_vm0, %v2200_v17  ;;  %v271_v28 = vsel %vm255_vm4, 16843009, %v2199_v0  ;;  %v241_v33 = vld [vmem:[%s3326_s2 + $0xa] sm:$0x3]  ;;  %vm256_vm5 = vnez %v240_v26  ;;  %vm2354_vm6 = vcmp.ne.s32.totalorder %v284_v27, 0 }
   0xc   :  { %v242_v36 = vld [vmem:[%s3326_s2 + $0xc] sm:$0x3]  ;;  %v287_v37 = vunpack.c.0.s8 %v271_v28  ;;  %v243_v38 = vld [vmem:[%s3326_s2 + $0xe] sm:$0x3]  ;;  %vm257_vm7 = vnez %v241_v33  ;;  %vm2358_vm8 = vcmp.ne.s32.totalorder %v286_v31, 0  ;;  %vm2362_vm9 = vcmp.ne.s32.totalorder %v285_v32, 0 }
   0xd   :  { %v272_v46 = vsel %vm256_vm5, 16843009, %v2199_v0  ;;  %vm258_vm10 = vnez %v242_v36  ;;  %vm259_vm11 = vnez %v243_v38  ;;  %v273_v51 = vsel %vm257_vm7, 16843009, %v2199_v0  ;;  %v244_v52 = vld [vmem:[%s3326_s2 + $0x10] sm:$0x3] }
   0xe   :  { %139 = vperm.xlu1 %2086, %v92_v7   ;;  %134 = vperm.xlu0 %2085, %v91_v8   ;;  %v245_v53 = vld [vmem:[%s3326_s2 + $0x12] sm:$0x3]  ;;  %vm2381_vm12 = vcmp.ne.s32.totalorder %v287_v37, 0  ;;  %v288_v60 = vunpack.c.0.s8 %v272_v46  ;;  %v274_v61 = vsel %vm258_vm10, 16843009, %v2199_v0  ;;  %vm260_vm13 = vnez %v244_v52 }
   0xf   :  { %v275_v62 = vsel %vm259_vm11, 16843009, %v2199_v0  ;;  %v289_v5 = vunpack.c.0.s8 %v273_v51  ;;  %vm261_vm14 = vnez %v245_v53  ;;  %v246_v6 = vld [vmem:[%s3326_s2 + $0x14] sm:$0x3]  ;;  %v248_v24 = vld [vmem:[%s3326_s2 + $0x18] sm:$0x3] }
  0x10   :  { %vm2403_vm15 = vcmp.ne.s32.totalorder %v288_v60, 0  ;;  %v277_v20 = vsel %vm261_vm14, 16843009, %v2199_v0  ;;  %vm262_vm2 = vnez %v246_v6  ;;  %v251_v59 = vld [vmem:[%s3326_s2 + $0x1e] sm:$0x3] }
  0x11   :  { %vm2420_vm1 = vcmp.ne.s32.totalorder %v289_v5, 0  ;;  %v278_v38 = vsel %vm262_vm2, 16843009, %v2199_v0 }
  0x12   :  { %149 = vperm.xlu1 %2086, %v94_v9   ;;  %144 = vperm.xlu0 %2085, %v93_v10  }
  0x16   :  { %159 = vperm.xlu1 %2086, %v96_v11   ;;  %154 = vperm.xlu0 %2085, %v95_v12  }
  0x1a   :  { %169 = vperm.xlu1 %2086, %v98_v13   ;;  %164 = vperm.xlu0 %2085, %v97_v14   ;;  %v290_v13 = vunpack.c.0.s8 %v274_v61  ;;  %v291_v14 = vunpack.c.0.s8 %v275_v62 }
  0x1c   :  { %vm2433_vm4 = vcmp.ne.s32.totalorder %v290_v13, 0  ;;  %vm2437_vm5 = vcmp.ne.s32.totalorder %v291_v14, 0 }
  0x1e   :  { %179 = vperm.xlu1 %2086, %v100_v15   ;;  %174 = vperm.xlu0 %2085, %v99_v16   ;;  %v276_v15 = vsel %vm260_vm13, 16843009, %v2199_v0  ;;  %v247_v16 = vld [vmem:[%s3326_s2 + $0x16] sm:$0x3]  ;;  %vm267_vm13 = vnez %v251_v59 }
  0x1f   :  { %vm263_vm3 = vnez %v247_v16  ;;  %v292_v33 = vunpack.c.0.s8 %v276_v15 }
  0x21   :  { %vm308_vm7 = vcmp.ne.s32.totalorder %v292_v33, 0 }
  0x81   :  { %v115_v29 = vpop.permute.xlu1 %114  ;;  %v105_v30 = vpop.permute.xlu0 %104 }
  0x82   :  { %v190_v34 = vadd.f32 %v2337_v25, %v115_v29  ;;  %v188_v35 = vadd.f32 %v2337_v25, %v105_v30 }
  0x84   :  { %v206_v39 = vmul.f32 0.2, %v190_v34  ;;  %v204_v40 = vmul.f32 0.2, %v188_v35 }
  0x85   :  { %v120_v42 = vpop.permute.xlu1 %119  ;;  %v110_v43 = vpop.permute.xlu0 %109 }
  0x86   :  { %v191_v47 = vadd.f32 %v2337_v25, %v120_v42  ;;  %v189_v48 = vadd.f32 %v2337_v25, %v110_v43  ;;  %v220_v49 = vmax.f32 %v188_v35, %v204_v40  ;;  %v222_v50 = vmax.f32 %v190_v34, %v206_v39  ;;  %v249_v39 = vld [vmem:[%s3326_s2 + $0x1a] sm:$0x3]  ;;  %v250_v43 = vld [vmem:[%s3326_s2 + $0x1c] sm:$0x3] }
  0x87   :  { %v293_v34 = vunpack.c.0.s8 %v277_v20  ;;  %v279_v42 = vsel %vm263_vm3, 16843009, %v2199_v0  ;;  %vm266_vm10 = vnez %v250_v43  ;;  %vm1643_vm3 = vcmask 15360  }
  0x88   :  { %v207_v54 = vmul.f32 0.2, %v191_v47  ;;  %v205_v55 = vmul.f32 0.2, %v189_v48  ;;  %v2378_v56 = vsel %vm2354_vm6, %v220_v49, -1e+30  ;;  %vm264_vm6 = vnez %v248_v24 }
  0x89   :  { %v130_v57 = vpop.permute.xlu1 %129  ;;  %348 = vmax.xlane.f32.xlu0 %v2378_v56  ;;  %v125_v58 = vpop.permute.xlu0 %124  ;;  %v2392_v3 = vsel %vm2358_vm8, %v222_v50, -1e+30  ;;  %vm2463_vm8 = vcmp.ne.s32.totalorder %v293_v34, 0  ;;  %v294_v50 = vunpack.c.0.s8 %v278_v38  ;;  %v283_v24 = vsel %vm267_vm13, 16843009, %v2199_v0  ;;  %v2089_v49 = vld [vmem:[%s3328_s3 + $0x10] sm:$0xff]  }
  0x8a   :  { %v193_v63 = vadd.f32 %v2337_v25, %v130_v57  ;;  %v192_v1 = vadd.f32 %v2337_v25, %v125_v58  ;;  %v221_v2 = vmax.f32 %v189_v48, %v205_v55  ;;  %v223_v4 = vmax.f32 %v191_v47, %v207_v54 }
  0x8b   :  { %v280_v54 = vsel %vm264_vm6, 16843009, %v2199_v0  ;;  %v295_v58 = vunpack.c.0.s8 %v279_v42  ;;  %vm310_vm11 = vcmp.ne.s32.totalorder %v294_v50, 0  ;;  %v2201_v34 = vmov 0.0   ;;  %v2553_v42 = vld [vmem:[#allocation2] sm:$0xff] }
  0x8c   :  { %v209_v7 = vmul.f32 0.2, %v193_v63  ;;  %v208_v8 = vmul.f32 0.2, %v192_v1  ;;  %v2399_v9 = vsel %vm2362_vm9, %v221_v2, -1e+30  ;;  %vm265_vm9 = vnez %v249_v39 }
  0x8d   :  { %v140_v10 = vpop.permute.xlu1 %139  ;;  %352 = vmax.xlane.f32.xlu0 %v2392_v3  ;;  %350 = vmax.xlane.f32.xlu1 %v2399_v9  ;;  %v135_v11 = vpop.permute.xlu0 %134  ;;  %v2418_v21 = vsel %vm2381_vm12, %v223_v4, -1e+30  ;;  %v296_v2 = vunpack.c.0.s8 %v280_v54  ;;  %v281_v4 = vsel %vm265_vm9, 16843009, %v2199_v0  ;;  %vm2491_vm12 = vcmp.ne.s32.totalorder %v295_v58, 0  ;;  %53 = vst.msk [vmem:[#allocation3] sm:$0xff] %vm36_vm0, %v2201_v34 }
  0x8e   :  { %v195_v17 = vadd.f32 %v2337_v25, %v140_v10  ;;  %v194_v18 = vadd.f32 %v2337_v25, %v135_v11  ;;  %v224_v19 = vmax.f32 %v192_v1, %v208_v8  ;;  %v225_v22 = vmax.f32 %v193_v63, %v209_v7  ;;  %54 = vst.msk [vmem:[#allocation3 + $0x8] sm:$0xff] %vm36_vm0, %v2201_v34  ;;  %v2087_v39 = vld [vmem:[%s3328_s3] sm:$0xff]  }
  0x8f   :  { %v282_v8 = vsel %vm266_vm10, 16843009, %v2199_v0  ;;  %vm312_vm14 = vcmp.ne.s32.totalorder %v296_v2, 0  ;;  %v299_v0 = vunpack.c.0.s8 %v283_v24  ;;  %55 = vst.msk [vmem:[#allocation3 + $0x10] sm:$0xff] %vm36_vm0, %v2201_v34  ;;  %56 = vst.msk [vmem:[#allocation3 + $0x18] sm:$0xff] %vm36_vm0, %v2201_v34  ;;  %1913 = vmatprep.subr.bf16.mxu0 %v2087_v39  ;;  %v2576_v54 = vld [vmem:[#allocation2 + $0x20] sm:$0xff] }
  0x90   :  { %v211_v26 = vmul.f32 0.2, %v195_v17  ;;  %v210_v27 = vmul.f32 0.2, %v194_v18  ;;  %v2429_v28 = vsel %vm2403_vm15, %v224_v19, -1e+30  ;;  %v298_v19 = vunpack.c.0.s8 %v282_v8  ;;  %1914 = vmatpush3.bf16.msra.mxu0 %v2087_v39 }
  0x91   :  { %v150_v29 = vpop.permute.xlu1 %149  ;;  %354 = vmax.xlane.f32.xlu0 %v2418_v21  ;;  %356 = vmax.xlane.f32.xlu1 %v2429_v28  ;;  %v145_v30 = vpop.permute.xlu0 %144  ;;  %v2450_v40 = vsel %vm2420_vm1, %v225_v22, -1e+30  ;;  %57 = vst.msk [vmem:[#allocation3 + $0x20] sm:$0xff] %vm36_vm0, %v2201_v34  ;;  %58 = vst.msk [vmem:[#allocation3 + $0x28] sm:$0xff] %vm36_vm0, %v2201_v34  ;;  %vm315_vm2 = vcmp.ne.s32.totalorder %v299_v0, 0  ;;  %v2092_v24 = vld [vmem:[%s3328_s3 + $0x28] sm:$0xff]  }
  0x92   :  { %v197_v35 = vadd.f32 %v2337_v25, %v150_v29  ;;  %v196_v36 = vadd.f32 %v2337_v25, %v145_v30  ;;  %v226_v37 = vmax.f32 %v194_v18, %v210_v27  ;;  %v227_v41 = vmax.f32 %v195_v17, %v211_v26  ;;  %59 = vst.msk [vmem:[#allocation3 + $0x30] sm:$0xff] %vm36_vm0, %v2201_v34  ;;  %v2659_v0 = vld [vmem:[#allocation2 + $0x48] sm:$0xff] }
  0x93   :  { %v297_v18 = vunpack.c.0.s8 %v281_v4  ;;  %vm2514_vm1 = vcmp.ne.s32.totalorder %v298_v19, 0  ;;  %60 = vst.msk [vmem:[#allocation3 + $0x38] sm:$0xff] %vm36_vm0, %v2201_v34  ;;  %61 = vst.msk [vmem:[#allocation3 + $0x40] sm:$0xff] %vm36_vm0, %v2201_v34  ;;  %v2599_v4 = vld [vmem:[#allocation2 + $0x30] sm:$0xff] }
  0x94   :  { %v213_v44 = vmul.f32 0.2, %v197_v35  ;;  %v212_v45 = vmul.f32 0.2, %v196_v36  ;;  %v2459_v46 = vsel %vm2433_vm4, %v226_v37, -1e+30 }
  0x95   :  { %v160_v47 = vpop.permute.xlu1 %159  ;;  %358 = vmax.xlane.f32.xlu0 %v2450_v40  ;;  %360 = vmax.xlane.f32.xlu1 %v2459_v46  ;;  %v155_v48 = vpop.permute.xlu0 %154  ;;  %v2473_v55 = vsel %vm2437_vm5, %v227_v41, -1e+30  ;;  %vm2510_vm15 = vcmp.ne.s32.totalorder %v297_v18, 0  ;;  %62 = vst.msk [vmem:[#allocation3 + $0x48] sm:$0xff] %vm36_vm0, %v2201_v34  ;;  %63 = vst.msk [vmem:[#allocation3 + $0x50] sm:$0xff] %vm36_vm0, %v2201_v34  ;;  %v2088_v41 = vld [vmem:[%s3328_s3 + $0x8] sm:$0xff]  }
  0x96   :  { %v199_v51 = vadd.f32 %v2337_v25, %v160_v47  ;;  %v198_v52 = vadd.f32 %v2337_v25, %v155_v48  ;;  %v228_v53 = vmax.f32 %v196_v36, %v212_v45  ;;  %v229_v57 = vmax.f32 %v197_v35, %v213_v44  ;;  %64 = vst.msk [vmem:[#allocation3 + $0x58] sm:$0xff] %vm36_vm0, %v2201_v34  ;;  %v2558_v45 = vld [vmem:[#allocation2 + $0x8] sm:$0xff]  ;;  %v2560_v47 = vld [vmem:[#allocation2 + $0x10] sm:$0xff]  ;;  %v2628_v18 = vld [vmem:[#allocation2 + $0x38] sm:$0xff] }
  0x97   :  { %65 = vst.msk [vmem:[#allocation3 + $0x60] sm:$0xff] %vm36_vm0, %v2201_v34  ;;  %66 = vst.msk [vmem:[#allocation3 + $0x68] sm:$0xff] %vm36_vm0, %v2201_v34  ;;  %1915 = vmatprep.subr.bf16.mxu0 %v2088_v41 }
  0x98   :  { %v215_v60 = vmul.f32 0.2, %v199_v51  ;;  %v214_v61 = vmul.f32 0.2, %v198_v52  ;;  %v2478_v62 = vsel %vm308_vm7, %v228_v53, -1e+30  ;;  %1916 = vmatpush3.bf16.msra.mxu0 %v2088_v41 }
  0x99   :  { %v170_v63 = vpop.permute.xlu1 %169  ;;  %362 = vmax.xlane.f32.xlu0 %v2473_v55  ;;  %364 = vmax.xlane.f32.xlu1 %v2478_v62  ;;  %v165_v1 = vpop.permute.xlu0 %164  ;;  %v2489_v10 = vsel %vm2463_vm8, %v229_v57, -1e+30  ;;  %67 = vst.msk [vmem:[#allocation3 + $0x70] sm:$0xff] %vm36_vm0, %v2201_v34  ;;  %68 = vst.msk [vmem:[#allocation3 + $0x78] sm:$0xff] %vm36_vm0, %v2201_v34  ;;  %v2578_v57 = vld [vmem:[#allocation2 + $0x18] sm:$0xff]  ;;  %v2093_v41 = vld [vmem:[%s3328_s3 + $0x30] sm:$0xff]  }
  0x9a   :  { %v201_v5 = vadd.f32 %v2337_v25, %v170_v63  ;;  %v200_v6 = vadd.f32 %v2337_v25, %v165_v1  ;;  %v230_v7 = vmax.f32 %v198_v52, %v214_v61  ;;  %v231_v11 = vmax.f32 %v199_v51, %v215_v60  ;;  %1917 = vmatprep.subr.bf16.mxu0 %v2089_v49  ;;  %v2090_v60 = vld [vmem:[%s3328_s3 + $0x18] sm:$0xff]  }
  0x9c   :  { %v217_v13 = vmul.f32 0.2, %v201_v5  ;;  %v216_v14 = vmul.f32 0.2, %v200_v6  ;;  %v2495_v15 = vsel %vm310_vm11, %v230_v7, -1e+30  ;;  %1918 = vmatpush3.bf16.msra.mxu0 %v2089_v49 }
  0x9d   :  { %v180_v16 = vpop.permute.xlu1 %179  ;;  %366 = vmax.xlane.f32.xlu0 %v2489_v10  ;;  %368 = vmax.xlane.f32.xlu1 %v2495_v15  ;;  %v175_v17 = vpop.permute.xlu0 %174  ;;  %v2504_v26 = vsel %vm2491_vm12, %v231_v11, -1e+30  ;;  %v2091_v11 = vld [vmem:[%s3328_s3 + $0x20] sm:$0xff]  }
  0x9e   :  { %v203_v20 = vadd.f32 %v2337_v25, %v180_v16  ;;  %v202_v22 = vadd.f32 %v2337_v25, %v175_v17  ;;  %v232_v23 = vmax.f32 %v200_v6, %v216_v14  ;;  %v233_v31 = vmax.f32 %v201_v5, %v217_v13  ;;  %1919 = vmatprep.subr.bf16.mxu0 %v2090_v60  ;;  %v2601_v5 = vld [vmem:[#allocation2 + $0x28] sm:$0xff]  ;;  %v2626_v17 = vld [vmem:[#allocation2 + $0x40] sm:$0xff]  ;;  %v2657_v25 = vld [vmem:[#allocation2 + $0x50] sm:$0xff] }
  0xa0   :  { %v219_v27 = vmul.f32 0.2, %v203_v20  ;;  %v218_v29 = vmul.f32 0.2, %v202_v22  ;;  %v2506_v30 = vsel %vm312_vm14, %v232_v23, -1e+30  ;;  %1920 = vmatpush3.bf16.msra.mxu0 %v2090_v60 }
  0xa1   :  { %370 = vmax.xlane.f32.xlu0 %v2504_v26  ;;  %372 = vmax.xlane.f32.xlu1 %v2506_v30  ;;  %v2536_v35 = vsel %vm2510_vm15, %v233_v31, -1e+30  ;;  %v2688_v60 = vld [vmem:[#allocation2 + $0x60] sm:$0xff] }
  0xa2   :  { %v234_v33 = vmax.f32 %v202_v22, %v218_v29  ;;  %v235_v37 = vmax.f32 %v203_v20, %v219_v27  ;;  %1921 = vmatprep.subr.bf16.mxu0 %v2091_v11 }
  0xa4   :  { %v2540_v36 = vsel %vm2514_vm1, %v234_v33, -1e+30  ;;  %v2544_v38 = vsel %vm315_vm2, %v235_v37, -1e+30  ;;  %1922 = vmatpush3.bf16.msra.mxu0 %v2091_v11 }
  0xa5   :  { %374 = vmax.xlane.f32.xlu0 %v2536_v35  ;;  %376 = vmax.xlane.f32.xlu1 %v2540_v36 }
  0xa6   :  { %1923 = vmatprep.subr.bf16.mxu0 %v2092_v24 }
  0xa8   :  { %1924 = vmatpush3.bf16.msra.mxu0 %v2092_v24 }
  0xa9   :  { %378 = vmax.xlane.f32.xlu0 %v2544_v38  ;;  %1925 = vmatprep.subr.bf16.mxu0 %v2093_v41 }
  0xac   :  { %1926 = vmatpush3.bf16.msra.mxu0 %v2093_v41 }
 0x116   :  { %v349_v43 = vpop.xlane.xlu0 %348 }
 0x117   :  { %v2556_v44 = vmax.f32 %v2553_v42, %v349_v43 }
 0x119   :  { %v396_v48 = vsub.f32 %v2553_v42, %v2556_v44  ;;  %982 = vst.msk [vmem:[#allocation2] sm:$0xff] %vm36_vm0, %v2556_v44  ;;  %446 = vperm.xlu1 %2086, %v2556_v44  }
 0x11a   :  { %v351_v50 = vpop.xlane.xlu1 %350  ;;  %v353_v51 = vpop.xlane.xlu0 %352 }
 0x11b   :  { %v2571_v52 = vmax.f32 %v2558_v45, %v351_v50  ;;  %v2574_v53 = vmax.f32 %v2560_v47, %v353_v51 }
 0x11d   :  { %983 = vst.msk [vmem:[#allocation2 + $0x8] sm:$0xff] %vm36_vm0, %v2571_v52  ;;  %v398_v59 = vsub.f32 %v2560_v47, %v2574_v53  ;;  %984 = vst.msk [vmem:[#allocation2 + $0x10] sm:$0xff] %vm36_vm0, %v2574_v53  ;;  %451 = vperm.xlu0 %2085, %v2571_v52   ;;  %456 = vperm.xlu1 %2086, %v2574_v53  }
 0x11e   :  { %v357_v61 = vpop.xlane.xlu1 %356  ;;  %v355_v63 = vpop.xlane.xlu0 %354 }
 0x11f   :  { %v2594_v1 = vmax.f32 %v2576_v54, %v357_v61  ;;  %v2597_v2 = vmax.f32 %v2578_v57, %v355_v63  ;;  %v2690_v61 = vld [vmem:[#allocation2 + $0x58] sm:$0xff] }
 0x120   :  { %v1184_v6 = vld [vmem:[#allocation2] sm:$0xff] }
 0x121   :  { %986 = vst.msk [vmem:[#allocation2 + $0x20] sm:$0xff] %vm36_vm0, %v2594_v1  ;;  %985 = vst.msk [vmem:[#allocation2 + $0x18] sm:$0xff] %vm36_vm0, %v2597_v2  ;;  %466 = vperm.xlu0 %2085, %v2594_v1   ;;  %461 = vperm.xlu1 %2086, %v2597_v2   ;;  %v3361_v42 = vsub.f32 %v2576_v54, %v2594_v1 }
 0x122   :  { %1200 = vst.msk [vmem:[%s3329_s9] sm:$0xff] %vm36_vm0, %v1184_v6  ;;  %v361_v12 = vpop.xlane.xlu1 %360  ;;  %v359_v13 = vpop.xlane.xlu0 %358 }
 0x123   :  { %v2621_v14 = vmax.f32 %v2599_v4, %v361_v12  ;;  %v2624_v16 = vmax.f32 %v2601_v5, %v359_v13  ;;  %v2094_v13 = vld [vmem:[%s3328_s3 + $0x38] sm:$0xff]   ;;  %v420_v44 = vmul.f32 1.442695, %v3361_v42  ;;  %v578_v42 = vld [vmem:[#allocation3 + $0x30] sm:$0xff] }
 0x124   :  { %v1185_v19 = vld [vmem:[#allocation2 + $0x8] sm:$0xff]  ;;  %v1186_v20 = vld [vmem:[#allocation2 + $0x10] sm:$0xff]  ;;  %1927 = vmatprep.subr.bf16.mxu0 %v2094_v13 }
 0x125   :  { %988 = vst.msk [vmem:[#allocation2 + $0x30] sm:$0xff] %vm36_vm0, %v2621_v14  ;;  %987 = vst.msk [vmem:[#allocation2 + $0x28] sm:$0xff] %vm36_vm0, %v2624_v16  ;;  %476 = vperm.xlu0 %2085, %v2621_v14   ;;  %471 = vperm.xlu1 %2086, %v2624_v16  }
 0x126   :  { %1201 = vst.msk [vmem:[%s3329_s9 + $0x8] sm:$0xff] %vm36_vm0, %v1185_v19  ;;  %1202 = vst.msk [vmem:[%s3329_s9 + $0x10] sm:$0xff] %vm36_vm0, %v1186_v20  ;;  %v365_v27 = vpop.xlane.xlu1 %364  ;;  %v363_v29 = vpop.xlane.xlu0 %362  ;;  %1928 = vmatpush3.bf16.msra.mxu0 %v2094_v13 }
 0x127   :  { %v2652_v31 = vmax.f32 %v2626_v17, %v365_v27  ;;  %v2655_v32 = vmax.f32 %v2628_v18, %v363_v29  ;;  %v2719_v29 = vld [vmem:[#allocation2 + $0x70] sm:$0xff] }
 0x128   :  { %v1187_v33 = vld [vmem:[#allocation2 + $0x18] sm:$0xff]  ;;  %v1188_v34 = vld [vmem:[#allocation2 + $0x20] sm:$0xff] }
 0x129   :  { %990 = vst.msk [vmem:[#allocation2 + $0x40] sm:$0xff] %vm36_vm0, %v2652_v31  ;;  %989 = vst.msk [vmem:[#allocation2 + $0x38] sm:$0xff] %vm36_vm0, %v2655_v32  ;;  %486 = vperm.xlu0 %2085, %v2652_v31   ;;  %481 = vperm.xlu1 %2086, %v2655_v32   ;;  %v3365_v1 = vsub.f32 %v2626_v17, %v2652_v31 }
 0x12a   :  { %1203 = vst.msk [vmem:[%s3329_s9 + $0x18] sm:$0xff] %vm36_vm0, %v1187_v33  ;;  %1204 = vst.msk [vmem:[%s3329_s9 + $0x20] sm:$0xff] %vm36_vm0, %v1188_v34  ;;  %v369_v43 = vpop.xlane.xlu1 %368  ;;  %v367_v49 = vpop.xlane.xlu0 %366  ;;  %v2721_v33 = vld [vmem:[#allocation2 + $0x68] sm:$0xff] }
 0x12b   :  { %v2683_v50 = vmax.f32 %v2657_v25, %v369_v43  ;;  %v2686_v51 = vmax.f32 %v2659_v0, %v367_v49 }
 0x12c   :  { %v1189_v63 = vld [vmem:[#allocation2 + $0x28] sm:$0xff]  ;;  %v1190_v6 = vld [vmem:[#allocation2 + $0x30] sm:$0xff] }
 0x12d   :  { %992 = vst.msk [vmem:[#allocation2 + $0x50] sm:$0xff] %vm36_vm0, %v2683_v50  ;;  %991 = vst.msk [vmem:[#allocation2 + $0x48] sm:$0xff] %vm36_vm0, %v2686_v51  ;;  %496 = vperm.xlu0 %2085, %v2683_v50   ;;  %491 = vperm.xlu1 %2086, %v2686_v51  }
 0x12e   :  { %1205 = vst.msk [vmem:[%s3329_s9 + $0x28] sm:$0xff] %vm36_vm0, %v1189_v63  ;;  %1206 = vst.msk [vmem:[%s3329_s9 + $0x30] sm:$0xff] %vm36_vm0, %v1190_v6  ;;  %v373_v19 = vpop.xlane.xlu1 %372  ;;  %v371_v20 = vpop.xlane.xlu0 %370 }
 0x12f   :  { %v2714_v24 = vmax.f32 %v2688_v60, %v373_v19  ;;  %v2717_v27 = vmax.f32 %v2690_v61, %v371_v20  ;;  %v2747_v20 = vld [vmem:[#allocation2 + $0x78] sm:$0xff] }
 0x130   :  { %v1191_v34 = vld [vmem:[#allocation2 + $0x38] sm:$0xff]  ;;  %v1192_v41 = vld [vmem:[#allocation2 + $0x40] sm:$0xff] }
 0x131   :  { %994 = vst.msk [vmem:[#allocation2 + $0x60] sm:$0xff] %vm36_vm0, %v2714_v24  ;;  %993 = vst.msk [vmem:[#allocation2 + $0x58] sm:$0xff] %vm36_vm0, %v2717_v27  ;;  %506 = vperm.xlu0 %2085, %v2714_v24   ;;  %501 = vperm.xlu1 %2086, %v2717_v27   ;;  %v3368_v17 = vsub.f32 %v2690_v61, %v2717_v27 }
 0x132   :  { %1207 = vst.msk [vmem:[%s3329_s9 + $0x38] sm:$0xff] %vm36_vm0, %v1191_v34  ;;  %1208 = vst.msk [vmem:[%s3329_s9 + $0x40] sm:$0xff] %vm36_vm0, %v1192_v41  ;;  %v377_v63 = vpop.xlane.xlu1 %376  ;;  %v375_v6 = vpop.xlane.xlu0 %374 }
 0x133   :  { %v2742_v13 = vmax.f32 %v2719_v29, %v377_v63  ;;  %v2745_v19 = vmax.f32 %v2721_v33, %v375_v6  ;;  %v434_v31 = vmul.f32 1.442695, %v3368_v17 }
 0x134   :  { %v1193_v43 = vld [vmem:[#allocation2 + $0x48] sm:$0xff]  ;;  %v1194_v49 = vld [vmem:[#allocation2 + $0x50] sm:$0xff] }
 0x135   :  { %996 = vst.msk [vmem:[#allocation2 + $0x70] sm:$0xff] %vm36_vm0, %v2742_v13  ;;  %995 = vst.msk [vmem:[#allocation2 + $0x68] sm:$0xff] %vm36_vm0, %v2745_v19  ;;  %516 = vperm.xlu0 %2085, %v2742_v13   ;;  %511 = vperm.xlu1 %2086, %v2745_v19  }
 0x136   :  { %1209 = vst.msk [vmem:[%s3329_s9 + $0x48] sm:$0xff] %vm36_vm0, %v1193_v43  ;;  %1210 = vst.msk [vmem:[%s3329_s9 + $0x50] sm:$0xff] %vm36_vm0, %v1194_v49  ;;  %v379_v63 = vpop.xlane.xlu0 %378 }
 0x137   :  { %v2768_v6 = vmax.f32 %v2747_v20, %v379_v63 }
 0x138   :  { %v1195_v34 = vld [vmem:[#allocation2 + $0x58] sm:$0xff]  ;;  %v1196_v41 = vld [vmem:[#allocation2 + $0x60] sm:$0xff] }
 0x139   :  { %997 = vst.msk [vmem:[#allocation2 + $0x78] sm:$0xff] %vm36_vm0, %v2768_v6  ;;  %521 = vperm.xlu1 %2086, %v2768_v6   ;;  %1211 = vst.msk [vmem:[%s3329_s9 + $0x58] sm:$0xff] %vm36_vm0, %v1195_v34 }
 0x13a   :  { %1212 = vst.msk [vmem:[%s3329_s9 + $0x60] sm:$0xff] %vm36_vm0, %v1196_v41 }
 0x13c   :  { %v1197_v43 = vld [vmem:[#allocation2 + $0x68] sm:$0xff]  ;;  %v1198_v49 = vld [vmem:[#allocation2 + $0x70] sm:$0xff] }
 0x13d   :  { %1213 = vst.msk [vmem:[%s3329_s9 + $0x68] sm:$0xff] %vm36_vm0, %v1197_v43  ;;  %1214 = vst.msk [vmem:[%s3329_s9 + $0x70] sm:$0xff] %vm36_vm0, %v1198_v49 }
 0x140   :  { %v1199_v63 = vld [vmem:[#allocation2 + $0x78] sm:$0xff] }
 0x141   :  { %1215 = vst.msk [vmem:[%s3329_s9 + $0x78] sm:$0xff] %vm36_vm0, %v1199_v63 }
 0x198   :  { %v447_v34 = vpop.permute.xlu1 %446 }
 0x199   :  { %v524_v41 = vsub.f32 %v2378_v56, %v447_v34 }
 0x19b   :  { %v540_v11 = vmul.f32 1.442695, %v524_v41 }
 0x19c   :  { %v457_v12 = vpop.permute.xlu1 %456  ;;  %v452_v37 = vpop.permute.xlu0 %451 }
 0x19d   :  { %2103 = vpow2.f32 %v540_v11  ;;  %v526_v43 = vsub.f32 %v2392_v3, %v457_v12  ;;  %v525_v39 = vsub.f32 %v2399_v9, %v452_v37 }
 0x19f   :  { %v544_v22 = vmul.f32 1.442695, %v526_v43  ;;  %v542_v23 = vmul.f32 1.442695, %v525_v39 }
 0x1a0   :  { %v462_v49 = vpop.permute.xlu1 %461  ;;  %v467_v7 = vpop.permute.xlu0 %466 }
 0x1a1   :  { %2105 = vpow2.f32 %v544_v22  ;;  %v527_v8 = vsub.f32 %v2418_v21, %v462_v49  ;;  %v528_v63 = vsub.f32 %v2429_v28, %v467_v7 }
 0x1a2   :  { %2107 = vpow2.f32 %v542_v23 }
 0x1a3   :  { %v546_v58 = vmul.f32 1.442695, %v527_v8  ;;  %v548_v56 = vmul.f32 1.442695, %v528_v63 }
 0x1a4   :  { %v472_v34 = vpop.permute.xlu1 %471  ;;  %v477_v41 = vpop.permute.xlu0 %476 }
 0x1a5   :  { %2109 = vpow2.f32 %v546_v58  ;;  %v529_v11 = vsub.f32 %v2450_v40, %v472_v34  ;;  %v530_v3 = vsub.f32 %v2459_v46, %v477_v41 }
 0x1a6   :  { %2111 = vpow2.f32 %v548_v56 }
 0x1a7   :  { %v2104_v9 = vpop.eup %2103  ;;  %v550_v37 = vmul.f32 1.442695, %v529_v11  ;;  %v552_v39 = vmul.f32 1.442695, %v530_v3 }
 0x1a8   :  { %604 = vadd.xlane.f32.xlu0 %v2104_v9  ;;  %v482_v22 = vpop.permute.xlu1 %481  ;;  %v487_v12 = vpop.permute.xlu0 %486 }
 0x1a9   :  { %2113 = vpow2.f32 %v550_v37  ;;  %v531_v21 = vsub.f32 %v2473_v55, %v482_v22  ;;  %v532_v28 = vsub.f32 %v2478_v62, %v487_v12 }
 0x1aa   :  { %2115 = vpow2.f32 %v552_v39 }
 0x1ab   :  { %v2106_v7 = vpop.eup %2105  ;;  %v554_v8 = vmul.f32 1.442695, %v531_v21  ;;  %v556_v58 = vmul.f32 1.442695, %v532_v28 }
 0x1ac   :  { %v2108_v23 = vpop.eup %2107  ;;  %608 = vadd.xlane.f32.xlu0 %v2106_v7  ;;  %v492_v40 = vpop.permute.xlu1 %491 }
 0x1ad   :  { %v497_v46 = vpop.permute.xlu0 %496  ;;  %2117 = vpow2.f32 %v554_v8  ;;  %v533_v43 = vsub.f32 %v2489_v10, %v492_v40  ;;  %606 = vadd.xlane.f32.xlu1 %v2108_v23  ;;  %v781_v63 = vpack.c.bf16 %v2108_v23, %v2104_v9 }
 0x1ae   :  { %v534_v49 = vsub.f32 %v2495_v15, %v497_v46  ;;  %2119 = vpow2.f32 %v556_v58 }
 0x1af   :  { %v2110_v56 = vpop.eup %2109  ;;  %v558_v55 = vmul.f32 1.442695, %v533_v43  ;;  %1929 = vmatprep.mubr.bf16.mxu0 %v781_v63 }
 0x1b0   :  { %v560_v34 = vmul.f32 1.442695, %v534_v49  ;;  %v2112_v62 = vpop.eup %2111  ;;  %610 = vadd.xlane.f32.xlu0 %v2110_v56  ;;  %v502_v41 = vpop.permute.xlu1 %501  ;;  %v782_v3 = vpack.c.bf16 %v2110_v56, %v2106_v7 }
 0x1b1   :  { %v507_v11 = vpop.permute.xlu0 %506  ;;  %2121 = vpow2.f32 %v558_v55  ;;  %v535_v37 = vsub.f32 %v2504_v26, %v502_v41  ;;  %612 = vadd.xlane.f32.xlu1 %v2112_v62 }
 0x1b2   :  { %v536_v10 = vsub.f32 %v2506_v30, %v507_v11  ;;  %2123 = vpow2.f32 %v560_v34  ;;  %1930 = vmatmul.mubr.bf16.vlgmr.msra.gmra.mrb[0].mxu0 %v782_v3  ;;  %v412_v3 = vmul.f32 1.442695, %v396_v48  ;;  %v3362_v48 = vsub.f32 %v2601_v5, %v2624_v16 }
 0x1b3   :  { %v2114_v15 = vpop.eup %2113  ;;  %v562_v9 = vmul.f32 1.442695, %v535_v37 }
 0x1b4   :  { %v564_v39 = vmul.f32 1.442695, %v536_v10  ;;  %v2116_v22 = vpop.eup %2115  ;;  %614 = vadd.xlane.f32.xlu0 %v2114_v15  ;;  %v512_v12 = vpop.permute.xlu1 %511  ;;  %v783_v28 = vpack.c.bf16 %v2114_v15, %v2112_v62  ;;  %v416_v10 = vmul.f32 1.442695, %v398_v59  ;;  %v3359_v15 = vsub.f32 %v2558_v45, %v2571_v52 }
 0x1b5   :  { %v517_v21 = vpop.permute.xlu0 %516  ;;  %2125 = vpow2.f32 %v562_v9  ;;  %v537_v8 = vsub.f32 %v2536_v35, %v512_v12  ;;  %616 = vadd.xlane.f32.xlu1 %v2116_v22  ;;  %v422_v47 = vmul.f32 1.442695, %v3362_v48  ;;  %v3363_v45 = vsub.f32 %v2599_v4, %v2621_v14 }
 0x1b6   :  { %v538_v7 = vsub.f32 %v2540_v36, %v517_v21  ;;  %2127 = vpow2.f32 %v564_v39  ;;  %1933 = vmatprep.mubr.bf16.mxu0 %v783_v28  ;;  %v414_v9 = vmul.f32 1.442695, %v3359_v15  ;;  %v3360_v39 = vsub.f32 %v2578_v57, %v2597_v2 }
 0x1b7   :  { %v2118_v26 = vpop.eup %2117  ;;  %v566_v30 = vmul.f32 1.442695, %v537_v8  ;;  %v424_v52 = vmul.f32 1.442695, %v3363_v45  ;;  %v3364_v57 = vsub.f32 %v2628_v18, %v2655_v32  ;;  %v428_v2 = vmul.f32 1.442695, %v3365_v1 }
 0x1b8   :  { %v568_v58 = vmul.f32 1.442695, %v538_v7  ;;  %v2120_v23 = vpop.eup %2119  ;;  %618 = vadd.xlane.f32.xlu0 %v2118_v26  ;;  %v522_v40 = vpop.permute.xlu1 %521  ;;  %v784_v46 = vpack.c.bf16 %v2118_v26, %v2116_v22  ;;  %v418_v22 = vmul.f32 1.442695, %v3360_v39  ;;  %v3366_v4 = vsub.f32 %v2659_v0, %v2686_v51 }
 0x1b9   :  { %2129 = vpow2.f32 %v566_v30  ;;  %v539_v43 = vsub.f32 %v2544_v38, %v522_v40  ;;  %620 = vadd.xlane.f32.xlu1 %v2120_v23  ;;  %v426_v54 = vmul.f32 1.442695, %v3364_v57  ;;  %v3367_v18 = vsub.f32 %v2657_v25, %v2683_v50  ;;  %v2095_v30 = vld [vmem:[%s3330_s5] sm:$0xff]   ;;  %v2098_v40 = vld [vmem:[%s3330_s5 + $0x18] sm:$0xff]  }
 0x1ba   :  { %2131 = vpow2.f32 %v568_v58  ;;  %1934 = vmatmul.mubr.bf16.gmra.mrb[4].mxu0 %v784_v46  ;;  %v430_v5 = vmul.f32 1.442695, %v3366_v4  ;;  %v3369_v12 = vsub.f32 %v2688_v60, %v2714_v24  ;;  %v3370_v25 = vsub.f32 %v2721_v33, %v2745_v19  ;;  %v2096_v58 = vld [vmem:[%s3330_s5 + $0x8] sm:$0xff]   ;;  %1945 = vmatprep.subr.bf16.mxu1 %v2095_v30  ;;  %v572_v46 = vld [vmem:[#allocation3] sm:$0xff] }
 0x1bb   :  { %v2122_v49 = vpop.eup %2121  ;;  %v570_v35 = vmul.f32 1.442695, %v539_v43  ;;  %v432_v32 = vmul.f32 1.442695, %v3367_v18  ;;  %v3371_v28 = vsub.f32 %v2719_v29, %v2742_v13  ;;  %v3372_v60 = vsub.f32 %v2747_v20, %v2768_v6  ;;  %1946 = vmatpush3.bf16.msra.mxu1 %v2095_v30  ;;  %v581_v18 = vld [vmem:[#allocation3 + $0x48] sm:$0xff] }
 0x1bc   :  { %v2124_v63 = vpop.eup %2123  ;;  %622 = vadd.xlane.f32.xlu0 %v2122_v49  ;;  %v785_v36 = vpack.c.bf16 %v2122_v49, %v2120_v23  ;;  %v436_v21 = vmul.f32 1.442695, %v3369_v12  ;;  %v438_v50 = vmul.f32 1.442695, %v3370_v25  ;;  %v2097_v23 = vld [vmem:[%s3330_s5 + $0x10] sm:$0xff]   ;;  %1947 = vmatprep.subr.bf16.mxu1 %v2096_v58 }
 0x1bd   :  { %2133 = vpow2.f32 %v570_v35  ;;  %624 = vadd.xlane.f32.xlu1 %v2124_v63  ;;  %v440_v8 = vmul.f32 1.442695, %v3371_v28  ;;  %v442_v24 = vmul.f32 1.442695, %v3372_v60  ;;  %v574_v35 = vld [vmem:[#allocation3 + $0x10] sm:$0xff]  ;;  %v584_v60 = vld [vmem:[#allocation3 + $0x60] sm:$0xff] }
 0x1be   :  { %1937 = vmatprep.mubr.bf16.mxu0 %v785_v36  ;;  %2135 = vpow2.f32 %v412_v3  ;;  %v573_v36 = vld [vmem:[#allocation3 + $0x8] sm:$0xff] }
 0x1bf   :  { %v2126_v56 = vpop.eup %2125  ;;  %2137 = vpow2.f32 %v416_v10  ;;  %1948 = vmatpush3.bf16.msra.mxu1 %v2096_v58 }
 0x1c0   :  { %v2128_v55 = vpop.eup %2127  ;;  %626 = vadd.xlane.f32.xlu0 %v2126_v56  ;;  %v786_v34 = vpack.c.bf16 %v2126_v56, %v2124_v63  ;;  %2139 = vpow2.f32 %v414_v9  ;;  %1949 = vmatprep.subr.bf16.mxu1 %v2097_v23  ;;  %v577_v9 = vld [vmem:[#allocation3 + $0x28] sm:$0xff] }
 0x1c1   :  { %628 = vadd.xlane.f32.xlu1 %v2128_v55  ;;  %2141 = vpow2.f32 %v418_v22 }
 0x1c2   :  { %1938 = vmatmul.mubr.bf16.gmra.mrb[8].mxu0 %v786_v34  ;;  %2143 = vpow2.f32 %v420_v44 }
 0x1c3   :  { %v2130_v62 = vpop.eup %2129  ;;  %2145 = vpow2.f32 %v422_v47  ;;  %1950 = vmatpush3.bf16.msra.mxu1 %v2097_v23 }
 0x1c4   :  { %v2132_v41 = vpop.eup %2131  ;;  %630 = vadd.xlane.f32.xlu0 %v2130_v62  ;;  %v787_v38 = vpack.c.bf16 %v2130_v62, %v2128_v55  ;;  %2147 = vpow2.f32 %v424_v52  ;;  %1951 = vmatprep.subr.bf16.mxu1 %v2098_v40  ;;  %v575_v62 = vld [vmem:[#allocation3 + $0x18] sm:$0xff] }
 0x1c5   :  { %632 = vadd.xlane.f32.xlu1 %v2132_v41  ;;  %2149 = vpow2.f32 %v426_v54  ;;  %v579_v52 = vld [vmem:[#allocation3 + $0x38] sm:$0xff] }
 0x1c6   :  { %1941 = vmatprep.mubr.bf16.mxu0 %v787_v38  ;;  %2151 = vpow2.f32 %v428_v2 }
 0x1c7   :  { %v2134_v11 = vpop.eup %2133  ;;  %2153 = vpow2.f32 %v430_v5  ;;  %1952 = vmatpush3.bf16.msra.mxu1 %v2098_v40  ;;  %v585_v40 = vld [vmem:[#allocation3 + $0x68] sm:$0xff] }
 0x1c8   :  { %634 = vadd.xlane.f32.xlu0 %v2134_v11  ;;  %v788_v37 = vpack.c.bf16 %v2134_v11, %v2132_v41  ;;  %v2829_v53 = vpop.eup %2135  ;;  %2155 = vpow2.f32 %v432_v32  ;;  %v576_v11 = vld [vmem:[#allocation3 + $0x20] sm:$0xff] }
 0x1c9   :  { %v2838_v59 = vpop.eup %2137  ;;  %2157 = vpow2.f32 %v434_v31  ;;  %v588_v43 = vmul.f32 %v2829_v53, %v572_v46  ;;  %v582_v31 = vld [vmem:[#allocation3 + $0x50] sm:$0xff] }
 0x1ca   :  { %1942 = vmatmul.mubr.bf16.gmra.mrb[12].mxu0 %v788_v37  ;;  %v2847_v14 = vpop.eup %2139  ;;  %2159 = vpow2.f32 %v436_v21  ;;  %v590_v56 = vmul.f32 %v2838_v59, %v574_v35  ;;  %v586_v35 = vld [vmem:[#allocation3 + $0x70] sm:$0xff] }
 0x1cb   :  { %v2849_v16 = vpop.eup %2141  ;;  %2161 = vpow2.f32 %v438_v50  ;;  %v589_v55 = vmul.f32 %v2847_v14, %v573_v36 }
 0x1cc   :  { %v2859_v0 = vpop.eup %2143  ;;  %2163 = vpow2.f32 %v440_v8  ;;  %v591_v37 = vmul.f32 %v2849_v16, %v575_v62 }
 0x1cd   :  { %v2861_v51 = vpop.eup %2145  ;;  %2165 = vpow2.f32 %v442_v24  ;;  %v592_v10 = vmul.f32 %v2859_v0, %v576_v11  ;;  %v2099_v24 = vld [vmem:[%s3330_s5 + $0x20] sm:$0xff]  }
 0x1ce   :  { %v2871_v61 = vpop.eup %2147  ;;  %v593_v47 = vmul.f32 %v2861_v51, %v577_v9  ;;  %1953 = vmatprep.subr.bf16.mxu1 %v2099_v24 }
 0x1cf   :  { %v2873_v27 = vpop.eup %2149  ;;  %1954 = vmatpush3.bf16.msra.mxu1 %v2099_v24 }
 0x1d0   :  { %v2883_v33 = vpop.eup %2151  ;;  %v595_v4 = vmul.f32 %v2873_v27, %v579_v52 }
 0x1d1   :  { %v2885_v19 = vpop.eup %2153 }
 0x1d2   :  { %v2889_v29 = vpop.eup %2155  ;;  %v597_v12 = vmul.f32 %v2885_v19, %v581_v18 }
 0x1d3   :  { %v2891_v13 = vpop.eup %2157  ;;  %v598_v25 = vmul.f32 %v2889_v29, %v582_v31 }
 0x1d4   :  { %v2895_v20 = vpop.eup %2159 }
 0x1d5   :  { %v2897_v6 = vpop.eup %2161  ;;  %v600_v58 = vmul.f32 %v2895_v20, %v584_v60  ;;  %v1487_v60 = vld [vmem:[%s3331_s6 + $0x28] sm:$0xff] }
 0x1d6   :  { %687 = vperm.xlu1 %2086, %v2829_v53   ;;  %v2901_v7 = vpop.eup %2163  ;;  %v594_v53 = vmul.f32 %v2871_v61, %v578_v42 }
 0x1d7   :  { %v2903_v26 = vpop.eup %2165 }
 0x1da   :  { %697 = vperm.xlu1 %2086, %v2838_v59   ;;  %v580_v59 = vld [vmem:[#allocation3 + $0x40] sm:$0xff] }
 0x1de   :  { %702 = vperm.xlu1 %2086, %v2849_v16   ;;  %692 = vperm.xlu0 %2085, %v2847_v14   ;;  %v596_v14 = vmul.f32 %v2883_v33, %v580_v59 }
 0x1e2   :  { %712 = vperm.xlu1 %2086, %v2861_v51   ;;  %707 = vperm.xlu0 %2085, %v2859_v0  }
 0x1e6   :  { %722 = vperm.xlu1 %2086, %v2873_v27   ;;  %717 = vperm.xlu0 %2085, %v2871_v61   ;;  %v583_v61 = vld [vmem:[#allocation3 + $0x58] sm:$0xff] }
 0x1ea   :  { %732 = vperm.xlu1 %2086, %v2885_v19   ;;  %727 = vperm.xlu0 %2085, %v2883_v33  }
 0x1ee   :  { %742 = vperm.xlu1 %2086, %v2891_v13   ;;  %737 = vperm.xlu0 %2085, %v2889_v29   ;;  %v599_v29 = vmul.f32 %v2891_v13, %v583_v61  ;;  %v2100_v13 = vld [vmem:[%s3330_s5 + $0x28] sm:$0xff]   ;;  %v1485_v61 = vld [vmem:[%s3331_s6 + $0x18] sm:$0xff] }
 0x1ef   :  { %1955 = vmatprep.subr.bf16.mxu1 %v2100_v13 }
 0x1f0   :  { %1956 = vmatpush3.bf16.msra.mxu1 %v2100_v13 }
 0x1f2   :  { %752 = vperm.xlu1 %2086, %v2897_v6   ;;  %747 = vperm.xlu0 %2085, %v2895_v20   ;;  %v601_v20 = vmul.f32 %v2897_v6, %v585_v40  ;;  %v2101_v6 = vld [vmem:[%s3330_s5 + $0x30] sm:$0xff]  }
 0x1f3   :  { %1957 = vmatprep.subr.bf16.mxu1 %v2101_v6 }
 0x1f4   :  { %1958 = vmatpush3.bf16.msra.mxu1 %v2101_v6 }
 0x1f6   :  { %762 = vperm.xlu1 %2086, %v2903_v26   ;;  %757 = vperm.xlu0 %2085, %v2901_v7  }
 0x235   :  { %v605_v49 = vpop.xlane.xlu0 %604 }
 0x236   :  { %v636_v63 = vadd.f32 %v605_v49, %v588_v43 }
 0x238   :  { %653 = vst.msk [vmem:[#allocation3] sm:$0xff] %vm36_vm0, %v636_v63 }
 0x239   :  { %v609_v34 = vpop.xlane.xlu0 %608 }
 0x23a   :  { %v607_v41 = vpop.xlane.xlu1 %606  ;;  %v638_v38 = vadd.f32 %v609_v34, %v590_v56  ;;  %v602_v34 = vmul.f32 %v2901_v7, %v586_v35 }
 0x23b   :  { %v637_v3 = vadd.f32 %v607_v41, %v589_v55  ;;  %v587_v41 = vld [vmem:[#allocation3 + $0x78] sm:$0xff] }
 0x23c   :  { %655 = vst.msk [vmem:[#allocation3 + $0x10] sm:$0xff] %vm36_vm0, %v638_v38  ;;  %v603_v7 = vmul.f32 %v2903_v26, %v587_v41  ;;  %v1495_v41 = vld [vmem:[%s3331_s6 + $0x68] sm:$0xff] }
 0x23d   :  { %654 = vst.msk [vmem:[#allocation3 + $0x8] sm:$0xff] %vm36_vm0, %v637_v3  ;;  %v611_v15 = vpop.xlane.xlu0 %610 }
 0x23e   :  { %v613_v39 = vpop.xlane.xlu1 %612  ;;  %v639_v22 = vadd.f32 %v611_v15, %v591_v37 }
 0x23f   :  { %v640_v44 = vadd.f32 %v613_v39, %v592_v10  ;;  %v2927_v48 = vld [vmem:[#allocation3] sm:$0xff] }
 0x240   :  { %656 = vst.msk [vmem:[#allocation3 + $0x18] sm:$0xff] %vm36_vm0, %v639_v22  ;;  %2167 = vrcp.f32 %v2927_v48 }
 0x241   :  { %657 = vst.msk [vmem:[#allocation3 + $0x20] sm:$0xff] %vm36_vm0, %v640_v44  ;;  %v615_v45 = vpop.xlane.xlu0 %614  ;;  %v2102_v44 = vld [vmem:[%s3330_s5 + $0x38] sm:$0xff]   ;;  %s2202_s5 = smov 1  }
 0x242   :  { %v617_v57 = vpop.xlane.xlu1 %616  ;;  %v641_v54 = vadd.f32 %v615_v45, %v593_v47  ;;  %1959 = vmatprep.subr.bf16.mxu1 %v2102_v44 }
 0x243   :  { %v642_v1 = vadd.f32 %v617_v57, %v594_v53  ;;  %v2934_v2 = vld [vmem:[#allocation3 + $0x10] sm:$0xff]  ;;  %1960 = vmatpush3.bf16.msra.mxu1 %v2102_v44 }
 0x244   :  { %658 = vst.msk [vmem:[#allocation3 + $0x28] sm:$0xff] %vm36_vm0, %v641_v54  ;;  %v2938_v5 = vld [vmem:[#allocation3 + $0x8] sm:$0xff]  ;;  %2169 = vrcp.f32 %v2934_v2 }
 0x245   :  { %659 = vst.msk [vmem:[#allocation3 + $0x30] sm:$0xff] %vm36_vm0, %v642_v1  ;;  %v619_v16 = vpop.xlane.xlu0 %618  ;;  %2171 = vrcp.f32 %v2938_v5 }
 0x246   :  { %v621_v32 = vpop.xlane.xlu1 %620  ;;  %v643_v17 = vadd.f32 %v619_v16, %v595_v4 }
 0x247   :  { %v644_v0 = vadd.f32 %v621_v32, %v596_v14  ;;  %v2944_v51 = vld [vmem:[#allocation3 + $0x18] sm:$0xff] }
 0x248   :  { %660 = vst.msk [vmem:[#allocation3 + $0x38] sm:$0xff] %vm36_vm0, %v643_v17  ;;  %v2948_v21 = vld [vmem:[#allocation3 + $0x20] sm:$0xff]  ;;  %2173 = vrcp.f32 %v2944_v51 }
 0x249   :  { %661 = vst.msk [vmem:[#allocation3 + $0x40] sm:$0xff] %vm36_vm0, %v644_v0  ;;  %v623_v50 = vpop.xlane.xlu0 %622  ;;  %2175 = vrcp.f32 %v2948_v21 }
 0x24a   :  { %v2168_v27 = vpop.eup %2167  ;;  %v625_v28 = vpop.xlane.xlu1 %624  ;;  %v645_v8 = vadd.f32 %v623_v50, %v597_v12  ;;  %v1483_v12 = vld [vmem:[%s3331_s6 + $0x8] sm:$0xff] }
 0x24b   :  { %v646_v33 = vadd.f32 %v625_v28, %v598_v25  ;;  %1051 = vperm.xlu0 %2085, %v2168_v27   ;;  %v2957_v19 = vld [vmem:[#allocation3 + $0x28] sm:$0xff] }
 0x24c   :  { %662 = vst.msk [vmem:[#allocation3 + $0x48] sm:$0xff] %vm36_vm0, %v645_v8  ;;  %v2961_v30 = vld [vmem:[#allocation3 + $0x30] sm:$0xff]  ;;  %2177 = vrcp.f32 %v2957_v19  ;;  %v1486_v8 = vld [vmem:[%s3331_s6 + $0x20] sm:$0xff] }
 0x24d   :  { %663 = vst.msk [vmem:[#allocation3 + $0x50] sm:$0xff] %vm36_vm0, %v646_v33  ;;  %v627_v23 = vpop.xlane.xlu0 %626  ;;  %2179 = vrcp.f32 %v2961_v30  ;;  %v3041_v33 = vpack.c.bf16 %v1487_v60, %v1486_v8 }
 0x24e   :  { %v2170_v46 = vpop.eup %2169  ;;  %v629_v43 = vpop.xlane.xlu1 %628  ;;  %v647_v49 = vadd.f32 %v627_v23, %v599_v29  ;;  %v1489_v29 = vld [vmem:[%s3331_s6 + $0x38] sm:$0xff] }
 0x24f   :  { %v2172_v63 = vpop.eup %2171  ;;  %v648_v36 = vadd.f32 %v629_v43, %v600_v58  ;;  %1061 = vperm.xlu0 %2085, %v2170_v46   ;;  %v2970_v56 = vld [vmem:[#allocation3 + $0x38] sm:$0xff]  ;;  %v1490_v46 = vld [vmem:[%s3331_s6 + $0x40] sm:$0xff]  ;;  %v1491_v43 = vld [vmem:[%s3331_s6 + $0x48] sm:$0xff] }
 0x250   :  { %664 = vst.msk [vmem:[#allocation3 + $0x58] sm:$0xff] %vm36_vm0, %v647_v49  ;;  %1056 = vperm.xlu1 %2086, %v2172_v63   ;;  %v2974_v55 = vld [vmem:[#allocation3 + $0x40] sm:$0xff]  ;;  %2181 = vrcp.f32 %v2970_v56  ;;  %v3069_v35 = vpack.c.bf16 %v1491_v43, %v1490_v46  ;;  %v1492_v63 = vld [vmem:[%s3331_s6 + $0x50] sm:$0xff] }
 0x251   :  { %665 = vst.msk [vmem:[#allocation3 + $0x60] sm:$0xff] %vm36_vm0, %v648_v36  ;;  %v631_v62 = vpop.xlane.xlu0 %630  ;;  %2183 = vrcp.f32 %v2974_v55  ;;  %v1493_v36 = vld [vmem:[%s3331_s6 + $0x58] sm:$0xff] }
 0x252   :  { %v2174_v38 = vpop.eup %2173  ;;  %v633_v11 = vpop.xlane.xlu1 %632  ;;  %v649_v3 = vadd.f32 %v631_v62, %v601_v20  ;;  %v1494_v62 = vld [vmem:[%s3331_s6 + $0x60] sm:$0xff] }
 0x253   :  { %v2176_v37 = vpop.eup %2175  ;;  %v650_v10 = vadd.f32 %v633_v11, %v602_v34  ;;  %v1010_v15 = vld [vmem:[#allocation3 + $0x48] sm:$0xff]  ;;  %v3097_v6 = vpack.c.bf16 %v1495_v41, %v1494_v62 }
 0x254   :  { %666 = vst.msk [vmem:[#allocation3 + $0x68] sm:$0xff] %vm36_vm0, %v649_v3  ;;  %1071 = vperm.xlu0 %2085, %v2176_v37   ;;  %1066 = vperm.xlu1 %2086, %v2174_v38   ;;  %v1011_v9 = vld [vmem:[#allocation3 + $0x50] sm:$0xff]  ;;  %2185 = vrcp.f32 %v1010_v15 }
 0x255   :  { %667 = vst.msk [vmem:[#allocation3 + $0x70] sm:$0xff] %vm36_vm0, %v650_v10  ;;  %v635_v39 = vpop.xlane.xlu0 %634  ;;  %2187 = vrcp.f32 %v1011_v9 }
 0x256   :  { %v2178_v22 = vpop.eup %2177  ;;  %v651_v42 = vadd.f32 %v635_v39, %v603_v7  ;;  %v688_v13 = vpop.permute.xlu1 %687 }
 0x257   :  { %v2180_v47 = vpop.eup %2179  ;;  %v1012_v53 = vld [vmem:[#allocation3 + $0x58] sm:$0xff] }
 0x258   :  { %668 = vst.msk [vmem:[#allocation3 + $0x78] sm:$0xff] %vm36_vm0, %v651_v42  ;;  %1081 = vperm.xlu0 %2085, %v2180_v47   ;;  %1076 = vperm.xlu1 %2086, %v2178_v22   ;;  %v1013_v26 = vld [vmem:[#allocation3 + $0x60] sm:$0xff]  ;;  %2189 = vrcp.f32 %v1012_v53  ;;  %vm1296_vm0 = vcmask 15368  }
 0x259   :  { %2191 = vrcp.f32 %v1013_v26 }
 0x25a   :  { %v2182_v45 = vpop.eup %2181  ;;  %v698_v11 = vpop.permute.xlu1 %697 }
 0x25b   :  { %v2184_v52 = vpop.eup %2183  ;;  %v1014_v57 = vld [vmem:[#allocation3 + $0x68] sm:$0xff] }
 0x25c   :  { %1091 = vperm.xlu0 %2085, %v2184_v52   ;;  %1086 = vperm.xlu1 %2086, %v2182_v45   ;;  %v1015_v54 = vld [vmem:[#allocation3 + $0x70] sm:$0xff]  ;;  %2193 = vrcp.f32 %v1014_v57  ;;  %v765_v45 = vmul.f32 0.0, %v688_v13 }
 0x25d   :  { %2195 = vrcp.f32 %v1015_v54  ;;  %v693_v3 = vpop.permute.xlu0 %692 }
 0x25e   :  { %v2186_v59 = vpop.eup %2185  ;;  %v703_v37 = vpop.permute.xlu1 %702 }
 0x25f   :  { %v2188_v1 = vpop.eup %2187  ;;  %v1016_v4 = vld [vmem:[#allocation3 + $0x78] sm:$0xff] }
 0x260   :  { %1101 = vperm.xlu0 %2085, %v2188_v1   ;;  %1096 = vperm.xlu1 %2086, %v2186_v59   ;;  %2197 = vrcp.f32 %v1016_v4  ;;  %v766_v1 = vmul.f32 0.0, %v693_v3 }
 0x261   :  { %v708_v10 = vpop.permute.xlu0 %707 }
 0x262   :  { %v2190_v14 = vpop.eup %2189 }
 0x263   :  { %v2192_v16 = vpop.eup %2191 }
 0x264   :  { %1111 = vperm.xlu0 %2085, %v2192_v16   ;;  %1106 = vperm.xlu1 %2086, %v2190_v14   ;;  %v3117_v16 = vld [vmem:[%s3332_s4] ss:$0 sm:$0xff] }
 0x265   :  { %v718_v7 = vpop.permute.xlu0 %717 }
 0x266   :  { %v2194_v18 = vpop.eup %2193 }
 0x267   :  { %v2196_v32 = vpop.eup %2195 }
 0x268   :  { %1121 = vperm.xlu0 %2085, %v2196_v32   ;;  %1116 = vperm.xlu1 %2086, %v2194_v18  }
 0x269   :  { %v728_v39 = vpop.permute.xlu0 %727 }
 0x26a   :  { %v2198_v17 = vpop.eup %2197 }
 0x26c   :  { %1248 = vrot.lane.b32.xlu0 %v2927_v48, %s2202_s5  ;;  %1126 = vperm.xlu1 %2086, %v2198_v17  }
 0x26d   :  { %v738_v42 = vpop.permute.xlu0 %737 }
 0x270   :  { %1252 = vrot.lane.b32.xlu0 %v2934_v2, %s2202_s5  ;;  %1250 = vrot.lane.b32.xlu1 %v2938_v5, %s2202_s5 }
 0x271   :  { %v3104_v47 = vpop.permute.xlu0 %747 }
 0x274   :  { %1256 = vrot.lane.b32.xlu0 %v2948_v21, %s2202_s5  ;;  %1254 = vrot.lane.b32.xlu1 %v2944_v51, %s2202_s5  ;;  %v1482_v51 = vld [vmem:[%s3331_s6] sm:$0xff]  ;;  %v1484_v21 = vld [vmem:[%s3331_s6 + $0x10] sm:$0xff] }
 0x275   :  { %v3020_v50 = vpack.c.bf16 %v1483_v12, %v1482_v51  ;;  %v3027_v28 = vpack.c.bf16 %v1485_v61, %v1484_v21  ;;  %v768_v12 = vmul.f32 0.0, %v703_v37  ;;  %v773_v37 = vmul.f32 0.0, %v728_v39 }
 0x277   :  { %2034 = vmatprep.subr.bf16.mxu0 %v3020_v50  ;;  %2065 = vmatprep.subr.bf16.mxu1 %v3020_v50 }
 0x278   :  { %1260 = vrot.lane.b32.xlu0 %v2961_v30, %s2202_s5  ;;  %1258 = vrot.lane.b32.xlu1 %v2957_v19, %s2202_s5  ;;  %v1488_v19 = vld [vmem:[%s3331_s6 + $0x30] sm:$0xff] }
 0x279   :  { %2036 = vmatpush3.bf16.msra.mxu0 %v3020_v50  ;;  %v3055_v23 = vpack.c.bf16 %v1489_v29, %v1488_v19  ;;  %v771_v29 = vmul.f32 0.0, %v718_v7 }
 0x27a   :  { %2038 = vmatprep.subr.bf16.mxu0 %v3027_v28 }
 0x27c   :  { %1264 = vrot.lane.b32.xlu0 %v2974_v55, %s2202_s5  ;;  %1262 = vrot.lane.b32.xlu1 %v2970_v56, %s2202_s5  ;;  %v3083_v55 = vpack.c.bf16 %v1493_v36, %v1492_v63 }
 0x27d   :  { %2040 = vmatpush3.bf16.msra.mxu0 %v3027_v28 }
 0x27e   :  { %2042 = vmatprep.subr.bf16.mxu0 %v3041_v33 }
 0x280   :  { %1268 = vrot.lane.b32.xlu0 %v1011_v9, %s2202_s5  ;;  %1266 = vrot.lane.b32.xlu1 %v1010_v15, %s2202_s5  ;;  %v713_v15 = vpop.permute.xlu1 %712 }
 0x281   :  { %2044 = vmatpush3.bf16.msra.mxu0 %v3041_v33  ;;  %v770_v19 = vmul.f32 0.0, %v713_v15 }
 0x282   :  { %2046 = vmatprep.subr.bf16.mxu0 %v3055_v23 }
 0x284   :  { %1272 = vrot.lane.b32.xlu0 %v1013_v26, %s2202_s5  ;;  %1270 = vrot.lane.b32.xlu1 %v1012_v53, %s2202_s5  ;;  %v723_v9 = vpop.permute.xlu1 %722  ;;  %v3108_v26 = vpop.permute.xlu0 %757 }
 0x285   :  { %v2999_v48 = vpop.f32.mrb[0].mxu0  ;;  %2048 = vmatpush3.bf16.msra.mxu0 %v3055_v23 }
 0x286   :  { %v3001_v2 = vpop.f32.mrb[1].mxu0  ;;  %2050 = vmatprep.subr.bf16.mxu0 %v3069_v35 }
 0x287   :  { %v3003_v5 = vpop.f32.mrb[2].mxu0  ;;  %v950_v52 = vadd.f32 %v3001_v2, %v765_v45  ;;  %v769_v2 = vmul.f32 0.0, %v708_v10 }
 0x288   :  { %1276 = vrot.lane.b32.xlu0 %v1015_v54, %s2202_s5  ;;  %1274 = vrot.lane.b32.xlu1 %v1014_v57, %s2202_s5  ;;  %v3005_v31 = vpop.f32.mrb[3].mxu0  ;;  %v733_v22 = vpop.permute.xlu1 %732  ;;  %v767_v54 = vmul.f32 0.0, %v698_v11  ;;  %v953_v8 = vadd.f32 %v3003_v5, %v768_v12 }
 0x289   :  { %2052 = vmatpush3.bf16.msra.mxu0 %v3069_v35  ;;  %v951_v18 = vadd.f32 %v3005_v31, %v766_v1 }
 0x28a   :  { %2054 = vmatprep.subr.bf16.mxu0 %v3083_v55  ;;  %v952_v14 = vadd.f32 %v2999_v48, %v767_v54 }
 0x28c   :  { %1278 = vrot.lane.b32.xlu1 %v1016_v4, %s2202_s5  ;;  %v3102_v44 = vpop.permute.xlu1 %742 }
 0x28d   :  { %v3007_v0 = vpop.f32.mrb[4].mxu0  ;;  %2056 = vmatpush3.bf16.msra.mxu0 %v3083_v55 }
 0x28e   :  { %v3018_v25 = vpop.f32.mrb[5].mxu0  ;;  %2058 = vmatprep.subr.bf16.mxu0 %v3097_v6  ;;  %v956_v41 = vadd.f32 %v3007_v0, %v771_v29 }
 0x28f   :  { %v3025_v27 = vpop.f32.mrb[6].mxu0  ;;  %v954_v60 = vadd.f32 %v3018_v25, %v769_v2  ;;  %v772_v25 = vmul.f32 0.0, %v723_v9 }
 0x290   :  { %v3035_v24 = vpop.f32.mrb[7].mxu0  ;;  %v3106_v53 = vpop.permute.xlu1 %752 }
 0x291   :  { %2060 = vmatpush3.bf16.msra.mxu0 %v3097_v6  ;;  %v955_v11 = vadd.f32 %v3035_v24, %v770_v19  ;;  %v957_v1 = vadd.f32 %v3025_v27, %v772_v25 }
 0x294   :  { %v3111_v59 = vpop.permute.xlu1 %762 }
 0x295   :  { %v3049_v30 = vpop.f32.mrb[8].mxu0 }
 0x296   :  { %v3052_v58 = vpop.f32.mrb[9].mxu0 }
 0x297   :  { %v3057_v40 = vpop.f32.mrb[10].mxu0  ;;  %v958_v0 = vadd.f32 %v3052_v58, %v773_v37 }
 0x298   :  { %v3065_v49 = vpop.f32.mrb[11].mxu0 }
 0x29d   :  { %v3077_v56 = vpop.f32.mrb[12].mxu0 }
 0x29e   :  { %v3080_v20 = vpop.f32.mrb[13].mxu0 }
 0x29f   :  { %v3085_v34 = vpop.f32.mrb[14].mxu0 }
 0x2a0   :  { %v3093_v38 = vpop.f32.mrb[15].mxu0 }
 0x2ca   :  { %v1052_v57 = vpop.permute.xlu0 %1051 }
 0x2cb   :  { %v1129_v4 = vmul.f32 %v1052_v57, %v950_v52 }
 0x2cd   :  { %v1152_v61 = vadd.f32 %v3117_v16, %v1129_v4 }
 0x2ce   :  { %v1062_v32 = vpop.permute.xlu0 %1061 }
 0x2cf   :  { %v1057_v17 = vpop.permute.xlu1 %1056  ;;  %v1131_v51 = vmul.f32 %v1062_v32, %v952_v14  ;;  %v1168_v36 = vmax.f32 %v1152_v61, 0.0  ;;  %v774_v14 = vmul.f32 0.0, %v733_v22  ;;  %v776_v22 = vmul.f32 0.0, %v3102_v44 }
 0x2d0   :  { %v1130_v21 = vmul.f32 %v1057_v17, %v951_v18  ;;  %v775_v18 = vmul.f32 0.0, %v738_v42  ;;  %v777_v42 = vmul.f32 0.0, %v3104_v47  ;;  %v778_v47 = vmul.f32 0.0, %v3106_v53 }
 0x2d1   :  { %v1154_v46 = vadd.f32 %v3117_v16, %v1131_v51  ;;  %v959_v58 = vadd.f32 %v3065_v49, %v774_v14 }
 0x2d2   :  { %v1153_v48 = vadd.f32 %v3117_v16, %v1130_v21  ;;  %v960_v27 = vadd.f32 %v3049_v30, %v775_v18  ;;  %v961_v30 = vadd.f32 %v3057_v40, %v776_v22  ;;  %v962_v49 = vadd.f32 %v3080_v20, %v777_v42  ;;  %v1497_v22 = vld [vmem:[%s3331_s6 + $0x78] sm:$0xff] }
 0x2d3   :  { %v1067_v43 = vpop.permute.xlu1 %1066  ;;  %v1072_v31 = vpop.permute.xlu0 %1071  ;;  %v1170_v10 = vmax.f32 %v1154_v46, 0.0  ;;  %v963_v20 = vadd.f32 %v3093_v38, %v778_v47 }
 0x2d4   :  { %v1132_v13 = vmul.f32 %v1067_v43, %v953_v8  ;;  %v1133_v63 = vmul.f32 %v1072_v31, %v954_v60  ;;  %v1169_v62 = vmax.f32 %v1153_v48, 0.0  ;;  %v779_v31 = vmul.f32 0.0, %v3108_v26 }
 0x2d5   :  { %v780_v26 = vmul.f32 0.0, %v3111_v59 }
 0x2d6   :  { %v1155_v5 = vadd.f32 %v3117_v16, %v1132_v13  ;;  %v1313_v3 = vpack.c.bf16 %v1169_v62, %v1168_v36  ;;  %v1156_v52 = vadd.f32 %v3117_v16, %v1133_v63  ;;  %v964_v40 = vadd.f32 %v3077_v56, %v779_v31 }
 0x2d7   :  { %v1077_v15 = vpop.permute.xlu1 %1076  ;;  %v1082_v7 = vpop.permute.xlu0 %1081 }
 0x2d8   :  { %v1171_v45 = vmax.f32 %v1155_v5, 0.0  ;;  %v1134_v57 = vmul.f32 %v1077_v15, %v955_v11  ;;  %v1135_v54 = vmul.f32 %v1082_v7, %v956_v41  ;;  %1961 = vmatprep.mubr.bf16.mxu1 %v1313_v3  ;;  %v1172_v17 = vmax.f32 %v1156_v52, 0.0 }
 0x2da   :  { %v1157_v24 = vadd.f32 %v3117_v16, %v1134_v57  ;;  %v1314_v4 = vpack.c.bf16 %v1171_v45, %v1170_v10  ;;  %v1158_v9 = vadd.f32 %v3117_v16, %v1135_v54 }
 0x2db   :  { %v1087_v39 = vpop.permute.xlu1 %1086  ;;  %v1092_v32 = vpop.permute.xlu0 %1091 }
 0x2dc   :  { %v1173_v51 = vmax.f32 %v1157_v24, 0.0  ;;  %v1136_v12 = vmul.f32 %v1087_v39, %v957_v1  ;;  %v1137_v2 = vmul.f32 %v1092_v32, %v958_v0  ;;  %1962 = vmatmul.mubr.bf16.vlgmr.msra.gmra.mrb[0].mxu1 %v1314_v4  ;;  %v1174_v8 = vmax.f32 %v1158_v9, 0.0 }
 0x2dd   :  { %2073 = vmatpush3.bf16.msra.mxu1 %v3020_v50 }
 0x2de   :  { %v1159_v21 = vadd.f32 %v3117_v16, %v1136_v12  ;;  %v1315_v61 = vpack.c.bf16 %v1173_v51, %v1172_v17  ;;  %2066 = vmatprep.subr.bf16.mxu1 %v3027_v28  ;;  %v1160_v29 = vadd.f32 %v3117_v16, %v1137_v2 }
 0x2df   :  { %v1097_v60 = vpop.permute.xlu1 %1096  ;;  %v1102_v48 = vpop.permute.xlu0 %1101 }
 0x2e0   :  { %v1175_v19 = vmax.f32 %v1159_v21, 0.0  ;;  %v1138_v50 = vmul.f32 %v1097_v60, %v959_v58  ;;  %v1139_v46 = vmul.f32 %v1102_v48, %v960_v27  ;;  %1965 = vmatprep.mubr.bf16.mxu1 %v1315_v61  ;;  %v1176_v62 = vmax.f32 %v1160_v29, 0.0  ;;  %v1496_v61 = vld [vmem:[%s3331_s6 + $0x70] sm:$0xff] }
 0x2e1   :  { %2074 = vmatpush3.bf16.msra.mxu1 %v3027_v28  ;;  %v2061_v42 = vpack.c.bf16 %v1497_v22, %v1496_v61 }
 0x2e2   :  { %v1161_v43 = vadd.f32 %v3117_v16, %v1138_v50  ;;  %v1316_v44 = vpack.c.bf16 %v1175_v19, %v1174_v8  ;;  %2067 = vmatprep.subr.bf16.mxu1 %v3041_v33  ;;  %v1162_v13 = vadd.f32 %v3117_v16, %v1139_v46 }
 0x2e3   :  { %v1107_v63 = vpop.permute.xlu1 %1106  ;;  %v1112_v36 = vpop.permute.xlu0 %1111  ;;  %2062 = vmatprep.subr.bf16.mxu0 %v2061_v42 }
 0x2e4   :  { %v1177_v41 = vmax.f32 %v1161_v43, 0.0  ;;  %v1140_v28 = vmul.f32 %v1107_v63, %v961_v30  ;;  %v1141_v11 = vmul.f32 %v1112_v36, %v962_v49  ;;  %1966 = vmatmul.mubr.bf16.gmra.mrb[4].mxu1 %v1316_v44  ;;  %v1178_v3 = vmax.f32 %v1162_v13, 0.0  ;;  %2064 = vmatpush3.bf16.msra.mxu0 %v2061_v42 }
 0x2e5   :  { %2075 = vmatpush3.bf16.msra.mxu1 %v3041_v33  ;;  %v965_v33 = vadd.f32 %v3085_v34, %v780_v26 }
 0x2e6   :  { %v1163_v5 = vadd.f32 %v3117_v16, %v1140_v28  ;;  %v1317_v53 = vpack.c.bf16 %v1177_v41, %v1176_v62  ;;  %2068 = vmatprep.subr.bf16.mxu1 %v3055_v23  ;;  %v1164_v15 = vadd.f32 %v3117_v16, %v1141_v11 }
 0x2e7   :  { %v1117_v25 = vpop.permute.xlu1 %1116  ;;  %v1122_v37 = vpop.permute.xlu0 %1121 }
 0x2e8   :  { %v1179_v10 = vmax.f32 %v1163_v5, 0.0  ;;  %v1142_v7 = vmul.f32 %v1117_v25, %v963_v20  ;;  %v1143_v45 = vmul.f32 %v1122_v37, %v964_v40  ;;  %1969 = vmatprep.mubr.bf16.mxu1 %v1317_v53  ;;  %v1180_v57 = vmax.f32 %v1164_v15, 0.0 }
 0x2e9   :  { %2076 = vmatpush3.bf16.msra.mxu1 %v3055_v23 }
 0x2ea   :  { %v1165_v56 = vadd.f32 %v3117_v16, %v1142_v7  ;;  %v1318_v38 = vpack.c.bf16 %v1179_v10, %v1178_v3  ;;  %2069 = vmatprep.subr.bf16.mxu1 %v3069_v35  ;;  %v1166_v1 = vadd.f32 %v3117_v16, %v1143_v45 }
 0x2eb   :  { %v1127_v59 = vpop.permute.xlu1 %1126  ;;  %v1249_v52 = vpop.permute.xlu0 %1248 }
 0x2ec   :  { %v1181_v54 = vmax.f32 %v1165_v56, 0.0  ;;  %v1144_v0 = vmul.f32 %v1127_v59, %v965_v33  ;;  %1297 = vst.msk [vmem:[%s3329_s9] sm:$0xff] %vm1296_vm0, %v1249_v52  ;;  %1970 = vmatmul.mubr.bf16.gmra.mrb[8].mxu1 %v1318_v38  ;;  %v1182_v14 = vmax.f32 %v1166_v1, 0.0 }
 0x2ed   :  { %2077 = vmatpush3.bf16.msra.mxu1 %v3069_v35 }
 0x2ee   :  { %v1167_v23 = vadd.f32 %v3117_v16, %v1144_v0  ;;  %v1319_v34 = vpack.c.bf16 %v1181_v54, %v1180_v57  ;;  %2070 = vmatprep.subr.bf16.mxu1 %v3083_v55 }
 0x2ef   :  { %v1251_v24 = vpop.permute.xlu1 %1250  ;;  %v1253_v4 = vpop.permute.xlu0 %1252 }
 0x2f0   :  { %v1183_v18 = vmax.f32 %v1167_v23, 0.0  ;;  %1298 = vst.msk [vmem:[%s3329_s9 + $0x8] sm:$0xff] %vm1296_vm0, %v1251_v24  ;;  %1299 = vst.msk [vmem:[%s3329_s9 + $0x10] sm:$0xff] %vm1296_vm0, %v1253_v4  ;;  %1973 = vmatprep.mubr.bf16.mxu1 %v1319_v34 }
 0x2f1   :  { %2078 = vmatpush3.bf16.msra.mxu1 %v3083_v55 }
 0x2f2   :  { %v1320_v35 = vpack.c.bf16 %v1183_v18, %v1182_v14  ;;  %2071 = vmatprep.subr.bf16.mxu1 %v3097_v6 }
 0x2f3   :  { %v1255_v16 = vpop.permute.xlu1 %1254  ;;  %v1257_v9 = vpop.permute.xlu0 %1256 }
 0x2f4   :  { %1300 = vst.msk [vmem:[%s3329_s9 + $0x18] sm:$0xff] %vm1296_vm0, %v1255_v16  ;;  %1301 = vst.msk [vmem:[%s3329_s9 + $0x20] sm:$0xff] %vm1296_vm0, %v1257_v9  ;;  %1974 = vmatmul.mubr.bf16.gmra.mrb[12].mxu1 %v1320_v35 }
 0x2f5   :  { %2079 = vmatpush3.bf16.msra.mxu1 %v3097_v6 }
 0x2f6   :  { %2072 = vmatprep.subr.bf16.mxu1 %v2061_v42 }
 0x2f7   :  { %v1259_v39 = vpop.permute.xlu1 %1258  ;;  %v1261_v55 = vpop.permute.xlu0 %1260 }
 0x2f8   :  { %1302 = vst.msk [vmem:[%s3329_s9 + $0x28] sm:$0xff] %vm1296_vm0, %v1259_v39  ;;  %1303 = vst.msk [vmem:[%s3329_s9 + $0x30] sm:$0xff] %vm1296_vm0, %v1261_v55 }
 0x2f9   :  { %2080 = vmatpush3.bf16.msra.mxu1 %v2061_v42 }
 0x2fb   :  { %v1263_v32 = vpop.permute.xlu1 %1262  ;;  %v1265_v17 = vpop.permute.xlu0 %1264 }
 0x2fc   :  { %1304 = vst.msk [vmem:[%s3329_s9 + $0x38] sm:$0xff] %vm1296_vm0, %v1263_v32  ;;  %1305 = vst.msk [vmem:[%s3329_s9 + $0x40] sm:$0xff] %vm1296_vm0, %v1265_v17 }
 0x2ff   :  { %v1267_v6 = vpop.permute.xlu1 %1266  ;;  %v1269_v51 = vpop.permute.xlu0 %1268 }
 0x300   :  { %1306 = vst.msk [vmem:[%s3329_s9 + $0x48] sm:$0xff] %vm1296_vm0, %v1267_v6  ;;  %1307 = vst.msk [vmem:[%s3329_s9 + $0x50] sm:$0xff] %vm1296_vm0, %v1269_v51 }
 0x303   :  { %v1271_v12 = vpop.permute.xlu1 %1270  ;;  %v1273_v2 = vpop.permute.xlu0 %1272 }
 0x304   :  { %1308 = vst.msk [vmem:[%s3329_s9 + $0x58] sm:$0xff] %vm1296_vm0, %v1271_v12  ;;  %1309 = vst.msk [vmem:[%s3329_s9 + $0x60] sm:$0xff] %vm1296_vm0, %v1273_v2 }
 0x307   :  { %v1275_v27 = vpop.permute.xlu1 %1274  ;;  %v1277_v58 = vpop.permute.xlu0 %1276 }
 0x308   :  { %1310 = vst.msk [vmem:[%s3329_s9 + $0x68] sm:$0xff] %vm1296_vm0, %v1275_v27  ;;  %1311 = vst.msk [vmem:[%s3329_s9 + $0x70] sm:$0xff] %vm1296_vm0, %v1277_v58 }
 0x30b   :  { %v1279_v21 = vpop.permute.xlu1 %1278 }
 0x30c   :  { %1312 = vst.msk [vmem:[%s3329_s9 + $0x78] sm:$0xff] %vm1296_vm0, %v1279_v21 }
 0x3af   :  { %v1963_v8 = vpop.f32.mrb[0].mxu1 }
 0x3b0   :  { %v1419_v60 = vpop.f32.mrb[1].mxu1 }
 0x3b1   :  { %v1964_v48 = vpop.f32.mrb[2].mxu1  ;;  %2009 = vmatprep.mubr.f32.mxu0 %v1419_v60 }
 0x3b2   :  { %v1810_v19 = vpack.c.bf16 %v1964_v48, %v1963_v8  ;;  %v1422_v29 = vpop.f32.mrb[3].mxu1 }
 0x3b3   :  { %v1805_v50 = vpack.c.bf16 %v1422_v29, %v1419_v60  ;;  %2010 = vmatmul.mubr.f32.vlgmr.msra.gmra.mrb[16].mxu0 %v1422_v29 }
 0x3b4   :  { %1842 = vst [vmem:[%s3333_s7 + $0x8] sm:$0xff] %v1810_v19   ;;  %2012 = vmatprep.mubr.f32.mxu0 %v1963_v8 }
 0x3b5   :  { %1806 = vst [vmem:[%s3333_s7] sm:$0xff] %v1805_v50  }
 0x3b7   :  { %v1967_v46 = vpop.f32.mrb[4].mxu1  ;;  %2013 = vmatmul.mubr.f32.gmra.mrb[18].mxu0 %v1964_v48 }
 0x3b8   :  { %v1435_v30 = vpop.f32.mrb[5].mxu1 }
 0x3b9   :  { %v1968_v49 = vpop.f32.mrb[6].mxu1  ;;  %2015 = vmatprep.mubr.f32.mxu0 %v1435_v30 }
 0x3ba   :  { %v1820_v43 = vpack.c.bf16 %v1968_v49, %v1967_v46  ;;  %v1438_v44 = vpop.f32.mrb[7].mxu1 }
 0x3bb   :  { %v1815_v47 = vpack.c.bf16 %v1438_v44, %v1435_v30  ;;  %2016 = vmatmul.mubr.f32.gmra.mrb[20].mxu0 %v1438_v44 }
 0x3bc   :  { %1844 = vst [vmem:[%s3333_s7 + $0x18] sm:$0xff] %v1820_v43   ;;  %2018 = vmatprep.mubr.f32.mxu0 %v1967_v46 }
 0x3bd   :  { %1843 = vst [vmem:[%s3333_s7 + $0x10] sm:$0xff] %v1815_v47  }
 0x3bf   :  { %v1971_v31 = vpop.f32.mrb[8].mxu1  ;;  %2019 = vmatmul.mubr.f32.gmra.mrb[22].mxu0 %v1968_v49 }
 0x3c0   :  { %v1451_v13 = vpop.f32.mrb[9].mxu1 }
 0x3c1   :  { %v1972_v63 = vpop.f32.mrb[10].mxu1  ;;  %2021 = vmatprep.mubr.f32.mxu1 %v1451_v13 }
 0x3c2   :  { %v1830_v36 = vpack.c.bf16 %v1972_v63, %v1971_v31  ;;  %v1454_v62 = vpop.f32.mrb[11].mxu1 }
 0x3c3   :  { %v1825_v41 = vpack.c.bf16 %v1454_v62, %v1451_v13  ;;  %2022 = vmatmul.mubr.f32.vlgmr.msra.gmra.mrb[16].mxu1 %v1454_v62 }
 0x3c4   :  { %1846 = vst [vmem:[%s3333_s7 + $0x28] sm:$0xff] %v1830_v36   ;;  %2024 = vmatprep.mubr.f32.mxu1 %v1971_v31 }
 0x3c5   :  { %1845 = vst [vmem:[%s3333_s7 + $0x20] sm:$0xff] %v1825_v41  }
 0x3c7   :  { %v1975_v28 = vpop.f32.mrb[12].mxu1  ;;  %2025 = vmatmul.mubr.f32.gmra.mrb[18].mxu1 %v1972_v63 }
 0x3c8   :  { %v1467_v11 = vpop.f32.mrb[13].mxu1 }
 0x3c9   :  { %v1976_v40 = vpop.f32.mrb[14].mxu1  ;;  %2027 = vmatprep.mubr.f32.mxu1 %v1467_v11 }
 0x3ca   :  { %v1840_v20 = vpack.c.bf16 %v1976_v40, %v1975_v28  ;;  %v1470_v5 = vpop.f32.mrb[15].mxu1 }
 0x3cb   :  { %v1835_v53 = vpack.c.bf16 %v1470_v5, %v1467_v11  ;;  %2028 = vmatmul.mubr.f32.gmra.mrb[20].mxu1 %v1470_v5 }
 0x3cc   :  { %1848 = vst [vmem:[%s3333_s7 + $0x38] sm:$0xff] %v1840_v20   ;;  %2030 = vmatprep.mubr.f32.mxu1 %v1975_v28 }
 0x3cd   :  { %1847 = vst [vmem:[%s3333_s7 + $0x30] sm:$0xff] %v1835_v53  }
 0x3cf   :  { %2031 = vmatmul.mubr.f32.gmra.mrb[22].mxu1 %v1976_v40 }
 0x486   :  { %v2011_v26 = vpop.f32.mrb[16].mxu0 }
 0x487   :  { %1645 = vst.msk [vmem:[%s3334_s8 + $0x8] sm:$0xff] %vm1643_vm3, %v2011_v26  ;;  %v1564_v3 = vpop.f32.mrb[17].mxu0 }
 0x488   :  { %1644 = vst.msk [vmem:[%s3334_s8] sm:$0xff] %vm1643_vm3, %v1564_v3 }
 0x48a   :  { %v2014_v25 = vpop.f32.mrb[18].mxu0 }
 0x48b   :  { %1647 = vst.msk [vmem:[%s3334_s8 + $0x18] sm:$0xff] %vm1643_vm3, %v2014_v25  ;;  %v1574_v37 = vpop.f32.mrb[19].mxu0 }
 0x48c   :  { %1646 = vst.msk [vmem:[%s3334_s8 + $0x10] sm:$0xff] %vm1643_vm3, %v1574_v37 }
 0x48e   :  { %v2017_v10 = vpop.f32.mrb[20].mxu0 }
 0x48f   :  { %1649 = vst.msk [vmem:[%s3334_s8 + $0x28] sm:$0xff] %vm1643_vm3, %v2017_v10  ;;  %v1584_v15 = vpop.f32.mrb[21].mxu0 }
 0x490   :  { %1648 = vst.msk [vmem:[%s3334_s8 + $0x20] sm:$0xff] %vm1643_vm3, %v1584_v15 }
 0x492   :  { %v2020_v7 = vpop.f32.mrb[22].mxu0 }
 0x493   :  { %1651 = vst.msk [vmem:[%s3334_s8 + $0x38] sm:$0xff] %vm1643_vm3, %v2020_v7  ;;  %v1594_v45 = vpop.f32.mrb[23].mxu0 }
 0x494   :  { %1650 = vst.msk [vmem:[%s3334_s8 + $0x30] sm:$0xff] %vm1643_vm3, %v1594_v45 }
 0x496   :  { %v2023_v33 = vpop.f32.mrb[16].mxu1 }
 0x497   :  { %1653 = vst.msk [vmem:[%s3334_s8 + $0x48] sm:$0xff] %vm1643_vm3, %v2023_v33  ;;  %v1604_v56 = vpop.f32.mrb[17].mxu1 }
 0x498   :  { %1652 = vst.msk [vmem:[%s3334_s8 + $0x40] sm:$0xff] %vm1643_vm3, %v1604_v56 }
 0x49a   :  { %v2026_v38 = vpop.f32.mrb[18].mxu1 }
 0x49b   :  { %1655 = vst.msk [vmem:[%s3334_s8 + $0x58] sm:$0xff] %vm1643_vm3, %v2026_v38  ;;  %v1614_v59 = vpop.f32.mrb[19].mxu1 }
 0x49c   :  { %1654 = vst.msk [vmem:[%s3334_s8 + $0x50] sm:$0xff] %vm1643_vm3, %v1614_v59 }
 0x49e   :  { %v2029_v52 = vpop.f32.mrb[20].mxu1 }
 0x49f   :  { %1657 = vst.msk [vmem:[%s3334_s8 + $0x68] sm:$0xff] %vm1643_vm3, %v2029_v52  ;;  %v1624_v57 = vpop.f32.mrb[21].mxu1 }
 0x4a0   :  { %1656 = vst.msk [vmem:[%s3334_s8 + $0x60] sm:$0xff] %vm1643_vm3, %v1624_v57 }
 0x4a2   :  { %v2032_v54 = vpop.f32.mrb[22].mxu1 }
 0x4a3   :  { %1659 = vst.msk [vmem:[%s3334_s8 + $0x78] sm:$0xff] %vm1643_vm3, %v2032_v54  ;;  %v1634_v1 = vpop.f32.mrb[23].mxu1 }
 0x4a4   :  { %1658 = vst.msk [vmem:[%s3334_s8 + $0x70] sm:$0xff] %vm1643_vm3, %v1634_v1 }

</bundles_post_ra>
